<compile_context>
chip_gen: v7x
topology: tpu7x:2x2x1
jax: 0.10.0
libtpu: 0.0.40
codegen_flags: <defaults>
</compile_context>

<pallas_src>
import functools
import math

import jax
import jax.numpy as jnp
import numpy as np
from jax.experimental import pallas as pl
from jax.experimental.pallas import tpu as pltpu


# ----------------------------------------------------------------------------
# Fused Pallas kernel: G (batch, node) groups per grid step
# ----------------------------------------------------------------------------

def _encoder_layer_kernel(
    xt_ref, xg_ref,
    wqkv_t_ref, bqkv_t_ref, wqkv_g_ref, bqkv_g_ref,
    wo_t_ref, bo_t_ref, wo_g_ref, bo_g_ref,
    t_w1_ref, t_b1_ref, t_w2_ref, t_b2_ref, t_gamma_ref, t_beta_ref,
    g_w1_ref, g_b1_ref, g_w2_ref, g_b2_ref, g_gamma_ref, g_beta_ref,
    scores_ref, vals_ref,
    *, n_heads, d_head):
  H, dh = n_heads, d_head
  G, P, D = xt_ref.shape
  GP = G * P

  # Activations enter the MXU in bf16 (native throughput on all generations);
  # every matmul accumulates in f32; softmax/LayerNorm math stays f32.
  xt = xt_ref[...].reshape(GP, D).astype(jnp.bfloat16)
  xg = xg_ref[...].reshape(GP, D).astype(jnp.bfloat16)

  # ONE whole-matrix fused QKV projection per stream: [GP, D] @ [D, 3*H*dh].
  # 1/sqrt(d_keys) is folded into the query weights/biases at pack time and
  # head dims are zero-padded to dh, so padding contributes exactly zero.
  yt = jnp.dot(xt, wqkv_t_ref[...], preferred_element_type=jnp.float32) + bqkv_t_ref[...]
  yg = jnp.dot(xg, wqkv_g_ref[...], preferred_element_type=jnp.float32) + bqkv_g_ref[...]

  def head_slice(y, kind, h):
    # kind: 0=q, 1=k, 2=v ; slices are dh(=64)-aligned -> half-vreg aligned.
    s = (kind * H + h) * dh
    return y[:, s:s + dh].reshape(G, P, dh).astype(jnp.bfloat16)

  def softmax(s):
    e = jnp.exp(s - jnp.max(s, axis=-1, keepdims=True))
    # divide -> multiply by EUP reciprocal (frees VALU slots).
    return e * pl.reciprocal(jnp.sum(e, axis=-1, keepdims=True), approx=True)

  at_l, ag_l, am_l, tval_l, mval_l = [], [], [], [], []
  for h in range(H):    # statically unrolled; only the [P,P] math is per-head
    qt = head_slice(yt, 0, h)
    kt = head_slice(yt, 1, h)
    vt = head_slice(yt, 2, h)
    qg = head_slice(yg, 0, h)
    kg = head_slice(yg, 1, h)
    vg = head_slice(yg, 2, h)

    st = jnp.einsum('gqd,gkd->gqk', qt, kt, preferred_element_type=jnp.float32)
    sg = jnp.einsum('gqd,gkd->gqk', qg, kg, preferred_element_type=jnp.float32)

    at = softmax(st)
    ag = softmax(sg)
    am = softmax(st + sg)   # numerically-safe merged softmax (own row max)

    at_l.append(at)
    ag_l.append(ag)
    am_l.append(am)
    tval_l.append(jnp.einsum('gqk,gkd->gqd', at.astype(jnp.bfloat16), vt,
                             preferred_element_type=jnp.float32).astype(jnp.bfloat16))
    mval_l.append(jnp.einsum('gqk,gkd->gqd', am.astype(jnp.bfloat16), vg,
                             preferred_element_type=jnp.float32).astype(jnp.bfloat16))

  # Single full-ref store of all 3*H score maps for this step.
  scores_ref[...] = jnp.stack(
      [jnp.stack(at_l, axis=1), jnp.stack(ag_l, axis=1), jnp.stack(am_l, axis=1)],
      axis=1).astype(scores_ref.dtype)

  # Heads concatenated along lanes -> ONE lane-dense output projection per
  # stream: [GP, H*dh] @ [H*dh, D] (zero-padded wo rows kill the pad columns).
  tv_cat = jnp.concatenate(tval_l, axis=-1).reshape(GP, H * dh)
  mv_cat = jnp.concatenate(mval_l, axis=-1).reshape(GP, H * dh)
  t_proj = jnp.dot(tv_cat, wo_t_ref[...], preferred_element_type=jnp.float32) + bo_t_ref[...]
  m_proj = jnp.dot(mv_cat, wo_g_ref[...], preferred_element_type=jnp.float32) + bo_g_ref[...]

  def ffn_ln(x, w1, b1, w2, b2, gamma, beta):
    h1 = jnp.maximum(
        jnp.dot(x.astype(jnp.bfloat16), w1, preferred_element_type=jnp.float32) + b1, 0.0)
    y = jnp.dot(h1.astype(jnp.bfloat16), w2, preferred_element_type=jnp.float32) + b2
    r = x + y                                              # residual (f32)
    mu = jnp.mean(r, axis=-1, keepdims=True)
    var = jnp.mean((r - mu) * (r - mu), axis=-1, keepdims=True)
    return (r - mu) * jax.lax.rsqrt(var + 1e-5) * gamma + beta

  vals_ref[0] = ffn_ln(t_proj, t_w1_ref[...], t_b1_ref[...], t_w2_ref[...],
                       t_b2_ref[...], t_gamma_ref[...], t_beta_ref[...]
                       ).reshape(G, P, D).astype(vals_ref.dtype)
  vals_ref[1] = ffn_ln(m_proj, g_w1_ref[...], g_b1_ref[...], g_w2_ref[...],
                       g_b2_ref[...], g_gamma_ref[...], g_beta_ref[...]
                       ).reshape(G, P, D).astype(vals_ref.dtype)


def encoder_layer_forward(packed, time_features, target_features,
                          n_heads=4, d_head=64):
  """Fused EncoderLayer forward. One pallas_call, grid over group blocks."""
  B, N, P, D = time_features.shape
  BN = B * N
  H = n_heads

  # Keep >=2 grid steps (v7x has 2 TensorCores) while batching as many
  # (batch,node) groups per step as possible so the matmul M-dim is G*P.
  num_steps = 2 if (BN % 2 == 0 and BN >= 2) else 1
  G = BN // num_steps

  xt = time_features.reshape(BN, P, D)
  xg = target_features.reshape(BN, P, D)

  def full_spec(a):
    # Whole array resident in VMEM; constant block index -> no re-DMA.
    return pl.BlockSpec(a.shape, lambda i, _nd=a.ndim: (0,) * _nd)

  weight_order = [
      "wqkv_t", "bqkv_t", "wqkv_g", "bqkv_g",
      "wo_t", "bo_t", "wo_g", "bo_g",
      "t_w1", "t_b1", "t_w2", "t_b2", "t_gamma", "t_beta",
      "g_w1", "g_b1", "g_w2", "g_b2", "g_gamma", "g_beta",
  ]
  weights = [packed[k] for k in weight_order]

  in_specs = [
      pl.BlockSpec((G, P, D), lambda i: (i, 0, 0)),
      pl.BlockSpec((G, P, D), lambda i: (i, 0, 0)),
  ] + [full_spec(w) for w in weights]

  out_specs = (
      pl.BlockSpec((G, 3, H, P, P), lambda i: (i, 0, 0, 0, 0)),   # score slab
      pl.BlockSpec((2, G, P, D), lambda i: (0, i, 0, 0)),         # value slab
  )
  out_shape = (
      jax.ShapeDtypeStruct((BN, 3, H, P, P), jnp.float32),
      jax.ShapeDtypeStruct((2, BN, P, D), jnp.float32),
  )

  kernel = functools.partial(_encoder_layer_kernel, n_heads=H, d_head=d_head)

  scores, vals = pl.pallas_call(
      kernel,
      out_shape=out_shape,
      grid=(num_steps,),
      in_specs=in_specs,
      out_specs=out_specs,
      compiler_params=pltpu.CompilerParams(
          dimension_semantics=("parallel",)),
  )(xt, xg, *weights)

  ts = scores[:, 0].reshape(B, N, H, P, P)
  gs = scores[:, 1].reshape(B, N, H, P, P)
  ms = scores[:, 2].reshape(B, N, H, P, P)
  tv = vals[0].reshape(B, N, P, D)   # time_fc(time_attn_value)
  mv = vals[1].reshape(B, N, P, D)   # target_fc(merge_attn_value)
  return ts, gs, ms, mv, tv


# ----------------------------------------------------------------------------
# Parameters (deterministic, synthetic) + kernel-layout packing
# ----------------------------------------------------------------------------

def _linear_params(key, in_dim, out_dim):
  kw, kb = jax.random.split(key)
  w = jax.random.normal(kw, (in_dim, out_dim), jnp.float32) * 0.02
  b = jax.random.normal(kb, (out_dim,), jnp.float32) * 0.02
  return w, b


def init_encoder_layer_params(key, d_model, n_heads=4, d_keys=48, d_values=48):
  keys = jax.random.split(key, 16)
  p = {}
  p["wq_t"], p["bq_t"] = _linear_params(keys[0], d_model, n_heads * d_keys)
  p["wk_t"], p["bk_t"] = _linear_params(keys[1], d_model, n_heads * d_keys)
  p["wv_t"], p["bv_t"] = _linear_params(keys[2], d_model, n_heads * d_values)
  p["wq_g"], p["bq_g"] = _linear_params(keys[3], d_model, n_heads * d_keys)
  p["wk_g"], p["bk_g"] = _linear_params(keys[4], d_model, n_heads * d_keys)
  p["wv_g"], p["bv_g"] = _linear_params(keys[5], d_model, n_heads * d_values)
  p["wo_t"], p["bo_t"] = _linear_params(keys[6], n_heads * d_values, d_model)
  p["wo_g"], p["bo_g"] = _linear_params(keys[7], n_heads * d_values, d_model)
  p["t_w1"], p["t_b1"] = _linear_params(keys[8], d_model, 4 * d_model)
  p["t_w2"], p["t_b2"] = _linear_params(keys[9], 4 * d_model, d_model)
  p["t_gamma"] = jnp.ones((d_model,), jnp.float32)
  p["t_beta"] = jnp.zeros((d_model,), jnp.float32)
  p["g_w1"], p["g_b1"] = _linear_params(keys[10], d_model, 4 * d_model)
  p["g_w2"], p["g_b2"] = _linear_params(keys[11], 4 * d_model, d_model)
  p["g_gamma"] = jnp.ones((d_model,), jnp.float32)
  p["g_beta"] = jnp.zeros((d_model,), jnp.float32)
  return p


def pack_encoder_layer_params(params, n_heads=4, d_keys=48, d_values=48, d_head=64):
  """Repack PyTorch-style params into the kernel layout.

  - 1/sqrt(d_keys) folded into the query weights/biases.
  - head dims zero-padded to d_head (=64) -> bit-identical math, aligned slices.
  - q/k/v weights per stream concatenated along lanes: [D, 3*H*d_head].
  - matmul weights stored in bf16; biases / LayerNorm params stay f32.
  """
  assert d_keys == d_values, "packed qkv layout assumes d_keys == d_values"
  assert d_head >= d_keys
  H = n_heads
  D = params["wq_t"].shape[0]
  scale = 1.0 / math.sqrt(d_keys)
  bf16 = jnp.bfloat16

  def pad_heads(w, b, d, s=1.0):
    wh = (w * s).reshape(D, H, d)
    bh = (b * s).reshape(H, d)
    wh = jnp.pad(wh, ((0, 0), (0, 0), (0, d_head - d)))
    bh = jnp.pad(bh, ((0, 0), (0, d_head - d)))
    return wh.reshape(D, H * d_head), bh.reshape(1, H * d_head)

  wq_t, bq_t = pad_heads(params["wq_t"], params["bq_t"], d_keys, scale)
  wk_t, bk_t = pad_heads(params["wk_t"], params["bk_t"], d_keys)
  wv_t, bv_t = pad_heads(params["wv_t"], params["bv_t"], d_values)
  wq_g, bq_g = pad_heads(params["wq_g"], params["bq_g"], d_keys, scale)
  wk_g, bk_g = pad_heads(params["wk_g"], params["bk_g"], d_keys)
  wv_g, bv_g = pad_heads(params["wv_g"], params["bv_g"], d_values)

  def pad_out_proj(w):
    wh = w.reshape(H, d_values, D)
    wh = jnp.pad(wh, ((0, 0), (0, d_head - d_values), (0, 0)))
    return wh.reshape(H * d_head, D)

  return {
      "wqkv_t": jnp.concatenate([wq_t, wk_t, wv_t], axis=1).astype(bf16),
      "bqkv_t": jnp.concatenate([bq_t, bk_t, bv_t], axis=1),
      "wqkv_g": jnp.concatenate([wq_g, wk_g, wv_g], axis=1).astype(bf16),
      "bqkv_g": jnp.concatenate([bq_g, bk_g, bv_g], axis=1),
      "wo_t": pad_out_proj(params["wo_t"]).astype(bf16),
      "bo_t": params["bo_t"].reshape(1, D),
      "wo_g": pad_out_proj(params["wo_g"]).astype(bf16),
      "bo_g": params["bo_g"].reshape(1, D),
      "t_w1": params["t_w1"].astype(bf16), "t_b1": params["t_b1"].reshape(1, -1),
      "t_w2": params["t_w2"].astype(bf16), "t_b2": params["t_b2"].reshape(1, -1),
      "t_gamma": params["t_gamma"].reshape(1, -1),
      "t_beta": params["t_beta"].reshape(1, -1),
      "g_w1": params["g_w1"].astype(bf16), "g_b1": params["g_b1"].reshape(1, -1),
      "g_w2": params["g_w2"].astype(bf16), "g_b2": params["g_b2"].reshape(1, -1),
      "g_gamma": params["g_gamma"].reshape(1, -1),
      "g_beta": params["g_beta"].reshape(1, -1),
  }


# ----------------------------------------------------------------------------
# Pure-JAX reference (for correctness check)
# ----------------------------------------------------------------------------

def encoder_layer_reference(params, time_features, target_features,
                            n_heads=4, d_keys=48, d_values=48):
  B, N, P, D = time_features.shape
  H = n_heads
  scale = 1.0 / math.sqrt(d_keys)

  def proj(x, w, b, d):
    y = x @ w + b
    y = y.reshape(B, N, P, H, d)
    return jnp.transpose(y, (0, 1, 3, 2, 4))       # [B, N, H, P, d]

  qt = proj(time_features, params["wq_t"], params["bq_t"], d_keys)
  kt = proj(time_features, params["wk_t"], params["bk_t"], d_keys)
  vt = proj(time_features, params["wv_t"], params["bv_t"], d_values)
  qg = proj(target_features, params["wq_g"], params["bq_g"], d_keys)
  kg = proj(target_features, params["wk_g"], params["bk_g"], d_keys)
  vg = proj(target_features, params["wv_g"], params["bv_g"], d_values)

  st = jnp.einsum('bnhqd,bnhkd->bnhqk', qt, kt) * scale
  sg = jnp.einsum('bnhqd,bnhkd->bnhqk', qg, kg) * scale
  at = jax.nn.softmax(st, axis=-1)
  ag = jax.nn.softmax(sg, axis=-1)
  am = jax.nn.softmax(st + sg, axis=-1)

  tv = jnp.einsum('bnhqk,bnhkd->bnhqd', at, vt)
  mv = jnp.einsum('bnhqk,bnhkd->bnhqd', am, vg)

  def merge(x):
    return jnp.transpose(x, (0, 1, 3, 2, 4)).reshape(B, N, P, H * d_values)

  t_proj = merge(tv) @ params["wo_t"] + params["bo_t"]
  m_proj = merge(mv) @ params["wo_g"] + params["bo_g"]

  def ffn_ln(x, w1, b1, w2, b2, gamma, beta):
    y = jnp.maximum(x @ w1 + b1, 0.0) @ w2 + b2
    r = x + y
    mu = r.mean(-1, keepdims=True)
    var = ((r - mu) ** 2).mean(-1, keepdims=True)
    return (r - mu) * jax.lax.rsqrt(var + 1e-5) * gamma + beta

  t_out = ffn_ln(t_proj, params["t_w1"], params["t_b1"], params["t_w2"],
                 params["t_b2"], params["t_gamma"], params["t_beta"])
  m_out = ffn_ln(m_proj, params["g_w1"], params["g_b1"], params["g_w2"],
                 params["g_b2"], params["g_gamma"], params["g_beta"])
  return at, ag, am, m_out, t_out


# ----------------------------------------------------------------------------
# Main
# ----------------------------------------------------------------------------

if __name__ == "__main__":
  B, N, P, D = 2, 2, 8, 32   # batch, n_nodes, n_patches, d_model
  H = 4

  key = jax.random.PRNGKey(0)
  k_tf, k_gf, k_params = jax.random.split(key, 3)
  time_features = jax.random.normal(k_tf, (B, N, P, D), jnp.float32)
  target_features = jax.random.normal(k_gf, (B, N, P, D), jnp.float32)

  params = init_encoder_layer_params(k_params, D, n_heads=H)
  packed = pack_encoder_layer_params(params, n_heads=H)

  fwd = jax.jit(encoder_layer_forward)
  outs = jax.block_until_ready(fwd(packed, time_features, target_features))

  ts, gs, ms, mv, tv = outs
  assert ts.shape == (B, N, H, P, P)
  assert gs.shape == (B, N, H, P, P)
  assert ms.shape == (B, N, H, P, P)
  assert mv.shape == (B, N, P, D)
  assert tv.shape == (B, N, P, D)
  assert all(bool(jnp.all(jnp.isfinite(o))) for o in outs)

  # Correctness vs. a pure-JAX f32 reference of the same (assumed) semantics.
  refs = encoder_layer_reference(params, time_features, target_features, n_heads=H)
  for o, r in zip(outs, refs):
    np.testing.assert_allclose(np.asarray(o), np.asarray(r), atol=5e-2, rtol=5e-2)

  print("KERNEL_OK")
</pallas_src>

<mosaic_0001>
module attributes {stable_mosaic.version = 11 : i64} {
  func.func @_encoder_layer_kernel(%arg0: i32, %arg1: memref<2x8x32xf32, #tpu.memory_space<vmem>>, %arg2: memref<2x8x32xf32, #tpu.memory_space<vmem>>, %arg3: memref<32x768xbf16, #tpu.memory_space<vmem>>, %arg4: memref<1x768xf32, #tpu.memory_space<vmem>>, %arg5: memref<32x768xbf16, #tpu.memory_space<vmem>>, %arg6: memref<1x768xf32, #tpu.memory_space<vmem>>, %arg7: memref<256x32xbf16, #tpu.memory_space<vmem>>, %arg8: memref<1x32xf32, #tpu.memory_space<vmem>>, %arg9: memref<256x32xbf16, #tpu.memory_space<vmem>>, %arg10: memref<1x32xf32, #tpu.memory_space<vmem>>, %arg11: memref<32x128xbf16, #tpu.memory_space<vmem>>, %arg12: memref<1x128xf32, #tpu.memory_space<vmem>>, %arg13: memref<128x32xbf16, #tpu.memory_space<vmem>>, %arg14: memref<1x32xf32, #tpu.memory_space<vmem>>, %arg15: memref<1x32xf32, #tpu.memory_space<vmem>>, %arg16: memref<1x32xf32, #tpu.memory_space<vmem>>, %arg17: memref<32x128xbf16, #tpu.memory_space<vmem>>, %arg18: memref<1x128xf32, #tpu.memory_space<vmem>>, %arg19: memref<128x32xbf16, #tpu.memory_space<vmem>>, %arg20: memref<1x32xf32, #tpu.memory_space<vmem>>, %arg21: memref<1x32xf32, #tpu.memory_space<vmem>>, %arg22: memref<1x32xf32, #tpu.memory_space<vmem>>, %arg23: memref<2x3x4x8x8xf32, #tpu.memory_space<vmem>>, %arg24: memref<2x2x8x32xf32, #tpu.memory_space<vmem>>) attributes {dimension_semantics = [#tpu.dimension_semantics<parallel>], iteration_bounds = array<i64: 2>, scalar_prefetch = 0 : i64, scratch_operands = 0 : i64, tpu.core_type = #tpu.core_type<tc>, window_params = [{transform_indices = @transform_0, window_bounds = array<i64: 2, 8, 32>}, {transform_indices = @transform_1, window_bounds = array<i64: 2, 8, 32>}, {pipeline_mode = #tpu.pipeline_mode<synchronous>, transform_indices = @transform_2, window_bounds = array<i64: 32, 768>}, {pipeline_mode = #tpu.pipeline_mode<synchronous>, transform_indices = @transform_3, window_bounds = array<i64: 1, 768>}, {pipeline_mode = #tpu.pipeline_mode<synchronous>, transform_indices = @transform_4, window_bounds = array<i64: 32, 768>}, {pipeline_mode = #tpu.pipeline_mode<synchronous>, transform_indices = @transform_5, window_bounds = array<i64: 1, 768>}, {pipeline_mode = #tpu.pipeline_mode<synchronous>, transform_indices = @transform_6, window_bounds = array<i64: 256, 32>}, {pipeline_mode = #tpu.pipeline_mode<synchronous>, transform_indices = @transform_7, window_bounds = array<i64: 1, 32>}, {pipeline_mode = #tpu.pipeline_mode<synchronous>, transform_indices = @transform_8, window_bounds = array<i64: 256, 32>}, {pipeline_mode = #tpu.pipeline_mode<synchronous>, transform_indices = @transform_9, window_bounds = array<i64: 1, 32>}, {pipeline_mode = #tpu.pipeline_mode<synchronous>, transform_indices = @transform_10, window_bounds = array<i64: 32, 128>}, {pipeline_mode = #tpu.pipeline_mode<synchronous>, transform_indices = @transform_11, window_bounds = array<i64: 1, 128>}, {pipeline_mode = #tpu.pipeline_mode<synchronous>, transform_indices = @transform_12, window_bounds = array<i64: 128, 32>}, {pipeline_mode = #tpu.pipeline_mode<synchronous>, transform_indices = @transform_13, window_bounds = array<i64: 1, 32>}, {pipeline_mode = #tpu.pipeline_mode<synchronous>, transform_indices = @transform_14, window_bounds = array<i64: 1, 32>}, {pipeline_mode = #tpu.pipeline_mode<synchronous>, transform_indices = @transform_15, window_bounds = array<i64: 1, 32>}, {pipeline_mode = #tpu.pipeline_mode<synchronous>, transform_indices = @transform_16, window_bounds = array<i64: 32, 128>}, {pipeline_mode = #tpu.pipeline_mode<synchronous>, transform_indices = @transform_17, window_bounds = array<i64: 1, 128>}, {pipeline_mode = #tpu.pipeline_mode<synchronous>, transform_indices = @transform_18, window_bounds = array<i64: 128, 32>}, {pipeline_mode = #tpu.pipeline_mode<synchronous>, transform_indices = @transform_19, window_bounds = array<i64: 1, 32>}, {pipeline_mode = #tpu.pipeline_mode<synchronous>, transform_indices = @transform_20, window_bounds = array<i64: 1, 32>}, {pipeline_mode = #tpu.pipeline_mode<synchronous>, transform_indices = @transform_21, window_bounds = array<i64: 1, 32>}, {transform_indices = @transform_22, window_bounds = array<i64: 2, 3, 4, 8, 8>}, {transform_indices = @transform_23, window_bounds = array<i64: 2, 2, 8, 32>}]} {
    %c0 = arith.constant 0 : index
    %c0_0 = arith.constant 0 : index
    %c0_1 = arith.constant 0 : index
    %0 = vector.load %arg1[%c0, %c0_0, %c0_1] : memref<2x8x32xf32, #tpu.memory_space<vmem>>, vector<2x8x32xf32>
    %1 = vector.shape_cast %0 : vector<2x8x32xf32> to vector<16x32xf32>
    %2 = arith.truncf %1 : vector<16x32xf32> to vector<16x32xbf16>
    %c0_2 = arith.constant 0 : index
    %c0_3 = arith.constant 0 : index
    %c0_4 = arith.constant 0 : index
    %3 = vector.load %arg2[%c0_2, %c0_3, %c0_4] : memref<2x8x32xf32, #tpu.memory_space<vmem>>, vector<2x8x32xf32>
    %4 = vector.shape_cast %3 : vector<2x8x32xf32> to vector<16x32xf32>
    %5 = arith.truncf %4 : vector<16x32xf32> to vector<16x32xbf16>
    %c0_5 = arith.constant 0 : index
    %c0_6 = arith.constant 0 : index
    %6 = vector.load %arg3[%c0_5, %c0_6] : memref<32x768xbf16, #tpu.memory_space<vmem>>, vector<32x768xbf16>
    %cst = arith.constant dense<0.000000e+00> : vector<16x768xf32>
    %7 = tpu.matmul %2, %6, %cst {dimension_numbers = #tpu.dot_dimension_numbers<[1], [0], [0], [1], [0, 0, 1, 1], [], []>} : vector<16x32xbf16>, vector<32x768xbf16>, vector<16x768xf32> -> vector<16x768xf32>
    %c0_7 = arith.constant 0 : index
    %c0_8 = arith.constant 0 : index
    %8 = vector.load %arg4[%c0_7, %c0_8] : memref<1x768xf32, #tpu.memory_space<vmem>>, vector<1x768xf32>
    %9 = vector.broadcast %8 : vector<1x768xf32> to vector<16x768xf32>
    %10 = arith.addf %7, %9 : vector<16x768xf32>
    %c0_9 = arith.constant 0 : index
    %c0_10 = arith.constant 0 : index
    %11 = vector.load %arg5[%c0_9, %c0_10] : memref<32x768xbf16, #tpu.memory_space<vmem>>, vector<32x768xbf16>
    %cst_11 = arith.constant dense<0.000000e+00> : vector<16x768xf32>
    %12 = tpu.matmul %5, %11, %cst_11 {dimension_numbers = #tpu.dot_dimension_numbers<[1], [0], [0], [1], [0, 0, 1, 1], [], []>} : vector<16x32xbf16>, vector<32x768xbf16>, vector<16x768xf32> -> vector<16x768xf32>
    %c0_12 = arith.constant 0 : index
    %c0_13 = arith.constant 0 : index
    %13 = vector.load %arg6[%c0_12, %c0_13] : memref<1x768xf32, #tpu.memory_space<vmem>>, vector<1x768xf32>
    %14 = vector.broadcast %13 : vector<1x768xf32> to vector<16x768xf32>
    %15 = arith.addf %12, %14 : vector<16x768xf32>
    %16 = vector.extract_strided_slice %10 {offsets = [0, 0], sizes = [16, 64], strides = [1, 1]} : vector<16x768xf32> to vector<16x64xf32>
    %17 = vector.shape_cast %16 : vector<16x64xf32> to vector<2x8x64xf32>
    %18 = arith.truncf %17 : vector<2x8x64xf32> to vector<2x8x64xbf16>
    %19 = vector.extract_strided_slice %10 {offsets = [0, 256], sizes = [16, 64], strides = [1, 1]} : vector<16x768xf32> to vector<16x64xf32>
    %20 = vector.shape_cast %19 : vector<16x64xf32> to vector<2x8x64xf32>
    %21 = arith.truncf %20 : vector<2x8x64xf32> to vector<2x8x64xbf16>
    %22 = vector.extract_strided_slice %10 {offsets = [0, 512], sizes = [16, 64], strides = [1, 1]} : vector<16x768xf32> to vector<16x64xf32>
    %23 = vector.shape_cast %22 : vector<16x64xf32> to vector<2x8x64xf32>
    %24 = arith.truncf %23 : vector<2x8x64xf32> to vector<2x8x64xbf16>
    %25 = vector.extract_strided_slice %15 {offsets = [0, 0], sizes = [16, 64], strides = [1, 1]} : vector<16x768xf32> to vector<16x64xf32>
    %26 = vector.shape_cast %25 : vector<16x64xf32> to vector<2x8x64xf32>
    %27 = arith.truncf %26 : vector<2x8x64xf32> to vector<2x8x64xbf16>
    %28 = vector.extract_strided_slice %15 {offsets = [0, 256], sizes = [16, 64], strides = [1, 1]} : vector<16x768xf32> to vector<16x64xf32>
    %29 = vector.shape_cast %28 : vector<16x64xf32> to vector<2x8x64xf32>
    %30 = arith.truncf %29 : vector<2x8x64xf32> to vector<2x8x64xbf16>
    %31 = vector.extract_strided_slice %15 {offsets = [0, 512], sizes = [16, 64], strides = [1, 1]} : vector<16x768xf32> to vector<16x64xf32>
    %32 = vector.shape_cast %31 : vector<16x64xf32> to vector<2x8x64xf32>
    %33 = arith.truncf %32 : vector<2x8x64xf32> to vector<2x8x64xbf16>
    "tpu.trace_start"() <{level = 10 : i32, message = "gqd,gkd->gqk"}> : () -> ()
    %cst_14 = arith.constant dense<0.000000e+00> : vector<2x8x8xf32>
    %34 = tpu.matmul %18, %21, %cst_14 {dimension_numbers = #tpu.dot_dimension_numbers<[2], [2], [1], [1], [0, 0, 0, 1, 1, 1], [0], [0]>} : vector<2x8x64xbf16>, vector<2x8x64xbf16>, vector<2x8x8xf32> -> vector<2x8x8xf32>
    %cst_15 = arith.constant dense<0.000000e+00> : vector<2x8x8xf32>
    %35 = tpu.matmul %27, %30, %cst_15 {dimension_numbers = #tpu.dot_dimension_numbers<[2], [2], [1], [1], [0, 0, 0, 1, 1, 1], [0], [0]>} : vector<2x8x64xbf16>, vector<2x8x64xbf16>, vector<2x8x8xf32> -> vector<2x8x8xf32>
    "tpu.trace_stop"() : () -> ()
    %cst_16 = arith.constant dense<0xFF800000> : vector<2x8xf32>
    %36 = vector.multi_reduction <maximumf>, %34, %cst_16 [2] : vector<2x8x8xf32> to vector<2x8xf32>
    %37 = vector.shape_cast %36 : vector<2x8xf32> to vector<2x8x1xf32>
    %38 = vector.broadcast %37 : vector<2x8x1xf32> to vector<2x8x8xf32>
    %39 = arith.subf %34, %38 : vector<2x8x8xf32>
    %40 = math.exp %39 : vector<2x8x8xf32>
    %cst_17 = arith.constant dense<0.000000e+00> : vector<2x8xf32>
    %41 = vector.multi_reduction <add>, %40, %cst_17 [2] : vector<2x8x8xf32> to vector<2x8xf32>
    %42 = vector.shape_cast %41 : vector<2x8xf32> to vector<2x8x1xf32>
    %43 = tpu.reciprocal %42 {approx = true} : vector<2x8x1xf32> -> vector<2x8x1xf32>
    %44 = vector.broadcast %43 : vector<2x8x1xf32> to vector<2x8x8xf32>
    %45 = arith.mulf %40, %44 : vector<2x8x8xf32>
    %cst_18 = arith.constant dense<0xFF800000> : vector<2x8xf32>
    %46 = vector.multi_reduction <maximumf>, %35, %cst_18 [2] : vector<2x8x8xf32> to vector<2x8xf32>
    %47 = vector.shape_cast %46 : vector<2x8xf32> to vector<2x8x1xf32>
    %48 = vector.broadcast %47 : vector<2x8x1xf32> to vector<2x8x8xf32>
    %49 = arith.subf %35, %48 : vector<2x8x8xf32>
    %50 = math.exp %49 : vector<2x8x8xf32>
    %cst_19 = arith.constant dense<0.000000e+00> : vector<2x8xf32>
    %51 = vector.multi_reduction <add>, %50, %cst_19 [2] : vector<2x8x8xf32> to vector<2x8xf32>
    %52 = vector.shape_cast %51 : vector<2x8xf32> to vector<2x8x1xf32>
    %53 = tpu.reciprocal %52 {approx = true} : vector<2x8x1xf32> -> vector<2x8x1xf32>
    %54 = vector.broadcast %53 : vector<2x8x1xf32> to vector<2x8x8xf32>
    %55 = arith.mulf %50, %54 : vector<2x8x8xf32>
    %56 = arith.addf %34, %35 : vector<2x8x8xf32>
    %cst_20 = arith.constant dense<0xFF800000> : vector<2x8xf32>
    %57 = vector.multi_reduction <maximumf>, %56, %cst_20 [2] : vector<2x8x8xf32> to vector<2x8xf32>
    %58 = vector.shape_cast %57 : vector<2x8xf32> to vector<2x8x1xf32>
    %59 = vector.broadcast %58 : vector<2x8x1xf32> to vector<2x8x8xf32>
    %60 = arith.subf %56, %59 : vector<2x8x8xf32>
    %61 = math.exp %60 : vector<2x8x8xf32>
    %cst_21 = arith.constant dense<0.000000e+00> : vector<2x8xf32>
    %62 = vector.multi_reduction <add>, %61, %cst_21 [2] : vector<2x8x8xf32> to vector<2x8xf32>
    %63 = vector.shape_cast %62 : vector<2x8xf32> to vector<2x8x1xf32>
    %64 = tpu.reciprocal %63 {approx = true} : vector<2x8x1xf32> -> vector<2x8x1xf32>
    %65 = vector.broadcast %64 : vector<2x8x1xf32> to vector<2x8x8xf32>
    %66 = arith.mulf %61, %65 : vector<2x8x8xf32>
    %67 = arith.truncf %45 : vector<2x8x8xf32> to vector<2x8x8xbf16>
    "tpu.trace_start"() <{level = 10 : i32, message = "gqk,gkd->gqd"}> : () -> ()
    %cst_22 = arith.constant dense<0.000000e+00> : vector<2x8x64xf32>
    %68 = tpu.matmul %67, %24, %cst_22 {dimension_numbers = #tpu.dot_dimension_numbers<[2], [1], [1], [2], [0, 0, 0, 1, 1, 2], [0], [0]>} : vector<2x8x8xbf16>, vector<2x8x64xbf16>, vector<2x8x64xf32> -> vector<2x8x64xf32>
    "tpu.trace_stop"() : () -> ()
    %69 = arith.truncf %68 : vector<2x8x64xf32> to vector<2x8x64xbf16>
    %70 = arith.truncf %66 : vector<2x8x8xf32> to vector<2x8x8xbf16>
    "tpu.trace_start"() <{level = 10 : i32, message = "gqk,gkd->gqd"}> : () -> ()
    %cst_23 = arith.constant dense<0.000000e+00> : vector<2x8x64xf32>
    %71 = tpu.matmul %70, %33, %cst_23 {dimension_numbers = #tpu.dot_dimension_numbers<[2], [1], [1], [2], [0, 0, 0, 1, 1, 2], [0], [0]>} : vector<2x8x8xbf16>, vector<2x8x64xbf16>, vector<2x8x64xf32> -> vector<2x8x64xf32>
    "tpu.trace_stop"() : () -> ()
    %72 = arith.truncf %71 : vector<2x8x64xf32> to vector<2x8x64xbf16>
    %73 = vector.extract_strided_slice %10 {offsets = [0, 64], sizes = [16, 64], strides = [1, 1]} : vector<16x768xf32> to vector<16x64xf32>
    %74 = vector.shape_cast %73 : vector<16x64xf32> to vector<2x8x64xf32>
    %75 = arith.truncf %74 : vector<2x8x64xf32> to vector<2x8x64xbf16>
    %76 = vector.extract_strided_slice %10 {offsets = [0, 320], sizes = [16, 64], strides = [1, 1]} : vector<16x768xf32> to vector<16x64xf32>
    %77 = vector.shape_cast %76 : vector<16x64xf32> to vector<2x8x64xf32>
    %78 = arith.truncf %77 : vector<2x8x64xf32> to vector<2x8x64xbf16>
    %79 = vector.extract_strided_slice %10 {offsets = [0, 576], sizes = [16, 64], strides = [1, 1]} : vector<16x768xf32> to vector<16x64xf32>
    %80 = vector.shape_cast %79 : vector<16x64xf32> to vector<2x8x64xf32>
    %81 = arith.truncf %80 : vector<2x8x64xf32> to vector<2x8x64xbf16>
    %82 = vector.extract_strided_slice %15 {offsets = [0, 64], sizes = [16, 64], strides = [1, 1]} : vector<16x768xf32> to vector<16x64xf32>
    %83 = vector.shape_cast %82 : vector<16x64xf32> to vector<2x8x64xf32>
    %84 = arith.truncf %83 : vector<2x8x64xf32> to vector<2x8x64xbf16>
    %85 = vector.extract_strided_slice %15 {offsets = [0, 320], sizes = [16, 64], strides = [1, 1]} : vector<16x768xf32> to vector<16x64xf32>
    %86 = vector.shape_cast %85 : vector<16x64xf32> to vector<2x8x64xf32>
    %87 = arith.truncf %86 : vector<2x8x64xf32> to vector<2x8x64xbf16>
    %88 = vector.extract_strided_slice %15 {offsets = [0, 576], sizes = [16, 64], strides = [1, 1]} : vector<16x768xf32> to vector<16x64xf32>
    %89 = vector.shape_cast %88 : vector<16x64xf32> to vector<2x8x64xf32>
    %90 = arith.truncf %89 : vector<2x8x64xf32> to vector<2x8x64xbf16>
    "tpu.trace_start"() <{level = 10 : i32, message = "gqd,gkd->gqk"}> : () -> ()
    %cst_24 = arith.constant dense<0.000000e+00> : vector<2x8x8xf32>
    %91 = tpu.matmul %75, %78, %cst_24 {dimension_numbers = #tpu.dot_dimension_numbers<[2], [2], [1], [1], [0, 0, 0, 1, 1, 1], [0], [0]>} : vector<2x8x64xbf16>, vector<2x8x64xbf16>, vector<2x8x8xf32> -> vector<2x8x8xf32>
    %cst_25 = arith.constant dense<0.000000e+00> : vector<2x8x8xf32>
    %92 = tpu.matmul %84, %87, %cst_25 {dimension_numbers = #tpu.dot_dimension_numbers<[2], [2], [1], [1], [0, 0, 0, 1, 1, 1], [0], [0]>} : vector<2x8x64xbf16>, vector<2x8x64xbf16>, vector<2x8x8xf32> -> vector<2x8x8xf32>
    "tpu.trace_stop"() : () -> ()
    %cst_26 = arith.constant dense<0xFF800000> : vector<2x8xf32>
    %93 = vector.multi_reduction <maximumf>, %91, %cst_26 [2] : vector<2x8x8xf32> to vector<2x8xf32>
    %94 = vector.shape_cast %93 : vector<2x8xf32> to vector<2x8x1xf32>
    %95 = vector.broadcast %94 : vector<2x8x1xf32> to vector<2x8x8xf32>
    %96 = arith.subf %91, %95 : vector<2x8x8xf32>
    %97 = math.exp %96 : vector<2x8x8xf32>
    %cst_27 = arith.constant dense<0.000000e+00> : vector<2x8xf32>
    %98 = vector.multi_reduction <add>, %97, %cst_27 [2] : vector<2x8x8xf32> to vector<2x8xf32>
    %99 = vector.shape_cast %98 : vector<2x8xf32> to vector<2x8x1xf32>
    %100 = tpu.reciprocal %99 {approx = true} : vector<2x8x1xf32> -> vector<2x8x1xf32>
    %101 = vector.broadcast %100 : vector<2x8x1xf32> to vector<2x8x8xf32>
    %102 = arith.mulf %97, %101 : vector<2x8x8xf32>
    %cst_28 = arith.constant dense<0xFF800000> : vector<2x8xf32>
    %103 = vector.multi_reduction <maximumf>, %92, %cst_28 [2] : vector<2x8x8xf32> to vector<2x8xf32>
    %104 = vector.shape_cast %103 : vector<2x8xf32> to vector<2x8x1xf32>
    %105 = vector.broadcast %104 : vector<2x8x1xf32> to vector<2x8x8xf32>
    %106 = arith.subf %92, %105 : vector<2x8x8xf32>
    %107 = math.exp %106 : vector<2x8x8xf32>
    %cst_29 = arith.constant dense<0.000000e+00> : vector<2x8xf32>
    %108 = vector.multi_reduction <add>, %107, %cst_29 [2] : vector<2x8x8xf32> to vector<2x8xf32>
    %109 = vector.shape_cast %108 : vector<2x8xf32> to vector<2x8x1xf32>
    %110 = tpu.reciprocal %109 {approx = true} : vector<2x8x1xf32> -> vector<2x8x1xf32>
    %111 = vector.broadcast %110 : vector<2x8x1xf32> to vector<2x8x8xf32>
    %112 = arith.mulf %107, %111 : vector<2x8x8xf32>
    %113 = arith.addf %91, %92 : vector<2x8x8xf32>
    %cst_30 = arith.constant dense<0xFF800000> : vector<2x8xf32>
    %114 = vector.multi_reduction <maximumf>, %113, %cst_30 [2] : vector<2x8x8xf32> to vector<2x8xf32>
    %115 = vector.shape_cast %114 : vector<2x8xf32> to vector<2x8x1xf32>
    %116 = vector.broadcast %115 : vector<2x8x1xf32> to vector<2x8x8xf32>
    %117 = arith.subf %113, %116 : vector<2x8x8xf32>
    %118 = math.exp %117 : vector<2x8x8xf32>
    %cst_31 = arith.constant dense<0.000000e+00> : vector<2x8xf32>
    %119 = vector.multi_reduction <add>, %118, %cst_31 [2] : vector<2x8x8xf32> to vector<2x8xf32>
    %120 = vector.shape_cast %119 : vector<2x8xf32> to vector<2x8x1xf32>
    %121 = tpu.reciprocal %120 {approx = true} : vector<2x8x1xf32> -> vector<2x8x1xf32>
    %122 = vector.broadcast %121 : vector<2x8x1xf32> to vector<2x8x8xf32>
    %123 = arith.mulf %118, %122 : vector<2x8x8xf32>
    %124 = arith.truncf %102 : vector<2x8x8xf32> to vector<2x8x8xbf16>
    "tpu.trace_start"() <{level = 10 : i32, message = "gqk,gkd->gqd"}> : () -> ()
    %cst_32 = arith.constant dense<0.000000e+00> : vector<2x8x64xf32>
    %125 = tpu.matmul %124, %81, %cst_32 {dimension_numbers = #tpu.dot_dimension_numbers<[2], [1], [1], [2], [0, 0, 0, 1, 1, 2], [0], [0]>} : vector<2x8x8xbf16>, vector<2x8x64xbf16>, vector<2x8x64xf32> -> vector<2x8x64xf32>
    "tpu.trace_stop"() : () -> ()
    %126 = arith.truncf %125 : vector<2x8x64xf32> to vector<2x8x64xbf16>
    %127 = arith.truncf %123 : vector<2x8x8xf32> to vector<2x8x8xbf16>
    "tpu.trace_start"() <{level = 10 : i32, message = "gqk,gkd->gqd"}> : () -> ()
    %cst_33 = arith.constant dense<0.000000e+00> : vector<2x8x64xf32>
    %128 = tpu.matmul %127, %90, %cst_33 {dimension_numbers = #tpu.dot_dimension_numbers<[2], [1], [1], [2], [0, 0, 0, 1, 1, 2], [0], [0]>} : vector<2x8x8xbf16>, vector<2x8x64xbf16>, vector<2x8x64xf32> -> vector<2x8x64xf32>
    "tpu.trace_stop"() : () -> ()
    %129 = arith.truncf %128 : vector<2x8x64xf32> to vector<2x8x64xbf16>
    %130 = vector.extract_strided_slice %10 {offsets = [0, 128], sizes = [16, 64], strides = [1, 1]} : vector<16x768xf32> to vector<16x64xf32>
    %131 = vector.shape_cast %130 : vector<16x64xf32> to vector<2x8x64xf32>
    %132 = arith.truncf %131 : vector<2x8x64xf32> to vector<2x8x64xbf16>
    %133 = vector.extract_strided_slice %10 {offsets = [0, 384], sizes = [16, 64], strides = [1, 1]} : vector<16x768xf32> to vector<16x64xf32>
    %134 = vector.shape_cast %133 : vector<16x64xf32> to vector<2x8x64xf32>
    %135 = arith.truncf %134 : vector<2x8x64xf32> to vector<2x8x64xbf16>
    %136 = vector.extract_strided_slice %10 {offsets = [0, 640], sizes = [16, 64], strides = [1, 1]} : vector<16x768xf32> to vector<16x64xf32>
    %137 = vector.shape_cast %136 : vector<16x64xf32> to vector<2x8x64xf32>
    %138 = arith.truncf %137 : vector<2x8x64xf32> to vector<2x8x64xbf16>
    %139 = vector.extract_strided_slice %15 {offsets = [0, 128], sizes = [16, 64], strides = [1, 1]} : vector<16x768xf32> to vector<16x64xf32>
    %140 = vector.shape_cast %139 : vector<16x64xf32> to vector<2x8x64xf32>
    %141 = arith.truncf %140 : vector<2x8x64xf32> to vector<2x8x64xbf16>
    %142 = vector.extract_strided_slice %15 {offsets = [0, 384], sizes = [16, 64], strides = [1, 1]} : vector<16x768xf32> to vector<16x64xf32>
    %143 = vector.shape_cast %142 : vector<16x64xf32> to vector<2x8x64xf32>
    %144 = arith.truncf %143 : vector<2x8x64xf32> to vector<2x8x64xbf16>
    %145 = vector.extract_strided_slice %15 {offsets = [0, 640], sizes = [16, 64], strides = [1, 1]} : vector<16x768xf32> to vector<16x64xf32>
    %146 = vector.shape_cast %145 : vector<16x64xf32> to vector<2x8x64xf32>
    %147 = arith.truncf %146 : vector<2x8x64xf32> to vector<2x8x64xbf16>
    "tpu.trace_start"() <{level = 10 : i32, message = "gqd,gkd->gqk"}> : () -> ()
    %cst_34 = arith.constant dense<0.000000e+00> : vector<2x8x8xf32>
    %148 = tpu.matmul %132, %135, %cst_34 {dimension_numbers = #tpu.dot_dimension_numbers<[2], [2], [1], [1], [0, 0, 0, 1, 1, 1], [0], [0]>} : vector<2x8x64xbf16>, vector<2x8x64xbf16>, vector<2x8x8xf32> -> vector<2x8x8xf32>
    %cst_35 = arith.constant dense<0.000000e+00> : vector<2x8x8xf32>
    %149 = tpu.matmul %141, %144, %cst_35 {dimension_numbers = #tpu.dot_dimension_numbers<[2], [2], [1], [1], [0, 0, 0, 1, 1, 1], [0], [0]>} : vector<2x8x64xbf16>, vector<2x8x64xbf16>, vector<2x8x8xf32> -> vector<2x8x8xf32>
    "tpu.trace_stop"() : () -> ()
    %cst_36 = arith.constant dense<0xFF800000> : vector<2x8xf32>
    %150 = vector.multi_reduction <maximumf>, %148, %cst_36 [2] : vector<2x8x8xf32> to vector<2x8xf32>
    %151 = vector.shape_cast %150 : vector<2x8xf32> to vector<2x8x1xf32>
    %152 = vector.broadcast %151 : vector<2x8x1xf32> to vector<2x8x8xf32>
    %153 = arith.subf %148, %152 : vector<2x8x8xf32>
    %154 = math.exp %153 : vector<2x8x8xf32>
    %cst_37 = arith.constant dense<0.000000e+00> : vector<2x8xf32>
    %155 = vector.multi_reduction <add>, %154, %cst_37 [2] : vector<2x8x8xf32> to vector<2x8xf32>
    %156 = vector.shape_cast %155 : vector<2x8xf32> to vector<2x8x1xf32>
    %157 = tpu.reciprocal %156 {approx = true} : vector<2x8x1xf32> -> vector<2x8x1xf32>
    %158 = vector.broadcast %157 : vector<2x8x1xf32> to vector<2x8x8xf32>
    %159 = arith.mulf %154, %158 : vector<2x8x8xf32>
    %cst_38 = arith.constant dense<0xFF800000> : vector<2x8xf32>
    %160 = vector.multi_reduction <maximumf>, %149, %cst_38 [2] : vector<2x8x8xf32> to vector<2x8xf32>
    %161 = vector.shape_cast %160 : vector<2x8xf32> to vector<2x8x1xf32>
    %162 = vector.broadcast %161 : vector<2x8x1xf32> to vector<2x8x8xf32>
    %163 = arith.subf %149, %162 : vector<2x8x8xf32>
    %164 = math.exp %163 : vector<2x8x8xf32>
    %cst_39 = arith.constant dense<0.000000e+00> : vector<2x8xf32>
    %165 = vector.multi_reduction <add>, %164, %cst_39 [2] : vector<2x8x8xf32> to vector<2x8xf32>
    %166 = vector.shape_cast %165 : vector<2x8xf32> to vector<2x8x1xf32>
    %167 = tpu.reciprocal %166 {approx = true} : vector<2x8x1xf32> -> vector<2x8x1xf32>
    %168 = vector.broadcast %167 : vector<2x8x1xf32> to vector<2x8x8xf32>
    %169 = arith.mulf %164, %168 : vector<2x8x8xf32>
    %170 = arith.addf %148, %149 : vector<2x8x8xf32>
    %cst_40 = arith.constant dense<0xFF800000> : vector<2x8xf32>
    %171 = vector.multi_reduction <maximumf>, %170, %cst_40 [2] : vector<2x8x8xf32> to vector<2x8xf32>
    %172 = vector.shape_cast %171 : vector<2x8xf32> to vector<2x8x1xf32>
    %173 = vector.broadcast %172 : vector<2x8x1xf32> to vector<2x8x8xf32>
    %174 = arith.subf %170, %173 : vector<2x8x8xf32>
    %175 = math.exp %174 : vector<2x8x8xf32>
    %cst_41 = arith.constant dense<0.000000e+00> : vector<2x8xf32>
    %176 = vector.multi_reduction <add>, %175, %cst_41 [2] : vector<2x8x8xf32> to vector<2x8xf32>
    %177 = vector.shape_cast %176 : vector<2x8xf32> to vector<2x8x1xf32>
    %178 = tpu.reciprocal %177 {approx = true} : vector<2x8x1xf32> -> vector<2x8x1xf32>
    %179 = vector.broadcast %178 : vector<2x8x1xf32> to vector<2x8x8xf32>
    %180 = arith.mulf %175, %179 : vector<2x8x8xf32>
    %181 = arith.truncf %159 : vector<2x8x8xf32> to vector<2x8x8xbf16>
    "tpu.trace_start"() <{level = 10 : i32, message = "gqk,gkd->gqd"}> : () -> ()
    %cst_42 = arith.constant dense<0.000000e+00> : vector<2x8x64xf32>
    %182 = tpu.matmul %181, %138, %cst_42 {dimension_numbers = #tpu.dot_dimension_numbers<[2], [1], [1], [2], [0, 0, 0, 1, 1, 2], [0], [0]>} : vector<2x8x8xbf16>, vector<2x8x64xbf16>, vector<2x8x64xf32> -> vector<2x8x64xf32>
    "tpu.trace_stop"() : () -> ()
    %183 = arith.truncf %182 : vector<2x8x64xf32> to vector<2x8x64xbf16>
    %184 = arith.truncf %180 : vector<2x8x8xf32> to vector<2x8x8xbf16>
    "tpu.trace_start"() <{level = 10 : i32, message = "gqk,gkd->gqd"}> : () -> ()
    %cst_43 = arith.constant dense<0.000000e+00> : vector<2x8x64xf32>
    %185 = tpu.matmul %184, %147, %cst_43 {dimension_numbers = #tpu.dot_dimension_numbers<[2], [1], [1], [2], [0, 0, 0, 1, 1, 2], [0], [0]>} : vector<2x8x8xbf16>, vector<2x8x64xbf16>, vector<2x8x64xf32> -> vector<2x8x64xf32>
    "tpu.trace_stop"() : () -> ()
    %186 = arith.truncf %185 : vector<2x8x64xf32> to vector<2x8x64xbf16>
    %187 = vector.extract_strided_slice %10 {offsets = [0, 192], sizes = [16, 64], strides = [1, 1]} : vector<16x768xf32> to vector<16x64xf32>
    %188 = vector.shape_cast %187 : vector<16x64xf32> to vector<2x8x64xf32>
    %189 = arith.truncf %188 : vector<2x8x64xf32> to vector<2x8x64xbf16>
    %190 = vector.extract_strided_slice %10 {offsets = [0, 448], sizes = [16, 64], strides = [1, 1]} : vector<16x768xf32> to vector<16x64xf32>
    %191 = vector.shape_cast %190 : vector<16x64xf32> to vector<2x8x64xf32>
    %192 = arith.truncf %191 : vector<2x8x64xf32> to vector<2x8x64xbf16>
    %193 = vector.extract_strided_slice %10 {offsets = [0, 704], sizes = [16, 64], strides = [1, 1]} : vector<16x768xf32> to vector<16x64xf32>
    %194 = vector.shape_cast %193 : vector<16x64xf32> to vector<2x8x64xf32>
    %195 = arith.truncf %194 : vector<2x8x64xf32> to vector<2x8x64xbf16>
    %196 = vector.extract_strided_slice %15 {offsets = [0, 192], sizes = [16, 64], strides = [1, 1]} : vector<16x768xf32> to vector<16x64xf32>
    %197 = vector.shape_cast %196 : vector<16x64xf32> to vector<2x8x64xf32>
    %198 = arith.truncf %197 : vector<2x8x64xf32> to vector<2x8x64xbf16>
    %199 = vector.extract_strided_slice %15 {offsets = [0, 448], sizes = [16, 64], strides = [1, 1]} : vector<16x768xf32> to vector<16x64xf32>
    %200 = vector.shape_cast %199 : vector<16x64xf32> to vector<2x8x64xf32>
    %201 = arith.truncf %200 : vector<2x8x64xf32> to vector<2x8x64xbf16>
    %202 = vector.extract_strided_slice %15 {offsets = [0, 704], sizes = [16, 64], strides = [1, 1]} : vector<16x768xf32> to vector<16x64xf32>
    %203 = vector.shape_cast %202 : vector<16x64xf32> to vector<2x8x64xf32>
    %204 = arith.truncf %203 : vector<2x8x64xf32> to vector<2x8x64xbf16>
    "tpu.trace_start"() <{level = 10 : i32, message = "gqd,gkd->gqk"}> : () -> ()
    %cst_44 = arith.constant dense<0.000000e+00> : vector<2x8x8xf32>
    %205 = tpu.matmul %189, %192, %cst_44 {dimension_numbers = #tpu.dot_dimension_numbers<[2], [2], [1], [1], [0, 0, 0, 1, 1, 1], [0], [0]>} : vector<2x8x64xbf16>, vector<2x8x64xbf16>, vector<2x8x8xf32> -> vector<2x8x8xf32>
    %cst_45 = arith.constant dense<0.000000e+00> : vector<2x8x8xf32>
    %206 = tpu.matmul %198, %201, %cst_45 {dimension_numbers = #tpu.dot_dimension_numbers<[2], [2], [1], [1], [0, 0, 0, 1, 1, 1], [0], [0]>} : vector<2x8x64xbf16>, vector<2x8x64xbf16>, vector<2x8x8xf32> -> vector<2x8x8xf32>
    "tpu.trace_stop"() : () -> ()
    %cst_46 = arith.constant dense<0xFF800000> : vector<2x8xf32>
    %207 = vector.multi_reduction <maximumf>, %205, %cst_46 [2] : vector<2x8x8xf32> to vector<2x8xf32>
    %208 = vector.shape_cast %207 : vector<2x8xf32> to vector<2x8x1xf32>
    %209 = vector.broadcast %208 : vector<2x8x1xf32> to vector<2x8x8xf32>
    %210 = arith.subf %205, %209 : vector<2x8x8xf32>
    %211 = math.exp %210 : vector<2x8x8xf32>
    %cst_47 = arith.constant dense<0.000000e+00> : vector<2x8xf32>
    %212 = vector.multi_reduction <add>, %211, %cst_47 [2] : vector<2x8x8xf32> to vector<2x8xf32>
    %213 = vector.shape_cast %212 : vector<2x8xf32> to vector<2x8x1xf32>
    %214 = tpu.reciprocal %213 {approx = true} : vector<2x8x1xf32> -> vector<2x8x1xf32>
    %215 = vector.broadcast %214 : vector<2x8x1xf32> to vector<2x8x8xf32>
    %216 = arith.mulf %211, %215 : vector<2x8x8xf32>
    %cst_48 = arith.constant dense<0xFF800000> : vector<2x8xf32>
    %217 = vector.multi_reduction <maximumf>, %206, %cst_48 [2] : vector<2x8x8xf32> to vector<2x8xf32>
    %218 = vector.shape_cast %217 : vector<2x8xf32> to vector<2x8x1xf32>
    %219 = vector.broadcast %218 : vector<2x8x1xf32> to vector<2x8x8xf32>
    %220 = arith.subf %206, %219 : vector<2x8x8xf32>
    %221 = math.exp %220 : vector<2x8x8xf32>
    %cst_49 = arith.constant dense<0.000000e+00> : vector<2x8xf32>
    %222 = vector.multi_reduction <add>, %221, %cst_49 [2] : vector<2x8x8xf32> to vector<2x8xf32>
    %223 = vector.shape_cast %222 : vector<2x8xf32> to vector<2x8x1xf32>
    %224 = tpu.reciprocal %223 {approx = true} : vector<2x8x1xf32> -> vector<2x8x1xf32>
    %225 = vector.broadcast %224 : vector<2x8x1xf32> to vector<2x8x8xf32>
    %226 = arith.mulf %221, %225 : vector<2x8x8xf32>
    %227 = arith.addf %205, %206 : vector<2x8x8xf32>
    %cst_50 = arith.constant dense<0xFF800000> : vector<2x8xf32>
    %228 = vector.multi_reduction <maximumf>, %227, %cst_50 [2] : vector<2x8x8xf32> to vector<2x8xf32>
    %229 = vector.shape_cast %228 : vector<2x8xf32> to vector<2x8x1xf32>
    %230 = vector.broadcast %229 : vector<2x8x1xf32> to vector<2x8x8xf32>
    %231 = arith.subf %227, %230 : vector<2x8x8xf32>
    %232 = math.exp %231 : vector<2x8x8xf32>
    %cst_51 = arith.constant dense<0.000000e+00> : vector<2x8xf32>
    %233 = vector.multi_reduction <add>, %232, %cst_51 [2] : vector<2x8x8xf32> to vector<2x8xf32>
    %234 = vector.shape_cast %233 : vector<2x8xf32> to vector<2x8x1xf32>
    %235 = tpu.reciprocal %234 {approx = true} : vector<2x8x1xf32> -> vector<2x8x1xf32>
    %236 = vector.broadcast %235 : vector<2x8x1xf32> to vector<2x8x8xf32>
    %237 = arith.mulf %232, %236 : vector<2x8x8xf32>
    %238 = arith.truncf %216 : vector<2x8x8xf32> to vector<2x8x8xbf16>
    "tpu.trace_start"() <{level = 10 : i32, message = "gqk,gkd->gqd"}> : () -> ()
    %cst_52 = arith.constant dense<0.000000e+00> : vector<2x8x64xf32>
    %239 = tpu.matmul %238, %195, %cst_52 {dimension_numbers = #tpu.dot_dimension_numbers<[2], [1], [1], [2], [0, 0, 0, 1, 1, 2], [0], [0]>} : vector<2x8x8xbf16>, vector<2x8x64xbf16>, vector<2x8x64xf32> -> vector<2x8x64xf32>
    "tpu.trace_stop"() : () -> ()
    %240 = arith.truncf %239 : vector<2x8x64xf32> to vector<2x8x64xbf16>
    %241 = arith.truncf %237 : vector<2x8x8xf32> to vector<2x8x8xbf16>
    "tpu.trace_start"() <{level = 10 : i32, message = "gqk,gkd->gqd"}> : () -> ()
    %cst_53 = arith.constant dense<0.000000e+00> : vector<2x8x64xf32>
    %242 = tpu.matmul %241, %204, %cst_53 {dimension_numbers = #tpu.dot_dimension_numbers<[2], [1], [1], [2], [0, 0, 0, 1, 1, 2], [0], [0]>} : vector<2x8x8xbf16>, vector<2x8x64xbf16>, vector<2x8x64xf32> -> vector<2x8x64xf32>
    "tpu.trace_stop"() : () -> ()
    %243 = arith.truncf %242 : vector<2x8x64xf32> to vector<2x8x64xbf16>
    %244 = vector.shape_cast %45 : vector<2x8x8xf32> to vector<2x1x8x8xf32>
    %245 = vector.shape_cast %102 : vector<2x8x8xf32> to vector<2x1x8x8xf32>
    %246 = vector.shape_cast %159 : vector<2x8x8xf32> to vector<2x1x8x8xf32>
    %247 = vector.shape_cast %216 : vector<2x8x8xf32> to vector<2x1x8x8xf32>
    %248 = tpu.concatenate %244, %245, %246, %247 in 1 : vector<2x1x8x8xf32>, vector<2x1x8x8xf32>, vector<2x1x8x8xf32>, vector<2x1x8x8xf32> -> vector<2x4x8x8xf32>
    %249 = vector.shape_cast %55 : vector<2x8x8xf32> to vector<2x1x8x8xf32>
    %250 = vector.shape_cast %112 : vector<2x8x8xf32> to vector<2x1x8x8xf32>
    %251 = vector.shape_cast %169 : vector<2x8x8xf32> to vector<2x1x8x8xf32>
    %252 = vector.shape_cast %226 : vector<2x8x8xf32> to vector<2x1x8x8xf32>
    %253 = tpu.concatenate %249, %250, %251, %252 in 1 : vector<2x1x8x8xf32>, vector<2x1x8x8xf32>, vector<2x1x8x8xf32>, vector<2x1x8x8xf32> -> vector<2x4x8x8xf32>
    %254 = vector.shape_cast %66 : vector<2x8x8xf32> to vector<2x1x8x8xf32>
    %255 = vector.shape_cast %123 : vector<2x8x8xf32> to vector<2x1x8x8xf32>
    %256 = vector.shape_cast %180 : vector<2x8x8xf32> to vector<2x1x8x8xf32>
    %257 = vector.shape_cast %237 : vector<2x8x8xf32> to vector<2x1x8x8xf32>
    %258 = tpu.concatenate %254, %255, %256, %257 in 1 : vector<2x1x8x8xf32>, vector<2x1x8x8xf32>, vector<2x1x8x8xf32>, vector<2x1x8x8xf32> -> vector<2x4x8x8xf32>
    %259 = vector.shape_cast %248 : vector<2x4x8x8xf32> to vector<2x1x4x8x8xf32>
    %260 = vector.shape_cast %253 : vector<2x4x8x8xf32> to vector<2x1x4x8x8xf32>
    %261 = vector.shape_cast %258 : vector<2x4x8x8xf32> to vector<2x1x4x8x8xf32>
    %262 = tpu.concatenate %259, %260, %261 in 1 : vector<2x1x4x8x8xf32>, vector<2x1x4x8x8xf32>, vector<2x1x4x8x8xf32> -> vector<2x3x4x8x8xf32>
    %c0_54 = arith.constant 0 : index
    %c0_55 = arith.constant 0 : index
    %c0_56 = arith.constant 0 : index
    %c0_57 = arith.constant 0 : index
    %c0_58 = arith.constant 0 : index
    %263 = vector.load %arg23[%c0_54, %c0_55, %c0_56, %c0_57, %c0_58] : memref<2x3x4x8x8xf32, #tpu.memory_space<vmem>>, vector<2x3x4x8x8xf32>
    tpu.vector_store %arg23[%c0_54, %c0_55, %c0_56, %c0_57, %c0_58], %262 {strides = array<i32>} : memref<2x3x4x8x8xf32, #tpu.memory_space<vmem>>, vector<2x3x4x8x8xf32>,
    %264 = tpu.concatenate %69, %126, %183, %240 in 2 : vector<2x8x64xbf16>, vector<2x8x64xbf16>, vector<2x8x64xbf16>, vector<2x8x64xbf16> -> vector<2x8x256xbf16>
    %265 = vector.shape_cast %264 : vector<2x8x256xbf16> to vector<16x256xbf16>
    %266 = tpu.concatenate %72, %129, %186, %243 in 2 : vector<2x8x64xbf16>, vector<2x8x64xbf16>, vector<2x8x64xbf16>, vector<2x8x64xbf16> -> vector<2x8x256xbf16>
    %267 = vector.shape_cast %266 : vector<2x8x256xbf16> to vector<16x256xbf16>
    %c0_59 = arith.constant 0 : index
    %c0_60 = arith.constant 0 : index
    %268 = vector.load %arg7[%c0_59, %c0_60] : memref<256x32xbf16, #tpu.memory_space<vmem>>, vector<256x32xbf16>
    %cst_61 = arith.constant dense<0.000000e+00> : vector<16x32xf32>
    %269 = tpu.matmul %265, %268, %cst_61 {dimension_numbers = #tpu.dot_dimension_numbers<[1], [0], [0], [1], [0, 0, 1, 1], [], []>} : vector<16x256xbf16>, vector<256x32xbf16>, vector<16x32xf32> -> vector<16x32xf32>
    %c0_62 = arith.constant 0 : index
    %c0_63 = arith.constant 0 : index
    %270 = vector.load %arg8[%c0_62, %c0_63] : memref<1x32xf32, #tpu.memory_space<vmem>>, vector<1x32xf32>
    %271 = vector.broadcast %270 : vector<1x32xf32> to vector<16x32xf32>
    %272 = arith.addf %269, %271 : vector<16x32xf32>
    %c0_64 = arith.constant 0 : index
    %c0_65 = arith.constant 0 : index
    %273 = vector.load %arg9[%c0_64, %c0_65] : memref<256x32xbf16, #tpu.memory_space<vmem>>, vector<256x32xbf16>
    %cst_66 = arith.constant dense<0.000000e+00> : vector<16x32xf32>
    %274 = tpu.matmul %267, %273, %cst_66 {dimension_numbers = #tpu.dot_dimension_numbers<[1], [0], [0], [1], [0, 0, 1, 1], [], []>} : vector<16x256xbf16>, vector<256x32xbf16>, vector<16x32xf32> -> vector<16x32xf32>
    %c0_67 = arith.constant 0 : index
    %c0_68 = arith.constant 0 : index
    %275 = vector.load %arg10[%c0_67, %c0_68] : memref<1x32xf32, #tpu.memory_space<vmem>>, vector<1x32xf32>
    %276 = vector.broadcast %275 : vector<1x32xf32> to vector<16x32xf32>
    %277 = arith.addf %274, %276 : vector<16x32xf32>
    %c0_69 = arith.constant 0 : index
    %c0_70 = arith.constant 0 : index
    %278 = vector.load %arg11[%c0_69, %c0_70] : memref<32x128xbf16, #tpu.memory_space<vmem>>, vector<32x128xbf16>
    %c0_71 = arith.constant 0 : index
    %c0_72 = arith.constant 0 : index
    %279 = vector.load %arg12[%c0_71, %c0_72] : memref<1x128xf32, #tpu.memory_space<vmem>>, vector<1x128xf32>
    %c0_73 = arith.constant 0 : index
    %c0_74 = arith.constant 0 : index
    %280 = vector.load %arg13[%c0_73, %c0_74] : memref<128x32xbf16, #tpu.memory_space<vmem>>, vector<128x32xbf16>
    %c0_75 = arith.constant 0 : index
    %c0_76 = arith.constant 0 : index
    %281 = vector.load %arg14[%c0_75, %c0_76] : memref<1x32xf32, #tpu.memory_space<vmem>>, vector<1x32xf32>
    %c0_77 = arith.constant 0 : index
    %c0_78 = arith.constant 0 : index
    %282 = vector.load %arg15[%c0_77, %c0_78] : memref<1x32xf32, #tpu.memory_space<vmem>>, vector<1x32xf32>
    %c0_79 = arith.constant 0 : index
    %c0_80 = arith.constant 0 : index
    %283 = vector.load %arg16[%c0_79, %c0_80] : memref<1x32xf32, #tpu.memory_space<vmem>>, vector<1x32xf32>
    %284 = arith.truncf %272 : vector<16x32xf32> to vector<16x32xbf16>
    %cst_81 = arith.constant dense<0.000000e+00> : vector<16x128xf32>
    %285 = tpu.matmul %284, %278, %cst_81 {dimension_numbers = #tpu.dot_dimension_numbers<[1], [0], [0], [1], [0, 0, 1, 1], [], []>} : vector<16x32xbf16>, vector<32x128xbf16>, vector<16x128xf32> -> vector<16x128xf32>
    %286 = vector.broadcast %279 : vector<1x128xf32> to vector<16x128xf32>
    %287 = arith.addf %285, %286 : vector<16x128xf32>
    %cst_82 = arith.constant 0.000000e+00 : f32
    %288 = vector.broadcast %cst_82 : f32 to vector<16x128xf32>
    %289 = arith.maximumf %287, %288 : vector<16x128xf32>
    %290 = arith.truncf %289 : vector<16x128xf32> to vector<16x128xbf16>
    %cst_83 = arith.constant dense<0.000000e+00> : vector<16x32xf32>
    %291 = tpu.matmul %290, %280, %cst_83 {dimension_numbers = #tpu.dot_dimension_numbers<[1], [0], [0], [1], [0, 0, 1, 1], [], []>} : vector<16x128xbf16>, vector<128x32xbf16>, vector<16x32xf32> -> vector<16x32xf32>
    %292 = vector.broadcast %281 : vector<1x32xf32> to vector<16x32xf32>
    %293 = arith.addf %291, %292 : vector<16x32xf32>
    %294 = arith.addf %272, %293 : vector<16x32xf32>
    %cst_84 = arith.constant dense<0.000000e+00> : vector<16xf32>
    %295 = vector.multi_reduction <add>, %294, %cst_84 [1] : vector<16x32xf32> to vector<16xf32>
    %296 = vector.shape_cast %295 : vector<16xf32> to vector<16x1xf32>
    %cst_85 = arith.constant 3.200000e+01 : f32
    %297 = vector.broadcast %cst_85 : f32 to vector<16x1xf32>
    %298 = arith.divf %296, %297 : vector<16x1xf32>
    %299 = vector.broadcast %298 : vector<16x1xf32> to vector<16x32xf32>
    %300 = arith.subf %294, %299 : vector<16x32xf32>
    %301 = vector.broadcast %298 : vector<16x1xf32> to vector<16x32xf32>
    %302 = arith.subf %294, %301 : vector<16x32xf32>
    %303 = arith.mulf %300, %302 : vector<16x32xf32>
    %cst_86 = arith.constant dense<0.000000e+00> : vector<16xf32>
    %304 = vector.multi_reduction <add>, %303, %cst_86 [1] : vector<16x32xf32> to vector<16xf32>
    %305 = vector.shape_cast %304 : vector<16xf32> to vector<16x1xf32>
    %cst_87 = arith.constant 3.200000e+01 : f32
    %306 = vector.broadcast %cst_87 : f32 to vector<16x1xf32>
    %307 = arith.divf %305, %306 : vector<16x1xf32>
    %308 = vector.broadcast %298 : vector<16x1xf32> to vector<16x32xf32>
    %309 = arith.subf %294, %308 : vector<16x32xf32>
    %cst_88 = arith.constant 9.99999974E-6 : f32
    %310 = vector.broadcast %cst_88 : f32 to vector<16x1xf32>
    %311 = arith.addf %307, %310 : vector<16x1xf32>
    %312 = math.rsqrt %311 : vector<16x1xf32>
    %313 = vector.broadcast %312 : vector<16x1xf32> to vector<16x32xf32>
    %314 = arith.mulf %309, %313 : vector<16x32xf32>
    %315 = vector.broadcast %282 : vector<1x32xf32> to vector<16x32xf32>
    %316 = arith.mulf %314, %315 : vector<16x32xf32>
    %317 = vector.broadcast %283 : vector<1x32xf32> to vector<16x32xf32>
    %318 = arith.addf %316, %317 : vector<16x32xf32>
    %319 = vector.shape_cast %318 : vector<16x32xf32> to vector<2x8x32xf32>
    %c0_89 = arith.constant 0 : index
    %c0_90 = arith.constant 0 : index
    %c0_91 = arith.constant 0 : index
    %c0_92 = arith.constant 0 : index
    %320 = vector.load %arg24[%c0_89, %c0_90, %c0_91, %c0_92] : memref<2x2x8x32xf32, #tpu.memory_space<vmem>>, vector<1x2x8x32xf32>
    %321 = vector.shape_cast %320 : vector<1x2x8x32xf32> to vector<2x8x32xf32>
    %322 = vector.shape_cast %319 : vector<2x8x32xf32> to vector<1x2x8x32xf32>
    tpu.vector_store %arg24[%c0_89, %c0_90, %c0_91, %c0_92], %322 {strides = array<i32>} : memref<2x2x8x32xf32, #tpu.memory_space<vmem>>, vector<1x2x8x32xf32>,
    %c0_93 = arith.constant 0 : index
    %c0_94 = arith.constant 0 : index
    %323 = vector.load %arg17[%c0_93, %c0_94] : memref<32x128xbf16, #tpu.memory_space<vmem>>, vector<32x128xbf16>
    %c0_95 = arith.constant 0 : index
    %c0_96 = arith.constant 0 : index
    %324 = vector.load %arg18[%c0_95, %c0_96] : memref<1x128xf32, #tpu.memory_space<vmem>>, vector<1x128xf32>
    %c0_97 = arith.constant 0 : index
    %c0_98 = arith.constant 0 : index
    %325 = vector.load %arg19[%c0_97, %c0_98] : memref<128x32xbf16, #tpu.memory_space<vmem>>, vector<128x32xbf16>
    %c0_99 = arith.constant 0 : index
    %c0_100 = arith.constant 0 : index
    %326 = vector.load %arg20[%c0_99, %c0_100] : memref<1x32xf32, #tpu.memory_space<vmem>>, vector<1x32xf32>
    %c0_101 = arith.constant 0 : index
    %c0_102 = arith.constant 0 : index
    %327 = vector.load %arg21[%c0_101, %c0_102] : memref<1x32xf32, #tpu.memory_space<vmem>>, vector<1x32xf32>
    %c0_103 = arith.constant 0 : index
    %c0_104 = arith.constant 0 : index
    %328 = vector.load %arg22[%c0_103, %c0_104] : memref<1x32xf32, #tpu.memory_space<vmem>>, vector<1x32xf32>
    %329 = arith.truncf %277 : vector<16x32xf32> to vector<16x32xbf16>
    %cst_105 = arith.constant dense<0.000000e+00> : vector<16x128xf32>
    %330 = tpu.matmul %329, %323, %cst_105 {dimension_numbers = #tpu.dot_dimension_numbers<[1], [0], [0], [1], [0, 0, 1, 1], [], []>} : vector<16x32xbf16>, vector<32x128xbf16>, vector<16x128xf32> -> vector<16x128xf32>
    %331 = vector.broadcast %324 : vector<1x128xf32> to vector<16x128xf32>
    %332 = arith.addf %330, %331 : vector<16x128xf32>
    %cst_106 = arith.constant 0.000000e+00 : f32
    %333 = vector.broadcast %cst_106 : f32 to vector<16x128xf32>
    %334 = arith.maximumf %332, %333 : vector<16x128xf32>
    %335 = arith.truncf %334 : vector<16x128xf32> to vector<16x128xbf16>
    %cst_107 = arith.constant dense<0.000000e+00> : vector<16x32xf32>
    %336 = tpu.matmul %335, %325, %cst_107 {dimension_numbers = #tpu.dot_dimension_numbers<[1], [0], [0], [1], [0, 0, 1, 1], [], []>} : vector<16x128xbf16>, vector<128x32xbf16>, vector<16x32xf32> -> vector<16x32xf32>
    %337 = vector.broadcast %326 : vector<1x32xf32> to vector<16x32xf32>
    %338 = arith.addf %336, %337 : vector<16x32xf32>
    %339 = arith.addf %277, %338 : vector<16x32xf32>
    %cst_108 = arith.constant dense<0.000000e+00> : vector<16xf32>
    %340 = vector.multi_reduction <add>, %339, %cst_108 [1] : vector<16x32xf32> to vector<16xf32>
    %341 = vector.shape_cast %340 : vector<16xf32> to vector<16x1xf32>
    %cst_109 = arith.constant 3.200000e+01 : f32
    %342 = vector.broadcast %cst_109 : f32 to vector<16x1xf32>
    %343 = arith.divf %341, %342 : vector<16x1xf32>
    %344 = vector.broadcast %343 : vector<16x1xf32> to vector<16x32xf32>
    %345 = arith.subf %339, %344 : vector<16x32xf32>
    %346 = vector.broadcast %343 : vector<16x1xf32> to vector<16x32xf32>
    %347 = arith.subf %339, %346 : vector<16x32xf32>
    %348 = arith.mulf %345, %347 : vector<16x32xf32>
    %cst_110 = arith.constant dense<0.000000e+00> : vector<16xf32>
    %349 = vector.multi_reduction <add>, %348, %cst_110 [1] : vector<16x32xf32> to vector<16xf32>
    %350 = vector.shape_cast %349 : vector<16xf32> to vector<16x1xf32>
    %cst_111 = arith.constant 3.200000e+01 : f32
    %351 = vector.broadcast %cst_111 : f32 to vector<16x1xf32>
    %352 = arith.divf %350, %351 : vector<16x1xf32>
    %353 = vector.broadcast %343 : vector<16x1xf32> to vector<16x32xf32>
    %354 = arith.subf %339, %353 : vector<16x32xf32>
    %cst_112 = arith.constant 9.99999974E-6 : f32
    %355 = vector.broadcast %cst_112 : f32 to vector<16x1xf32>
    %356 = arith.addf %352, %355 : vector<16x1xf32>
    %357 = math.rsqrt %356 : vector<16x1xf32>
    %358 = vector.broadcast %357 : vector<16x1xf32> to vector<16x32xf32>
    %359 = arith.mulf %354, %358 : vector<16x32xf32>
    %360 = vector.broadcast %327 : vector<1x32xf32> to vector<16x32xf32>
    %361 = arith.mulf %359, %360 : vector<16x32xf32>
    %362 = vector.broadcast %328 : vector<1x32xf32> to vector<16x32xf32>
    %363 = arith.addf %361, %362 : vector<16x32xf32>
    %364 = vector.shape_cast %363 : vector<16x32xf32> to vector<2x8x32xf32>
    %c1 = arith.constant 1 : index
    %c0_113 = arith.constant 0 : index
    %c0_114 = arith.constant 0 : index
    %c0_115 = arith.constant 0 : index
    %365 = vector.load %arg24[%c1, %c0_113, %c0_114, %c0_115] : memref<2x2x8x32xf32, #tpu.memory_space<vmem>>, vector<1x2x8x32xf32>
    %366 = vector.shape_cast %365 : vector<1x2x8x32xf32> to vector<2x8x32xf32>
    %367 = vector.shape_cast %364 : vector<2x8x32xf32> to vector<1x2x8x32xf32>
    tpu.vector_store %arg24[%c1, %c0_113, %c0_114, %c0_115], %367 {strides = array<i32>} : memref<2x2x8x32xf32, #tpu.memory_space<vmem>>, vector<1x2x8x32xf32>,
    return
  }
  func.func @transform_0(%arg0: i32) -> (i32, i32, i32) {
    %c0_i32 = arith.constant 0 : i32
    %c0_i32_0 = arith.constant 0 : i32
    %c0_i32_1 = arith.constant 0 : i32
    return %arg0, %c0_i32, %c0_i32_0 : i32, i32, i32
  }
  func.func @transform_1(%arg0: i32) -> (i32, i32, i32) {
    %c0_i32 = arith.constant 0 : i32
    %c0_i32_0 = arith.constant 0 : i32
    %c0_i32_1 = arith.constant 0 : i32
    return %arg0, %c0_i32, %c0_i32_0 : i32, i32, i32
  }
  func.func @transform_2(%arg0: i32) -> (i32, i32) {
    %c0_i32 = arith.constant 0 : i32
    %c0_i32_0 = arith.constant 0 : i32
    %c0_i32_1 = arith.constant 0 : i32
    return %c0_i32, %c0_i32_0 : i32, i32
  }
  func.func @transform_3(%arg0: i32) -> (i32, i32) {
    %c0_i32 = arith.constant 0 : i32
    %c0_i32_0 = arith.constant 0 : i32
    %c0_i32_1 = arith.constant 0 : i32
    return %c0_i32, %c0_i32_0 : i32, i32
  }
  func.func @transform_4(%arg0: i32) -> (i32, i32) {
    %c0_i32 = arith.constant 0 : i32
    %c0_i32_0 = arith.constant 0 : i32
    %c0_i32_1 = arith.constant 0 : i32
    return %c0_i32, %c0_i32_0 : i32, i32
  }
  func.func @transform_5(%arg0: i32) -> (i32, i32) {
    %c0_i32 = arith.constant 0 : i32
    %c0_i32_0 = arith.constant 0 : i32
    %c0_i32_1 = arith.constant 0 : i32
    return %c0_i32, %c0_i32_0 : i32, i32
  }
  func.func @transform_6(%arg0: i32) -> (i32, i32) {
    %c0_i32 = arith.constant 0 : i32
    %c0_i32_0 = arith.constant 0 : i32
    %c0_i32_1 = arith.constant 0 : i32
    return %c0_i32, %c0_i32_0 : i32, i32
  }
  func.func @transform_7(%arg0: i32) -> (i32, i32) {
    %c0_i32 = arith.constant 0 : i32
    %c0_i32_0 = arith.constant 0 : i32
    %c0_i32_1 = arith.constant 0 : i32
    return %c0_i32, %c0_i32_0 : i32, i32
  }
  func.func @transform_8(%arg0: i32) -> (i32, i32) {
    %c0_i32 = arith.constant 0 : i32
    %c0_i32_0 = arith.constant 0 : i32
    %c0_i32_1 = arith.constant 0 : i32
    return %c0_i32, %c0_i32_0 : i32, i32
  }
  func.func @transform_9(%arg0: i32) -> (i32, i32) {
    %c0_i32 = arith.constant 0 : i32
    %c0_i32_0 = arith.constant 0 : i32
    %c0_i32_1 = arith.constant 0 : i32
    return %c0_i32, %c0_i32_0 : i32, i32
  }
  func.func @transform_10(%arg0: i32) -> (i32, i32) {
    %c0_i32 = arith.constant 0 : i32
    %c0_i32_0 = arith.constant 0 : i32
    %c0_i32_1 = arith.constant 0 : i32
    return %c0_i32, %c0_i32_0 : i32, i32
  }
  func.func @transform_11(%arg0: i32) -> (i32, i32) {
    %c0_i32 = arith.constant 0 : i32
    %c0_i32_0 = arith.constant 0 : i32
    %c0_i32_1 = arith.constant 0 : i32
    return %c0_i32, %c0_i32_0 : i32, i32
  }
  func.func @transform_12(%arg0: i32) -> (i32, i32) {
    %c0_i32 = arith.constant 0 : i32
    %c0_i32_0 = arith.constant 0 : i32
    %c0_i32_1 = arith.constant 0 : i32
    return %c0_i32, %c0_i32_0 : i32, i32
  }
  func.func @transform_13(%arg0: i32) -> (i32, i32) {
    %c0_i32 = arith.constant 0 : i32
    %c0_i32_0 = arith.constant 0 : i32
    %c0_i32_1 = arith.constant 0 : i32
    return %c0_i32, %c0_i32_0 : i32, i32
  }
  func.func @transform_14(%arg0: i32) -> (i32, i32) {
    %c0_i32 = arith.constant 0 : i32
    %c0_i32_0 = arith.constant 0 : i32
    %c0_i32_1 = arith.constant 0 : i32
    return %c0_i32, %c0_i32_0 : i32, i32
  }
  func.func @transform_15(%arg0: i32) -> (i32, i32) {
    %c0_i32 = arith.constant 0 : i32
    %c0_i32_0 = arith.constant 0 : i32
    %c0_i32_1 = arith.constant 0 : i32
    return %c0_i32, %c0_i32_0 : i32, i32
  }
  func.func @transform_16(%arg0: i32) -> (i32, i32) {
    %c0_i32 = arith.constant 0 : i32
    %c0_i32_0 = arith.constant 0 : i32
    %c0_i32_1 = arith.constant 0 : i32
    return %c0_i32, %c0_i32_0 : i32, i32
  }
  func.func @transform_17(%arg0: i32) -> (i32, i32) {
    %c0_i32 = arith.constant 0 : i32
    %c0_i32_0 = arith.constant 0 : i32
    %c0_i32_1 = arith.constant 0 : i32
    return %c0_i32, %c0_i32_0 : i32, i32
  }
  func.func @transform_18(%arg0: i32) -> (i32, i32) {
    %c0_i32 = arith.constant 0 : i32
    %c0_i32_0 = arith.constant 0 : i32
    %c0_i32_1 = arith.constant 0 : i32
    return %c0_i32, %c0_i32_0 : i32, i32
  }
  func.func @transform_19(%arg0: i32) -> (i32, i32) {
    %c0_i32 = arith.constant 0 : i32
    %c0_i32_0 = arith.constant 0 : i32
    %c0_i32_1 = arith.constant 0 : i32
    return %c0_i32, %c0_i32_0 : i32, i32
  }
  func.func @transform_20(%arg0: i32) -> (i32, i32) {
    %c0_i32 = arith.constant 0 : i32
    %c0_i32_0 = arith.constant 0 : i32
    %c0_i32_1 = arith.constant 0 : i32
    return %c0_i32, %c0_i32_0 : i32, i32
  }
  func.func @transform_21(%arg0: i32) -> (i32, i32) {
    %c0_i32 = arith.constant 0 : i32
    %c0_i32_0 = arith.constant 0 : i32
    %c0_i32_1 = arith.constant 0 : i32
    return %c0_i32, %c0_i32_0 : i32, i32
  }
  func.func @transform_22(%arg0: i32) -> (i32, i32, i32, i32, i32) {
    %c0_i32 = arith.constant 0 : i32
    %c0_i32_0 = arith.constant 0 : i32
    %c0_i32_1 = arith.constant 0 : i32
    %c0_i32_2 = arith.constant 0 : i32
    %c0_i32_3 = arith.constant 0 : i32
    return %arg0, %c0_i32, %c0_i32_0, %c0_i32_1, %c0_i32_2 : i32, i32, i32, i32, i32
  }
  func.func @transform_23(%arg0: i32) -> (i32, i32, i32, i32) {
    %c0_i32 = arith.constant 0 : i32
    %c0_i32_0 = arith.constant 0 : i32
    %c0_i32_1 = arith.constant 0 : i32
    %c0_i32_2 = arith.constant 0 : i32
    return %c0_i32, %arg0, %c0_i32_0, %c0_i32_1 : i32, i32, i32, i32
  }
}

</mosaic_0001>

<bundles_post_ra>
// kernel: encoder_layer_forward.1
= control target key start
LH: loop header
LB: loop body
LE: loop exit
PB: predicated region body
PF: predicated region fallthrough
CT: control target
= control target key end

     0   :  { %s6072_s0 = inlined_call_operand.vmem [shape: f32[4,8,32], index: 0, kind: input, shape index: {}]   ;;  %s6073_s1 = inlined_call_operand.vmem [shape: f32[4,8,32], index: 1, kind: input, shape index: {}]   ;;  %s6074_s2 = inlined_call_operand.vmem [shape: bf16[32,768], index: 2, kind: input, shape index: {}]   ;;  %s6075_s3 = inlined_call_operand.vmem [shape: f32[1,768], index: 3, kind: input, shape index: {}]   ;;  %s6076_s4 = inlined_call_operand.vmem [shape: bf16[32,768], index: 4, kind: input, shape index: {}]   ;;  %s6077_s5 = inlined_call_operand.vmem [shape: f32[1,768], index: 5, kind: input, shape index: {}]   ;;  %s6078_s6 = inlined_call_operand.vmem [shape: bf16[256,32], index: 6, kind: input, shape index: {}]   ;;  %s6079_s7 = inlined_call_operand.vmem [shape: f32[1,32], index: 7, kind: input, shape index: {}]   ;;  %s6080_s8 = inlined_call_operand.vmem [shape: bf16[256,32], index: 8, kind: input, shape index: {}]   ;;  %s6081_s9 = inlined_call_operand.vmem [shape: f32[1,32], index: 9, kind: input, shape index: {}]   ;;  %s6082_s10 = inlined_call_operand.vmem [shape: bf16[32,128], index: 10, kind: input, shape index: {}]   ;;  %s6083_s11 = inlined_call_operand.vmem [shape: f32[1,128], index: 11, kind: input, shape index: {}]   ;;  %s6084_s12 = inlined_call_operand.vmem [shape: bf16[128,32], index: 12, kind: input, shape index: {}]   ;;  %s6085_s13 = inlined_call_operand.vmem [shape: f32[1,32], index: 13, kind: input, shape index: {}]   ;;  %s6086_s14 = inlined_call_operand.vmem [shape: f32[1,32], index: 14, kind: input, shape index: {}]   ;;  %s6087_s15 = inlined_call_operand.vmem [shape: f32[1,32], index: 15, kind: input, shape index: {}]   ;;  %s6088_s16 = inlined_call_operand.vmem [shape: bf16[32,128], index: 16, kind: input, shape index: {}]   ;;  %s6089_s17 = inlined_call_operand.vmem [shape: f32[1,128], index: 17, kind: input, shape index: {}]   ;;  %s6090_s18 = inlined_call_operand.vmem [shape: bf16[128,32], index: 18, kind: input, shape index: {}]   ;;  %s6091_s19 = inlined_call_operand.vmem [shape: f32[1,32], index: 19, kind: input, shape index: {}]   ;;  %s6092_s20 = inlined_call_operand.vmem [shape: f32[1,32], index: 20, kind: input, shape index: {}]   ;;  %s6093_s21 = inlined_call_operand.vmem [shape: f32[1,32], index: 21, kind: input, shape index: {}]   ;;  %s6094_s22 = inlined_call_operand.vmem [shape: f32[4,3,4,8,8], index: 22, kind: output, shape index: {0}]   ;;  %s6095_s23 = inlined_call_operand.vmem [shape: f32[2,4,8,32], index: 23, kind: output, shape index: {1}]  }
   0x1   :  { %6104 = sst [smem:[#allocation8_spill]] %s6072_s0 }
   0x2   :  { %6105 = sst [smem:[#allocation9_spill]] %s6073_s1 }
   0x3   :  { %6106 = sst [smem:[#allocation10_spill]] %s6074_s2 }
   0x4   :  { %6107 = sst [smem:[#allocation11_spill]] %s6075_s3 }
   0x5   :  { %6108 = sst [smem:[#allocation12_spill]] %s6076_s4 }
   0x6   :  { %6109 = sst [smem:[#allocation13_spill]] %s6077_s5 }
   0x7   :  { %6110 = sst [smem:[#allocation14_spill]] %s6078_s6 }
   0x8   :  { %6111 = sst [smem:[#allocation15_spill]] %s6079_s7 }
   0x9   :  { %6112 = sst [smem:[#allocation16_spill]] %s6093_s21 }
   0xa   :  { %6113 = sst [smem:[#allocation17_spill]] %s6095_s23 }
   0xb   :  { %s5064_s4 = smov 0   ;;  %s5066_s30 = smov 0  }
   0xc   :  { %s5068_s24 = smov 0  }
   0xd LB: > { %6114 = sst [smem:[#allocation3_spill]] %s4934_s30  ;;  %s5077_s25 = sadd.s32 4294967295, %s4938_s24   ;;  %s4938_s24 = sphi %s5068_s24, %s6133_s24   ;;  %s4934_s30 = sphi %s5066_s30, %s6135_s30   ;;  %s4930_s4 = sphi %s5064_s4, %s6134_s4  }
   0xe   : > { %6115 = sst [smem:[#allocation4_spill]] %s5077_s25  ;;  %s5079_s5 = sadd.s32 1, %s4938_s24  }
   0xf   : > { %6116 = sst [smem:[#allocation5_spill]] %s5079_s5  ;;  %s536_s1 = ssub.s32 %s4938_s24, %s5079_s5 }
  0x10   : > { %s539_s26 = sadd.s32 1, %s4934_s30  ;;  %p537_p0 = scmp.eq.s32.totalorder %s536_s1, 0 }
  0x11   : > { %p549_p1 = scmp.ne.s32.totalorder %s4934_s30, %s4930_s4  ;;  %p550_p2 = scmp.eq.s32.totalorder %s5077_s25, 1 }
  0x12   : > { %p4169_p3 = scmp.ge.s32.totalorder %s4938_s24, 1  ;;  %p652_p5 = scmp.lt.s32.totalorder %s4938_s24, 3 }
  0x13   : > { %s5087_s2 = scalar_select %p537_p0, %s4934_s30, %s539_s26  }
  0x14   : > { %p5089_p4 = por %p550_p2, %p549_p1  ;;  %p653_p6 = pnand %p4169_p3, %p652_p5 }
  0x15   : > { %6117 = sst [smem:[#allocation6_spill]] %s5087_s2  ;;  %s6120_s28 = sld [smem:[#allocation10_spill]] (!%p653_p6)  ;;  %v4940_v2 = vmov (!%p653_p6), 0   ;;  %vm857_vm0 = vcmask (!%p653_p6), 261120   ;;  %v4941_v31 = vmov (!%p653_p6), 0.0   ;;  %vm4942_vm1 = vmmov (!%p653_p6), 0  }
  0x16   : > { %s6118_s6 = scalar_select %p5089_p4, 1, 0 }
  0x17   : > { %656 = sbr.rel (%p653_p6) target bundleno = 3953 (0xf71), region = 108  ;;  %s4171_s29 = sshll.u32 (!%p653_p6), %s5077_s25, 1  ;;  %893 = vmatprep.mubr.bf16.mxu1 (!%p653_p6), %v4940_v2  ;;  %979 = vmatprep.mubr.bf16.mxu0 (!%p653_p6), %v4940_v2  ;;  %v767_v32 = vlaneseq (!%p653_p6)  ;;  %vm1238_vm2 = vcmask (!%p653_p6), 523264   ;;  %vm1497_vm3 = vcmask (!%p653_p6), 1043456   ;;  %vm1423_vm4 = vcmask (!%p653_p6), 64512  }
  0x18   : > { %6119 = sst [smem:[#allocation7_spill]] %s6118_s6  ;;  %p727_p7 = scmp.lt.s32.totalorder (!%p653_p6), %s4171_s29, 3 }
  0x19   : > { %s6121_s24 = sld [smem:[#allocation8_spill]] (!%p653_p6)  ;;  %s6122_s25 = sld [smem:[#allocation9_spill]] (!%p653_p6)  ;;  %v5187_v33 = vshrl.u32 (!%p653_p6), %v767_v32, 7 }
  0x1a   : > { %s6123_s21 = sld [smem:[#allocation12_spill]] (!%p653_p6)  ;;  %s6124_s0 = sld [smem:[#allocation11_spill]] (!%p653_p6) }
  0x1b   : > { %v4724_v0 = vld [vmem:[%s6120_s28 + $0x4] ss:$24 sps:$4 sm:$0xff] (!%p653_p6)   ;;  %v4726_v1 = vld [vmem:[%s6120_s28] ss:$24 sps:$4 sm:$0xff] (!%p653_p6)   ;;  %v4727_v3 = vld [vmem:[%s6120_s28 + $0x34] ss:$24 sps:$4 sm:$0xff] (!%p653_p6)  }
  0x1c   : > { %861 = vmatprep.subr.bf16.mxu1 (!%p653_p6), %v4724_v0  ;;  %v4729_v4 = vld [vmem:[%s6120_s28 + $0x30] ss:$24 sps:$4 sm:$0xff] (!%p653_p6)   ;;  %v4732_v5 = vld [vmem:[%s6120_s28 + $0xc] ss:$24 sps:$4 sm:$0xff] (!%p653_p6)   ;;  %v4738_v12 = vld [vmem:[%s6120_s28 + $0x3c] ss:$24 sps:$4 sm:$0xff] (!%p653_p6)  }
  0x1d   : > { %862 = vmatpush1.bf16.msra.mxu1 (!%p653_p6), %v4726_v1  ;;  %v4733_v6 = vld [vmem:[%s6120_s28 + $0x14] ss:$24 sps:$4 sm:$0xff] (!%p653_p6)   ;;  %v4735_v7 = vld [vmem:[%s6120_s28 + $0x10] ss:$24 sps:$4 sm:$0xff] (!%p653_p6)   ;;  %v4739_v13 = vld [vmem:[%s6120_s28 + $0x44] ss:$24 sps:$4 sm:$0xff] (!%p653_p6)  }
  0x1e   : > { %s6137_s29 = smov (!%p727_p7, %s4171_s29), 3  ;;  %863 = vmatprep.subr.bf16.mxu1 %v4727_v3  ;;  %947 = vmatprep.subr.bf16.mxu0 %v4733_v6  ;;  %v4730_v10 = vld [vmem:[%s6120_s28 + $0x8] ss:$24 sps:$4 sm:$0xff]   ;;  %v4736_v16 = vld [vmem:[%s6120_s28 + $0x38] ss:$24 sps:$4 sm:$0xff]   ;;  %v777_v36 = vsub.s32 2, %v5187_v33 }
  0x1f   : > { %s4172_s30 = sshll.u32 %s6137_s29, 3  ;;  %948 = vmatpush1.bf16.msra.mxu0 %v4735_v7  ;;  %v4741_v14 = vld [vmem:[%s6120_s28 + $0x40] ss:$24 sps:$4 sm:$0xff]   ;;  %s6125_s26 = sld [smem:[#allocation13_spill]]  ;;  %v769_v45 = vsub.s32 0, %v5187_v33  ;;  %v785_v52 = vsub.s32 4, %v5187_v33 }
  0x20   : > { %s730_s23 = scalar_lea.vmem %s6121_s24, %s4172_s30  ;;  %s736_s27 = scalar_lea.vmem %s6122_s25, %s4172_s30  ;;  %949 = vmatprep.subr.bf16.mxu0 %v4739_v13  ;;  %v4744_v15 = vld [vmem:[%s6123_s21 + $0xc] ss:$24 sps:$4 sm:$0xff]   ;;  %v4742_v17 = vld [vmem:[%s6123_s21 + $0x8] ss:$24 sps:$4 sm:$0xff]   ;;  %v4747_v18 = vld [vmem:[%s6123_s21 + $0x3c] ss:$24 sps:$4 sm:$0xff]  }
  0x21   : > { %864 = vmatpush1.bf16.msra.mxu1 %v4729_v4  ;;  %v747_v8 = vld [vmem:[%s730_s23] sm:$0xff]  ;;  %v748_v9 = vld [vmem:[%s730_s23 + $0x8] sm:$0xff]  ;;  %v4745_v22 = vld [vmem:[%s6123_s21 + $0x38] ss:$24 sps:$4 sm:$0xff]   ;;  %s4943_s30 = smov 64   ;;  %s4695_s25 = smul.u32 96, %s6137_s29 }
  0x22   : > { %v749_v11 = vpack.c.bf16 %v748_v9, %v747_v8  ;;  %904 = vmatprep.subr.bf16.mxu1 %v4732_v5  ;;  %v750_v19 = vld [vmem:[%s736_s27] sm:$0xff]  ;;  %v751_v20 = vld [vmem:[%s736_s27 + $0x8] sm:$0xff]  ;;  %s6126_s24 = sld [smem:[#allocation14_spill]]  ;;  %s723_s3 = sand.u32 1, %s4930_s4  }
  0x23   : > { %950 = vmatpush1.bf16.msra.mxu0 %v4741_v14  ;;  %v4750_v21 = vld [vmem:[%s6123_s21 + $0x4] ss:$24 sps:$4 sm:$0xff]   ;;  %v4748_v23 = vld [vmem:[%s6123_s21] ss:$24 sps:$4 sm:$0xff]   ;;  %v4753_v24 = vld [vmem:[%s6123_s21 + $0x34] ss:$24 sps:$4 sm:$0xff]   ;;  %v752_v26 = vpack.c.bf16 %v751_v20, %v750_v19  ;;  %s5324_s2 = scalar_lea.vmem %s6094_s22, %s4695_s25 }
  0x24   : > { %4189 = vmatmul.mubr.msk.bf16.vlgmr.msra.gmra.mrb[0].mxu1 %vm857_vm0, %v749_v11  ;;  %1140 = vmatprep.subr.bf16.mxu0 %v4744_v15  ;;  %v4751_v25 = vld [vmem:[%s6123_s21 + $0x30] ss:$24 sps:$4 sm:$0xff]   ;;  %v4756_v27 = vld [vmem:[%s6123_s21 + $0x14] ss:$24 sps:$4 sm:$0xff]   ;;  %v4759_v29 = vld [vmem:[%s6123_s21 + $0x44] ss:$24 sps:$4 sm:$0xff]  }
  0x25   : > { %905 = vmatpush1.bf16.msra.mxu1 %v4730_v10  ;;  %936 = vmatprep.mubr.bf16.mxu1 %v4940_v2  ;;  %v4754_v28 = vld [vmem:[%s6123_s21 + $0x10] ss:$24 sps:$4 sm:$0xff]   ;;  %v4757_v30 = vld [vmem:[%s6123_s21 + $0x40] ss:$24 sps:$4 sm:$0xff]   ;;  %s4170_s1 = sshll.u32 %s723_s3, 5  ;;  %s6129_s23 = sld [smem:[#allocation16_spill]] }
  0x26   : > { %906 = vmatprep.subr.bf16.mxu1 %v4738_v12  ;;  %4191 = vmatmul.mubr.msk.bf16.vlgmr.msra.gmra.mrb[0].mxu0 %vm857_vm0, %v749_v11  ;;  %v5197_v39 = vld [vmem:[%s6124_s0] sm:$0x3f]  ;;  %s6128_s0 = sld [smem:[#allocation15_spill]]  ;;  %s6022_s6 = scalar_lea.vmem [#allocation2], %s4170_s1 }
  0x27   : > { %1141 = vmatpush1.bf16.msra.mxu0 %v4742_v17  ;;  %1172 = vmatprep.mubr.bf16.mxu0 %v4940_v2  ;;  %v778_v41 = vrot.slane %v5197_v39, %v777_v36  ;;  %v5205_v44 = vld [vmem:[%s6125_s26] sm:$0x3f]  ;;  %v770_v53 = vrot.slane %v5197_v39, %v769_v45  ;;  %v786_v62 = vrot.slane %v5197_v39, %v785_v52  ;;  %s6131_s3 = sld [smem:[#allocation4_spill]] (%p5089_p4)  ;;  %s6132_s26 = sld [smem:[#allocation17_spill]] (%p5089_p4) }
  0x28   : > { %1142 = vmatprep.subr.bf16.mxu0 %v4747_v18  ;;  %v1015_v50 = vrot.slane %v5205_v44, %v777_v36  ;;  %v1007_v8 = vrot.slane %v5205_v44, %v769_v45  ;;  %s6127_s7 = smov %s6126_s24 }
  0x29   : > { %907 = vmatpush1.bf16.msra.mxu1 %v4736_v16 }
  0x2a   : > { %1097 = vmatprep.subr.bf16.mxu1 %v4750_v21 }
  0x2b   : > { %1143 = vmatpush1.bf16.msra.mxu0 %v4745_v22 }
  0x2c   : > { %4190 = vmatmul.mubr.msk.bf16.vlgmr.msra.gmra.mrb[4].mxu1 %vm857_vm0, %v749_v11  ;;  %4447 = vmatprep.subr.bf16.mxu0 %v4941_v31 }
  0x2d   : > { %1098 = vmatpush1.bf16.msra.mxu1 %v4748_v23  ;;  %1129 = vmatprep.mubr.bf16.mxu1 %v4940_v2 }
  0x2e   : > { %1099 = vmatprep.subr.bf16.mxu1 %v4753_v24  ;;  %4205 = vmatmul.mubr.msk.bf16.vlgmr.msra.gmra.mrb[4].mxu0 %vm857_vm0, %v752_v26 }
  0x2f   : > { %4449 = vmatprep.mubr.msk.bf16.mxu0 %vm4942_vm1, %v4941_v31 }
  0x31   : > { %1100 = vmatpush1.bf16.msra.mxu1 %v4751_v25 }
  0x32   : > { %1183 = vmatprep.subr.bf16.mxu1 %v4756_v27 }
  0x34   : > { %4204 = vmatmul.mubr.msk.bf16.vlgmr.msra.gmra.mrb[8].mxu1 %vm857_vm0, %v752_v26 }
  0x35   : > { %1215 = vmatprep.mubr.bf16.mxu1 %v4940_v2  ;;  %1184 = vmatpush1.bf16.msra.mxu1 %v4754_v28 }
  0x36   : > { %1185 = vmatprep.subr.bf16.mxu1 %v4759_v29 }
  0x39   : > { %1186 = vmatpush1.bf16.msra.mxu1 %v4757_v30 }
  0x3a   : > { %4453 = vmatprep.subr.bf16.mxu1 %v4941_v31 }
  0x3c   : > { %4206 = vmatmul.mubr.msk.bf16.vlgmr.msra.gmra.mrb[12].mxu1 %vm857_vm0, %v752_v26  ;;  %v1023_v26 = vrot.slane %v5205_v44, %v785_v52 }
  0x3d   : > { %4455 = vmatprep.mubr.msk.bf16.mxu1 %vm4942_vm1, %v4941_v31 }
  0xf7   : > { %v895_v34 = vpop.f32.mrb[0].mxu1 }
  0xf8   : > { %v5189_v35 = vpop.f32.mrb[1].mxu1  ;;  %v896_v0 = vadd.f32 %v895_v34, %v770_v53 }
  0xf9   : > { %v899_v37 = vpop.f32.mrb[2].mxu1  ;;  %v981_v40 = vpop.f32.mrb[0].mxu0 }
  0xfa   : > { %v5192_v38 = vpop.f32.mrb[3].mxu1  ;;  %v5200_v42 = vpop.f32.mrb[1].mxu0  ;;  %v900_v6 = vadd.f32 %v899_v37, %v770_v53  ;;  %v5239_v11 = vpack.c.bf16 %v896_v0, %v896_v0  ;;  %v982_v12 = vadd.f32 %v981_v40, %v786_v62 }
  0xfb   : > { %v985_v43 = vpop.f32.mrb[2].mxu0 }
  0xfc   : > { %v5208_v46 = vpop.f32.mrb[3].mxu0  ;;  %v5245_v15 = vpack.c.bf16 %v900_v6, %v900_v6  ;;  %v986_v16 = vadd.f32 %v985_v43, %v786_v62  ;;  %v5253_v19 = vpack.c.bf16 %v982_v12, %v982_v12 }
  0xfe   : > { %v5260_v21 = vpack.c.bf16 %v986_v16, %v986_v16  ;;  %v1499_v23 = vsel %vm1497_vm3, %v5253_v19, 0 }
  0xff   : > { %v938_v47 = vpop.f32.mrb[4].mxu1 }
 0x100   : > { %v939_v48 = vadd.f32 %v938_v47, %v778_v41  ;;  %v5210_v49 = vpop.f32.mrb[5].mxu1  ;;  %v1545_v25 = vsel %vm1497_vm3, %v5260_v21, 0 }
 0x101   : > { %v942_v51 = vpop.f32.mrb[6].mxu1  ;;  %v1174_v57 = vpop.f32.mrb[4].mxu0 }
 0x102   : > { %v5215_v54 = vpack.c.bf16 %v939_v48, %v939_v48  ;;  %v943_v55 = vadd.f32 %v942_v51, %v778_v41  ;;  %v5217_v56 = vpop.f32.mrb[7].mxu1  ;;  %v1175_v60 = vadd.f32 %v1174_v57, %v1015_v50  ;;  %v5223_v61 = vpop.f32.mrb[5].mxu0 }
 0x103   : > { %v1178_v63 = vpop.f32.mrb[6].mxu0 }
 0x104   : > { %v1243_v58 = vsel %vm1238_vm2, %v5215_v54, 0  ;;  %v5221_v59 = vpack.c.bf16 %v943_v55, %v943_v55  ;;  %v5228_v2 = vpack.c.bf16 %v1175_v60, %v1175_v60  ;;  %v1179_v3 = vadd.f32 %v1178_v63, %v1015_v50  ;;  %v5231_v4 = vpop.f32.mrb[7].mxu0 }
 0x105   : > { %4448 = vmatpush3.bf16.xpose.msra.mxu0 %v1243_v58 }
 0x106   : > { %v1289_v1 = vsel %vm1238_vm2, %v5221_v59, 0  ;;  %4459 = vmatprep.subr.bf16.mxu0 %v4941_v31  ;;  %v5233_v7 = vpack.c.bf16 %v1179_v3, %v1179_v3  ;;  %v1335_v13 = vsel %vm1238_vm2, %v5228_v2, 0 }
 0x107   : > { %4454 = vmatpush3.bf16.xpose.msra.mxu1 %v1289_v1  ;;  %v1131_v5 = vpop.f32.mrb[8].mxu1 }
 0x108   : > { %4465 = vmatprep.subr.bf16.mxu1 %v4941_v31  ;;  %v5237_v9 = vpop.f32.mrb[9].mxu1  ;;  %v1381_v17 = vsel %vm1238_vm2, %v5233_v7, 0  ;;  %v1132_v18 = vadd.f32 %v1131_v5, %v1007_v8 }
 0x109   : > { %v1135_v10 = vpop.f32.mrb[10].mxu1 }
 0x10a   : > { %v5243_v14 = vpop.f32.mrb[11].mxu1  ;;  %v1136_v20 = vadd.f32 %v1135_v10, %v1007_v8  ;;  %v5262_v22 = vpack.c.bf16 %v1132_v18, %v1132_v18 }
 0x10c   : > { %4450 = vmatmul.mubr.msk.bf16.vlgmr.msra.gmra.mrb[8].mxu0 %vm1238_vm2, %v5239_v11  ;;  %v5267_v24 = vpack.c.bf16 %v1136_v20, %v1136_v20 }
 0x10d   : > { %4460 = vmatpush3.bf16.xpose.msra.mxu0 %v1335_v13  ;;  %4461 = vmatprep.mubr.msk.bf16.mxu0 %vm4942_vm1, %v4941_v31 }
 0x10e   : > { %4456 = vmatmul.mubr.msk.bf16.vlgmr.msra.gmra.mrb[16].mxu1 %vm1238_vm2, %v5245_v15  ;;  %4471 = vmatprep.subr.bf16.mxu0 %v4941_v31 }
 0x10f   : > { %4466 = vmatpush3.bf16.xpose.msra.mxu1 %v1381_v17  ;;  %4467 = vmatprep.mubr.msk.bf16.mxu1 %vm4942_vm1, %v4941_v31  ;;  %v1217_v27 = vpop.f32.mrb[12].mxu1 }
 0x110   : > { %4477 = vmatprep.subr.bf16.mxu1 %v4941_v31  ;;  %v5282_v28 = vadd.f32 %v1217_v27, %v1023_v26  ;;  %v5284_v29 = vpop.f32.mrb[13].mxu1 }
 0x111   : > { %v1221_v30 = vpop.f32.mrb[14].mxu1 }
 0x112   : > { %v5286_v32 = vadd.f32 %v1221_v30, %v1023_v26  ;;  %v5288_v34 = vpop.f32.mrb[15].mxu1 }
 0x114   : > { %4462 = vmatmul.mubr.msk.bf16.vlgmr.msra.gmra.mrb[12].mxu0 %vm1238_vm2, %v5262_v22 }
 0x115   : > { %4472 = vmatpush3.bf16.msra.mxu0 %v1499_v23  ;;  %4473 = vmatprep.mubr.msk.bf16.mxu0 %vm4942_vm1, %v4941_v31 }
 0x116   : > { %4468 = vmatmul.mubr.msk.bf16.vlgmr.msra.gmra.mrb[20].mxu1 %vm1238_vm2, %v5267_v24  ;;  %4483 = vmatprep.subr.bf16.mxu0 %v4941_v31 }
 0x117   : > { %4478 = vmatpush3.bf16.msra.mxu1 %v1545_v25  ;;  %4479 = vmatprep.mubr.msk.bf16.mxu1 %vm4942_vm1, %v4941_v31 }
 0x118   : > { %4489 = vmatprep.subr.bf16.mxu1 %v4941_v31 }
 0x1df   : > { %v1279_v36 = vpop.f32.mrb[8].mxu0 }
 0x1e0   : > { %v4451_v37 = vpop.f32.mrb[9].mxu0  ;;  %v1424_v40 = vsel %vm1423_vm4, %v1279_v36, -inf }
 0x1e1   : > { %v1325_v41 = vpop.f32.mrb[16].mxu1  ;;  %1425 = vmax.xlane.f32.xlu0 %v1424_v40  ;;  %v1282_v43 = vpop.f32.mrb[10].mxu0 }
 0x1e2   : > { %v4452_v45 = vpop.f32.mrb[11].mxu0  ;;  %v4457_v47 = vpop.f32.mrb[17].mxu1  ;;  %v1427_v51 = vsel %vm1423_vm4, %v1325_v41, -inf }
 0x1e3   : > { %v1328_v48 = vpop.f32.mrb[18].mxu1 }
 0x1e4   : > { %v4458_v50 = vpop.f32.mrb[19].mxu1  ;;  %v5336_v48 = vpack.c.bf16 %v5286_v32, %v5286_v32 }
 0x1e5   : > { %1428 = vmax.xlane.f32.xlu0 %v1427_v51 }
 0x1e6   : > { %v1641_v51 = vsel %vm1497_vm3, %v5336_v48, 0 }
 0x1e7   : > { %v5292_v52 = vpop.f32.mrb[12].mxu0 }
 0x1e8   : > { %v1468_v53 = vadd.f32 %v5292_v52, %v1279_v36  ;;  %v4463_v55 = vpop.f32.mrb[13].mxu0 }
 0x1e9   : > { %v5295_v57 = vpop.f32.mrb[20].mxu1  ;;  %v1374_v58 = vpop.f32.mrb[14].mxu0 }
 0x1ea   : > { %v1470_v60 = vsel %vm1423_vm4, %v1468_v53, -inf  ;;  %v1469_v62 = vadd.f32 %v5295_v57, %v1325_v41  ;;  %v4469_v63 = vpop.f32.mrb[21].mxu1  ;;  %v4464_v0 = vpop.f32.mrb[15].mxu0 }
 0x1eb   : > { %1471 = vmax.xlane.f32.xlu1 %v1470_v60  ;;  %v1420_v1 = vpop.f32.mrb[22].mxu1 }
 0x1ec   : > { %v4470_v3 = vpop.f32.mrb[23].mxu1  ;;  %v1473_v5 = vsel %vm1423_vm4, %v1469_v62, -inf }
 0x1ef   : > { %1474 = vmax.xlane.f32.xlu1 %v1473_v5 }
 0x26e   : > { %v1426_v6 = vpop.xlane.xlu0 %1425 }
 0x26f   : > { %v1430_v8 = vsub.f32 %v1279_v36, %v1426_v6 }
 0x271   : > { %v1432_v10 = vmul.f32 1.442695, %v1430_v8 }
 0x272   : > { %v1429_v12 = vpop.xlane.xlu0 %1428 }
 0x273   : > { %4812 = vpow2.f32 %v1432_v10  ;;  %v1431_v13 = vsub.f32 %v1325_v41, %v1429_v12 }
 0x275   : > { %v1434_v16 = vmul.f32 1.442695, %v1431_v13 }
 0x277   : > { %4814 = vpow2.f32 %v1434_v16 }
 0x278   : > { %v1472_v17 = vpop.xlane.xlu1 %1471 }
 0x279   : > { %v1476_v18 = vsub.f32 %v1468_v53, %v1472_v17 }
 0x27b   : > { %v1478_v20 = vmul.f32 1.442695, %v1476_v18 }
 0x27c   : > { %v1475_v37 = vpop.xlane.xlu1 %1474 }
 0x27d   : > { %v4813_v23 = vpop.eup %4812  ;;  %4816 = vpow2.f32 %v1478_v20  ;;  %v1477_v40 = vsub.f32 %v1469_v62, %v1475_v37 }
 0x27e   : > { %v1436_v25 = vsel %vm1423_vm4, %v4813_v23, 0.0 }
 0x27f   : > { %1437 = vadd.xlane.f32.xlu0 %v1436_v25  ;;  %v1480_v41 = vmul.f32 1.442695, %v1477_v40 }
 0x281   : > { %v4815_v26 = vpop.eup %4814  ;;  %4818 = vpow2.f32 %v1480_v41 }
 0x282   : > { %v1439_v27 = vsel %vm1423_vm4, %v4815_v26, 0.0 }
 0x283   : > { %1440 = vadd.xlane.f32.xlu1 %v1439_v27 }
 0x287   : > { %v4817_v30 = vpop.eup %4816 }
 0x288   : > { %v1482_v36 = vsel %vm1423_vm4, %v4817_v30, 0.0 }
 0x289   : > { %1483 = vadd.xlane.f32.xlu0 %v1482_v36 }
 0x28b   : > { %v4819_v43 = vpop.eup %4818 }
 0x294   : > { %1741 = vrot.lane.b32.xlu1 %v5221_v59, %s4943_s30  ;;  %v1485_v59 = vsel %vm1423_vm4, %v4819_v43, 0.0 }
 0x298   : > { %1686 = vrot.lane.b32.xlu1 %v5239_v11, %s4943_s30 }
 0x29f   : > { %1689 = vrot.lane.b32.xlu0 %v5215_v54, %s4943_s30 }
 0x2a3   : > { %1793 = vrot.lane.b32.xlu0 %v5228_v2, %s4943_s30 }
 0x2a7   : > { %1790 = vrot.lane.b32.xlu0 %v5262_v22, %s4943_s30 }
 0x2bc   : > { %1486 = vadd.xlane.f32.xlu1 %v1485_v59 }
 0x2cd   : > { %1738 = vrot.lane.b32.xlu1 %v5245_v15, %s4943_s30 }
 0x2d1   : > { %1845 = vrot.lane.b32.xlu1 %v5233_v7, %s4943_s30  ;;  %v5328_v7 = vpack.c.bf16 %v5282_v28, %v5282_v28 }
 0x2d3   : > { %v1595_v47 = vsel %vm1497_vm3, %v5328_v7, 0 }
 0x2d5   : > { %1842 = vrot.lane.b32.xlu1 %v5267_v24, %s4943_s30 }
 0x30c   : > { %v1438_v54 = vpop.xlane.xlu0 %1437 }
 0x30d   : > { %4820 = vrcp.f32 %v1438_v54 }
 0x310   : > { %v1441_v2 = vpop.xlane.xlu1 %1440 }
 0x311   : > { %4822 = vrcp.f32 %v1441_v2 }
 0x314   : > { %v1742_v62 = vpop.permute.xlu1 %1741 }
 0x315   : > { %v1747_v13 = vsel %vm1238_vm2, %v1742_v62, 0 }
 0x316   : > { %v1484_v11 = vpop.xlane.xlu0 %1483 }
 0x317   : > { %v4821_v22 = vpop.eup %4820  ;;  %4824 = vrcp.f32 %v1484_v11 }
 0x318   : > { %v1444_v15 = vmul.f32 %v4821_v22, %v4813_v23  ;;  %v1687_v0 = vpop.permute.xlu1 %1686 }
 0x31a   : > { %3101 = vst.msk [vmem:[%s5324_s2] sm:$0xff] %vm1423_vm4, %v1444_v15  ;;  %v1492_v24 = vpack.c.bf16 %v1444_v15, %v1444_v15  ;;  %v1690_v55 = vpop.permute.xlu0 %1689 }
 0x31b   : > { %v4823_v45 = vpop.eup %4822  ;;  %v1695_v60 = vsel %vm1238_vm2, %v1690_v55, 0 }
 0x31c   : > { %v1445_v50 = vmul.f32 %v4823_v45, %v4815_v26  ;;  %4474 = vmatmul.mubr.msk.bf16.vlgmr.msra.gmra.mrb[16].mxu0 %vm1423_vm4, %v1492_v24 }
 0x31d   : > { %4484 = vmatpush3.bf16.msra.mxu0 %v1595_v47  ;;  %4485 = vmatprep.mubr.msk.bf16.mxu0 %vm4942_vm1, %v4941_v31 }
 0x31e   : > { %3113 = vst.msk [vmem:[%s5324_s2 + $0x60] sm:$0xff] %vm1423_vm4, %v1445_v50  ;;  %v1493_v28 = vpack.c.bf16 %v1445_v50, %v1445_v50  ;;  %4495 = vmatprep.subr.bf16.mxu0 %v4941_v31  ;;  %v1794_v63 = vpop.permute.xlu0 %1793 }
 0x31f   : > { %v1799_v1 = vsel %vm1238_vm2, %v1794_v63, 0 }
 0x320   : > { %4480 = vmatmul.mubr.msk.bf16.vlgmr.msra.gmra.mrb[24].mxu1 %vm1423_vm4, %v1493_v28 }
 0x321   : > { %v4825_v32 = vpop.eup %4824  ;;  %4490 = vmatpush3.bf16.msra.mxu1 %v1641_v51  ;;  %4491 = vmatprep.mubr.msk.bf16.mxu1 %vm4942_vm1, %v4941_v31 }
 0x322   : > { %v1490_v53 = vmul.f32 %v4825_v32, %v4817_v30  ;;  %4501 = vmatprep.subr.bf16.mxu1 %v4941_v31  ;;  %v1791_v3 = vpop.permute.xlu0 %1790 }
 0x324   : > { %3109 = vst.msk [vmem:[%s5324_s2 + $0x40] sm:$0xff] %vm1423_vm4, %v1490_v53  ;;  %v1589_v58 = vpack.c.bf16 %v1490_v53, %v1490_v53 }
 0x326   : > { %4486 = vmatmul.mubr.msk.bf16.vlgmr.msra.gmra.mrb[20].mxu0 %vm1423_vm4, %v1589_v58 }
 0x327   : > { %4496 = vmatpush3.bf16.xpose.msra.mxu0 %v1695_v60  ;;  %4497 = vmatprep.mubr.msk.bf16.mxu0 %vm4942_vm1, %v4941_v31 }
 0x328   : > { %4507 = vmatprep.subr.bf16.mxu0 %v4941_v31 }
 0x32e   : > { %4498 = vmatmul.mubr.msk.bf16.vlgmr.msra.gmra.mrb[24].mxu0 %vm1238_vm2, %v1687_v0 }
 0x32f   : > { %4508 = vmatpush3.bf16.xpose.msra.mxu0 %v1799_v1  ;;  %4509 = vmatprep.mubr.msk.bf16.mxu0 %vm4942_vm1, %v4941_v31 }
 0x330   : > { %4519 = vmatprep.subr.bf16.mxu0 %v4941_v31 }
 0x336   : > { %4510 = vmatmul.mubr.msk.bf16.vlgmr.msra.gmra.mrb[28].mxu0 %vm1238_vm2, %v1791_v3 }
 0x337   : > { %4521 = vmatprep.mubr.msk.bf16.mxu0 %vm4942_vm1, %v4941_v31 }
 0x349   : > { %v1487_v5 = vpop.xlane.xlu1 %1486 }
 0x34a   : > { %4826 = vrcp.f32 %v1487_v5 }
 0x34d   : > { %v1739_v12 = vpop.permute.xlu1 %1738 }
 0x351   : > { %v1846_v16 = vpop.permute.xlu1 %1845 }
 0x352   : > { %v1851_v17 = vsel %vm1238_vm2, %v1846_v16, 0 }
 0x354   : > { %v4827_v6 = vpop.eup %4826 }
 0x355   : > { %v1491_v8 = vmul.f32 %v4827_v6, %v4819_v43  ;;  %v1843_v18 = vpop.permute.xlu1 %1842 }
 0x357   : > { %3121 = vst.msk [vmem:[%s5324_s2 + $0xa0] sm:$0xff] %vm1423_vm4, %v1491_v8  ;;  %v1590_v10 = vpack.c.bf16 %v1491_v8, %v1491_v8 }
 0x359   : > { %4492 = vmatmul.mubr.msk.bf16.vlgmr.msra.gmra.mrb[28].mxu1 %vm1423_vm4, %v1590_v10 }
 0x35a   : > { %4502 = vmatpush3.bf16.xpose.msra.mxu1 %v1747_v13  ;;  %4503 = vmatprep.mubr.msk.bf16.mxu1 %vm4942_vm1, %v4941_v31 }
 0x35b   : > { %4513 = vmatprep.subr.bf16.mxu1 %v4941_v31 }
 0x361   : > { %4504 = vmatmul.mubr.msk.bf16.vlgmr.msra.gmra.mrb[32].mxu1 %vm1238_vm2, %v1739_v12 }
 0x362   : > { %4514 = vmatpush3.bf16.xpose.msra.mxu1 %v1851_v17  ;;  %4515 = vmatprep.mubr.msk.bf16.mxu1 %vm4942_vm1, %v4941_v31 }
 0x363   : > { %4525 = vmatprep.subr.bf16.mxu1 %v4941_v31 }
 0x369   : > { %4516 = vmatmul.mubr.msk.bf16.vlgmr.msra.gmra.mrb[36].mxu1 %vm1238_vm2, %v1843_v18 }
 0x36a   : > { %4527 = vmatprep.mubr.msk.bf16.mxu1 %vm4942_vm1, %v4941_v31 }
 0x3ef   : > { %v5380_v20 = vpop.f32.mrb[16].mxu0 }
 0x3f0   : > { %v4475_v23 = vpop.f32.mrb[17].mxu0 }
 0x3f1   : > { %v1538_v25 = vpop.f32.mrb[18].mxu0 }
 0x3f2   : > { %v4476_v26 = vpop.f32.mrb[19].mxu0 }
 0x3f3   : > { %v5382_v27 = vpop.f32.mrb[24].mxu1 }
 0x3f4   : > { %v4481_v30 = vpop.f32.mrb[25].mxu1 }
 0x3f5   : > { %v1584_v36 = vpop.f32.mrb[26].mxu1 }
 0x3f6   : > { %v4482_v37 = vpop.f32.mrb[27].mxu1 }
 0x3f9   : > { %v5384_v40 = vpop.f32.mrb[20].mxu0 }
 0x3fa   : > { %v4487_v41 = vpop.f32.mrb[21].mxu0 }
 0x3fb   : > { %v1634_v43 = vpop.f32.mrb[22].mxu0 }
 0x3fc   : > { %v4488_v59 = vpop.f32.mrb[23].mxu0 }
 0x401   : > { %v1731_v54 = vpop.f32.mrb[24].mxu0 }
 0x402   : > { %v4499_v2 = vpop.f32.mrb[25].mxu0  ;;  %v1893_v11 = vsel %vm1423_vm4, %v1731_v54, -inf }
 0x403   : > { %1894 = vmax.xlane.f32.xlu0 %v1893_v11  ;;  %v1734_v22 = vpop.f32.mrb[26].mxu0 }
 0x404   : > { %v4500_v15 = vpop.f32.mrb[27].mxu0 }
 0x409   : > { %v5387_v24 = vpop.f32.mrb[28].mxu0 }
 0x40a   : > { %v4511_v45 = vpop.f32.mrb[29].mxu0  ;;  %v1937_v47 = vadd.f32 %v5387_v24, %v1731_v54 }
 0x40b   : > { %v1838_v50 = vpop.f32.mrb[30].mxu0 }
 0x40c   : > { %v4512_v28 = vpop.f32.mrb[31].mxu0  ;;  %v1939_v51 = vsel %vm1423_vm4, %v1937_v47, -inf }
 0x40d   : > { %1940 = vmax.xlane.f32.xlu0 %v1939_v51 }
 0x42c   : > { %v5391_v32 = vpop.f32.mrb[28].mxu1 }
 0x42d   : > { %v4493_v53 = vpop.f32.mrb[29].mxu1 }
 0x42e   : > { %v1680_v55 = vpop.f32.mrb[30].mxu1 }
 0x42f   : > { %v4494_v58 = vpop.f32.mrb[31].mxu1 }
 0x434   : > { %v1783_v60 = vpop.f32.mrb[32].mxu1 }
 0x435   : > { %v4505_v62 = vpop.f32.mrb[33].mxu1  ;;  %v1896_v63 = vsel %vm1423_vm4, %v1783_v60, -inf }
 0x436   : > { %1897 = vmax.xlane.f32.xlu1 %v1896_v63  ;;  %v1786_v0 = vpop.f32.mrb[34].mxu1 }
 0x437   : > { %v4506_v1 = vpop.f32.mrb[35].mxu1 }
 0x43c   : > { %v5394_v3 = vpop.f32.mrb[36].mxu1 }
 0x43d   : > { %v4517_v5 = vpop.f32.mrb[37].mxu1  ;;  %v1938_v6 = vadd.f32 %v5394_v3, %v1783_v60 }
 0x43e   : > { %v1890_v8 = vpop.f32.mrb[38].mxu1 }
 0x43f   : > { %v4518_v10 = vpop.f32.mrb[39].mxu1  ;;  %v1942_v12 = vsel %vm1423_vm4, %v1938_v6, -inf }
 0x440   : > { %1943 = vmax.xlane.f32.xlu0 %v1942_v12  ;;  %v773_v12 = vsub.s32 1, %v5187_v33 }
 0x490   : > { %v1895_v13 = vpop.xlane.xlu0 %1894 }
 0x491   : > { %v1899_v16 = vsub.f32 %v1731_v54, %v1895_v13 }
 0x493   : > { %v1901_v17 = vmul.f32 1.442695, %v1899_v16 }
 0x495   : > { %4828 = vpow2.f32 %v1901_v17 }
 0x49a   : > { %v1941_v18 = vpop.xlane.xlu0 %1940 }
 0x49b   : > { %v1945_v23 = vsub.f32 %v1937_v47, %v1941_v18 }
 0x49d   : > { %v1947_v25 = vmul.f32 1.442695, %v1945_v23 }
 0x49f   : > { %v4829_v26 = vpop.eup %4828  ;;  %4830 = vpow2.f32 %v1947_v25  ;;  %v789_v25 = vsub.s32 5, %v5187_v33 }
 0x4a0   : > { %v1905_v30 = vsel %vm1423_vm4, %v4829_v26, 0.0 }
 0x4a1   : > { %1906 = vadd.xlane.f32.xlu0 %v1905_v30 }
 0x4a9   : > { %v4831_v36 = vpop.eup %4830 }
 0x4aa   : > { %v1951_v37 = vsel %vm1423_vm4, %v4831_v36, 0.0 }
 0x4ab   : > { %1952 = vadd.xlane.f32.xlu0 %v1951_v37 }
 0x4c1   : > { %1964 = vrot.lane.b32.xlu0 %v5253_v19, %s4943_s30 }
 0x4c3   : > { %v1898_v41 = vpop.xlane.xlu1 %1897 }
 0x4c4   : > { %v1900_v43 = vsub.f32 %v1783_v60, %v1898_v41  ;;  %v781_v60 = vsub.s32 3, %v5187_v33 }
 0x4c6   : > { %v1903_v59 = vmul.f32 1.442695, %v1900_v43  ;;  %v782_v0 = vrot.slane %v5197_v39, %v781_v60  ;;  %v1019_v17 = vrot.slane %v5205_v44, %v781_v60  ;;  %v1011_v43 = vrot.slane %v5205_v44, %v773_v12 }
 0x4c8   : > { %4832 = vpow2.f32 %v1903_v59 }
 0x4cd   : > { %v1944_v11 = vpop.xlane.xlu0 %1943 }
 0x4ce   : > { %v1946_v22 = vsub.f32 %v1938_v6, %v1944_v11  ;;  %v941_v6 = vadd.f32 %v5210_v49, %v782_v0  ;;  %v774_v49 = vrot.slane %v5197_v39, %v773_v12 }
 0x4d0   : > { %v1949_v15 = vmul.f32 1.442695, %v1946_v22  ;;  %v5431_v16 = vpack.c.bf16 %v941_v6, %v941_v6  ;;  %v898_v30 = vadd.f32 %v5189_v35, %v774_v49  ;;  %v1134_v35 = vadd.f32 %v5237_v9, %v1011_v43 }
 0x4d1   : > { %v945_v22 = vadd.f32 %v5217_v56, %v782_v0  ;;  %v902_v56 = vadd.f32 %v5192_v38, %v774_v49  ;;  %v1138_v38 = vadd.f32 %v5243_v14, %v1011_v43 }
 0x4d2   : > { %v4833_v54 = vpop.eup %4832  ;;  %4834 = vpow2.f32 %v1949_v15  ;;  %v2181_v23 = vsel %vm1238_vm2, %v5431_v16, 0  ;;  %v5453_v41 = vpack.c.bf16 %v898_v30, %v898_v30 }
 0x4d3   : > { %v1908_v2 = vsel %vm1423_vm4, %v4833_v54, 0.0 }
 0x4d4   : > { %1909 = vadd.xlane.f32.xlu1 %v1908_v2 }
 0x4dc   : > { %v5407_v19 = vpop.eup %4834 }
 0x4dd   : > { %v1954_v45 = vsel %vm1423_vm4, %v5407_v19, 0.0 }
 0x4e5   : > { %2013 = vrot.lane.b32.xlu1 %v5260_v21, %s4943_s30 }
 0x4e9   : > { %2066 = vrot.lane.b32.xlu1 %v5328_v7, %s4943_s30 }
 0x50d   : > { %1955 = vadd.xlane.f32.xlu1 %v1954_v45  ;;  %v5479_v45 = vpack.c.bf16 %v945_v22, %v945_v22 }
 0x51e   : > { %2115 = vrot.lane.b32.xlu1 %v5336_v48, %s4943_s30 }
 0x52e   : > { %v1907_v47 = vpop.xlane.xlu0 %1906 }
 0x52f   : > { %4836 = vrcp.f32 %v1907_v47 }
 0x538   : > { %v1953_v21 = vpop.xlane.xlu0 %1952 }
 0x539   : > { %v4837_v50 = vpop.eup %4836  ;;  %4838 = vrcp.f32 %v1953_v21 }
 0x53a   : > { %v1913_v7 = vmul.f32 %v4837_v50, %v4829_v26  ;;  %v1177_v26 = vadd.f32 %v5223_v61, %v1019_v17  ;;  %v2227_v50 = vsel %vm1238_vm2, %v5479_v45, 0 }
 0x53c   : > { %3102 = vst.msk [vmem:[%s5324_s2 + $0x8] sm:$0xff] %vm1423_vm4, %v1913_v7  ;;  %v1965_v28 = vpop.permute.xlu0 %1964  ;;  %v1961_v53 = vpack.c.bf16 %v1913_v7, %v1913_v7  ;;  %v5451_v37 = vpack.c.bf16 %v1177_v26, %v1177_v26  ;;  %v1181_v7 = vadd.f32 %v5231_v4, %v1019_v17 }
 0x53d   : > { %v1970_v51 = vsel %vm1497_vm3, %v1965_v28, 0 }
 0x53e   : > { %4520 = vmatpush3.bf16.msra.mxu0 %v1970_v51  ;;  %v2273_v61 = vsel %vm1238_vm2, %v5451_v37, 0  ;;  %v5492_v28 = vpack.c.bf16 %v1181_v7, %v1181_v7 }
 0x53f   : > { %4531 = vmatprep.subr.bf16.mxu0 %v4941_v31 }
 0x541   : > { %4522 = vmatmul.mubr.msk.bf16.vlgmr.msra.gmra.mrb[32].mxu0 %vm1423_vm4, %v1961_v53  ;;  %v2319_v53 = vsel %vm1238_vm2, %v5492_v28, 0 }
 0x542   : > { %4533 = vmatprep.mubr.msk.bf16.mxu0 %vm4942_vm1, %v4941_v31 }
 0x543   : > { %v4839_v48 = vpop.eup %4838 }
 0x544   : > { %v1959_v55 = vmul.f32 %v4839_v48, %v4831_v36  ;;  %v790_v36 = vrot.slane %v5197_v39, %v789_v25  ;;  %v5507_v48 = vpack.c.bf16 %v1138_v38, %v1138_v38 }
 0x546   : > { %3110 = vst.msk [vmem:[%s5324_s2 + $0x48] sm:$0xff] %vm1423_vm4, %v1959_v55  ;;  %v2063_v10 = vpack.c.bf16 %v1959_v55, %v1959_v55  ;;  %v984_v59 = vadd.f32 %v5200_v42, %v790_v36  ;;  %v988_v51 = vadd.f32 %v5208_v46, %v790_v36 }
 0x548   : > { %v5465_v39 = vpack.c.bf16 %v984_v59, %v984_v59  ;;  %v5505_v4 = vpack.c.bf16 %v988_v51, %v988_v51 }
 0x54a   : > { %v2435_v42 = vsel %vm1497_vm3, %v5465_v39, 0  ;;  %v2481_v46 = vsel %vm1497_vm3, %v5505_v4, 0 }
 0x561   : > { %v1910_v58 = vpop.xlane.xlu1 %1909 }
 0x562   : > { %4840 = vrcp.f32 %v1910_v58 }
 0x565   : > { %v2014_v62 = vpop.permute.xlu1 %2013 }
 0x566   : > { %v2019_v63 = vsel %vm1497_vm3, %v2014_v62, 0 }
 0x567   : > { %4526 = vmatpush3.bf16.msra.mxu1 %v2019_v63 }
 0x568   : > { %4537 = vmatprep.subr.bf16.mxu1 %v4941_v31 }
 0x569   : > { %v2067_v1 = vpop.permute.xlu1 %2066 }
 0x56a   : > { %v2072_v5 = vsel %vm1497_vm3, %v2067_v1, 0 }
 0x56b   : > { %4532 = vmatpush3.bf16.msra.mxu0 %v2072_v5 }
 0x56c   : > { %v4841_v8 = vpop.eup %4840  ;;  %4543 = vmatprep.subr.bf16.mxu0 %v4941_v31 }
 0x56d   : > { %v1914_v13 = vmul.f32 %v4841_v8, %v4833_v54  ;;  %v5467_v54 = vpack.c.bf16 %v1134_v35, %v1134_v35 }
 0x56e   : > { %4534 = vmatmul.mubr.msk.bf16.vlgmr.msra.gmra.mrb[36].mxu0 %vm1423_vm4, %v2063_v10 }
 0x56f   : > { %3114 = vst.msk [vmem:[%s5324_s2 + $0x68] sm:$0xff] %vm1423_vm4, %v1914_v13  ;;  %v1962_v18 = vpack.c.bf16 %v1914_v13, %v1914_v13  ;;  %4545 = vmatprep.mubr.msk.bf16.mxu0 %vm4942_vm1, %v4941_v31 }
 0x571   : > { %4528 = vmatmul.mubr.msk.bf16.vlgmr.msra.gmra.mrb[40].mxu1 %vm1423_vm4, %v1962_v18 }
 0x572   : > { %4539 = vmatprep.mubr.msk.bf16.mxu1 %vm4942_vm1, %v4941_v31 }
 0x574   : > { %4544 = vmatpush3.bf16.xpose.msra.mxu0 %v2181_v23 }
 0x575   : > { %4555 = vmatprep.subr.bf16.mxu0 %v4941_v31 }
 0x57b   : > { %4546 = vmatmul.mubr.msk.bf16.vlgmr.msra.gmra.mrb[40].mxu0 %vm1238_vm2, %v5453_v41 }
 0x57c   : > { %4556 = vmatpush3.bf16.xpose.msra.mxu0 %v2273_v61  ;;  %4557 = vmatprep.mubr.msk.bf16.mxu0 %vm4942_vm1, %v4941_v31 }
 0x57d   : > { %4567 = vmatprep.subr.bf16.mxu0 %v4941_v31 }
 0x583   : > { %4558 = vmatmul.mubr.msk.bf16.vlgmr.msra.gmra.mrb[44].mxu0 %vm1238_vm2, %v5467_v54 }
 0x584   : > { %4568 = vmatpush3.bf16.msra.mxu0 %v2435_v42  ;;  %4569 = vmatprep.mubr.msk.bf16.mxu0 %vm4942_vm1, %v4941_v31 }
 0x585   : > { %4579 = vmatprep.subr.bf16.mxu0 %v4941_v31 }
 0x59a   : > { %v1956_v9 = vpop.xlane.xlu1 %1955 }
 0x59b   : > { %4842 = vrcp.f32 %v1956_v9 }
 0x59e   : > { %v2116_v2 = vpop.permute.xlu1 %2115 }
 0x59f   : > { %v2121_v11 = vsel %vm1497_vm3, %v2116_v2, 0 }
 0x5a0   : > { %4538 = vmatpush3.bf16.msra.mxu1 %v2121_v11 }
 0x5a1   : > { %4549 = vmatprep.subr.bf16.mxu1 %v4941_v31 }
 0x5a5   : > { %v4843_v15 = vpop.eup %4842 }
 0x5a6   : > { %v1960_v47 = vmul.f32 %v4843_v15, %v5407_v19  ;;  %v5494_v19 = vpack.c.bf16 %v902_v56, %v902_v56 }
 0x5a8   : > { %3122 = vst.msk [vmem:[%s5324_s2 + $0xa8] sm:$0xff] %vm1423_vm4, %v1960_v47  ;;  %v2064_v21 = vpack.c.bf16 %v1960_v47, %v1960_v47 }
 0x5aa   : > { %4540 = vmatmul.mubr.msk.bf16.vlgmr.msra.gmra.mrb[44].mxu1 %vm1423_vm4, %v2064_v21 }
 0x5ab   : > { %4550 = vmatpush3.bf16.xpose.msra.mxu1 %v2227_v50  ;;  %4551 = vmatprep.mubr.msk.bf16.mxu1 %vm4942_vm1, %v4941_v31 }
 0x5ac   : > { %4561 = vmatprep.subr.bf16.mxu1 %v4941_v31 }
 0x5b2   : > { %4552 = vmatmul.mubr.msk.bf16.vlgmr.msra.gmra.mrb[48].mxu1 %vm1238_vm2, %v5494_v19 }
 0x5b3   : > { %4562 = vmatpush3.bf16.xpose.msra.mxu1 %v2319_v53  ;;  %4563 = vmatprep.mubr.msk.bf16.mxu1 %vm4942_vm1, %v4941_v31 }
 0x5b4   : > { %4573 = vmatprep.subr.bf16.mxu1 %v4941_v31 }
 0x5ba   : > { %4564 = vmatmul.mubr.msk.bf16.vlgmr.msra.gmra.mrb[52].mxu1 %vm1238_vm2, %v5507_v48 }
 0x5bb   : > { %4574 = vmatpush3.bf16.msra.mxu1 %v2481_v46  ;;  %4575 = vmatprep.mubr.msk.bf16.mxu1 %vm4942_vm1, %v4941_v31 }
 0x5bc   : > { %4585 = vmatprep.subr.bf16.mxu1 %v4941_v31 }
 0x614   : > { %v5516_v55 = vpop.f32.mrb[32].mxu0 }
 0x615   : > { %v4523_v14 = vpop.f32.mrb[33].mxu0 }
 0x616   : > { %v2009_v58 = vpop.f32.mrb[34].mxu0 }
 0x617   : > { %v4524_v60 = vpop.f32.mrb[35].mxu0 }
 0x641   : > { %v5518_v62 = vpop.f32.mrb[36].mxu0 }
 0x642   : > { %v4535_v63 = vpop.f32.mrb[37].mxu0 }
 0x643   : > { %v2111_v0 = vpop.f32.mrb[38].mxu0 }
 0x644   : > { %v5520_v1 = vpop.f32.mrb[40].mxu1  ;;  %v4536_v5 = vpop.f32.mrb[39].mxu0 }
 0x645   : > { %v4529_v6 = vpop.f32.mrb[41].mxu1 }
 0x646   : > { %v2058_v8 = vpop.f32.mrb[42].mxu1 }
 0x647   : > { %v4530_v10 = vpop.f32.mrb[43].mxu1 }
 0x64e   : > { %v2217_v12 = vpop.f32.mrb[40].mxu0 }
 0x64f   : > { %v4547_v13 = vpop.f32.mrb[41].mxu0  ;;  %v2361_v17 = vsel %vm1423_vm4, %v2217_v12, -inf }
 0x650   : > { %2362 = vmax.xlane.f32.xlu0 %v2361_v17  ;;  %v2220_v18 = vpop.f32.mrb[42].mxu0 }
 0x651   : > { %v4548_v49 = vpop.f32.mrb[43].mxu0 }
 0x656   : > { %v5523_v23 = vpop.f32.mrb[44].mxu0 }
 0x657   : > { %v4559_v26 = vpop.f32.mrb[45].mxu0  ;;  %v2405_v30 = vadd.f32 %v5523_v23, %v2217_v12 }
 0x658   : > { %v2312_v36 = vpop.f32.mrb[46].mxu0 }
 0x659   : > { %v4560_v43 = vpop.f32.mrb[47].mxu0  ;;  %v2407_v59 = vsel %vm1423_vm4, %v2405_v30, -inf }
 0x65a   : > { %2408 = vmax.xlane.f32.xlu0 %v2407_v59 }
 0x67d   : > { %v5527_v61 = vpop.f32.mrb[44].mxu1 }
 0x67e   : > { %v4541_v35 = vpop.f32.mrb[45].mxu1 }
 0x67f   : > { %v2160_v42 = vpop.f32.mrb[46].mxu1 }
 0x680   : > { %v4542_v9 = vpop.f32.mrb[47].mxu1 }
 0x685   : > { %v2263_v2 = vpop.f32.mrb[48].mxu1 }
 0x686   : > { %v4553_v11 = vpop.f32.mrb[49].mxu1  ;;  %v2364_v22 = vsel %vm1423_vm4, %v2263_v2, -inf }
 0x687   : > { %2365 = vmax.xlane.f32.xlu1 %v2364_v22  ;;  %v2266_v15 = vpop.f32.mrb[50].mxu1 }
 0x688   : > { %v4554_v47 = vpop.f32.mrb[51].mxu1 }
 0x68d   : > { %v5530_v21 = vpop.f32.mrb[52].mxu1 }
 0x68e   : > { %v4565_v50 = vpop.f32.mrb[53].mxu1  ;;  %v2406_v7 = vadd.f32 %v5530_v21, %v2263_v2 }
 0x68f   : > { %v2358_v56 = vpop.f32.mrb[54].mxu1 }
 0x690   : > { %v4566_v51 = vpop.f32.mrb[55].mxu1  ;;  %v2410_v53 = vsel %vm1423_vm4, %v2406_v7, -inf }
 0x691   : > { %2411 = vmax.xlane.f32.xlu0 %v2410_v53 }
 0x6dd   : > { %v2363_v38 = vpop.xlane.xlu0 %2362 }
 0x6de   : > { %v2367_v46 = vsub.f32 %v2217_v12, %v2363_v38 }
 0x6e0   : > { %v2369_v14 = vmul.f32 1.442695, %v2367_v46 }
 0x6e2   : > { %4844 = vpow2.f32 %v2369_v14 }
 0x6e7   : > { %v2409_v58 = vpop.xlane.xlu0 %2408 }
 0x6e8   : > { %v2413_v60 = vsub.f32 %v2405_v30, %v2409_v58 }
 0x6ea   : > { %v2415_v63 = vmul.f32 1.442695, %v2413_v60 }
 0x6ec   : > { %v4845_v0 = vpop.eup %4844  ;;  %4846 = vpow2.f32 %v2415_v63 }
 0x6ed   : > { %v2373_v5 = vsel %vm1423_vm4, %v4845_v0, 0.0 }
 0x6ee   : > { %2374 = vadd.xlane.f32.xlu0 %v2373_v5 }
 0x6f6   : > { %v4847_v6 = vpop.eup %4846 }
 0x6f7   : > { %v2419_v8 = vsel %vm1423_vm4, %v4847_v6, 0.0 }
 0x6f8   : > { %2420 = vadd.xlane.f32.xlu0 %v2419_v8 }
 0x70e   : > { %2625 = vrot.lane.b32.xlu0 %v5431_v16, %s4943_s30 }
 0x712   : > { %2729 = vrot.lane.b32.xlu0 %v5451_v37, %s4943_s30 }
 0x714   : > { %v2366_v10 = vpop.xlane.xlu1 %2365 }
 0x715   : > { %v2368_v12 = vsub.f32 %v2263_v2, %v2366_v10 }
 0x716   : > { %2726 = vrot.lane.b32.xlu0 %v5467_v54, %s4943_s30 }
 0x717   : > { %v2371_v13 = vmul.f32 1.442695, %v2368_v12 }
 0x719   : > { %4848 = vpow2.f32 %v2371_v13 }
 0x71e   : > { %v2412_v16 = vpop.xlane.xlu0 %2411 }
 0x71f   : > { %v2414_v49 = vsub.f32 %v2406_v7, %v2412_v16 }
 0x721   : > { %v2417_v37 = vmul.f32 1.442695, %v2414_v49 }
 0x723   : > { %v4849_v17 = vpop.eup %4848  ;;  %4850 = vpow2.f32 %v2417_v37 }
 0x724   : > { %v2376_v18 = vsel %vm1423_vm4, %v4849_v17, 0.0 }
 0x725   : > { %2377 = vadd.xlane.f32.xlu1 %v2376_v18 }
 0x72d   : > { %v4851_v26 = vpop.eup %4850 }
 0x72e   : > { %v2422_v54 = vsel %vm1423_vm4, %v4851_v26, 0.0 }
 0x736   : > { %2677 = vrot.lane.b32.xlu1 %v5479_v45, %s4943_s30 }
 0x73a   : > { %2622 = vrot.lane.b32.xlu1 %v5453_v41, %s4943_s30  ;;  %v1027_v41 = vrot.slane %v5205_v44, %v789_v25 }
 0x73c   : > { %v1220_v30 = vadd.f32 %v5284_v29, %v1027_v41  ;;  %v1224_v11 = vadd.f32 %v5288_v34, %v1027_v41 }
 0x73e   : > { %v5558_v59 = vpack.c.bf16 %v1220_v30, %v1220_v30  ;;  %v5581_v50 = vpack.c.bf16 %v1224_v11, %v1224_v11 }
 0x740   : > { %v2577_v34 = vsel %vm1497_vm3, %v5581_v50, 0 }
 0x75e   : > { %2423 = vadd.xlane.f32.xlu1 %v2422_v54 }
 0x76f   : > { %2674 = vrot.lane.b32.xlu1 %v5494_v19, %s4943_s30 }
 0x773   : > { %2781 = vrot.lane.b32.xlu1 %v5492_v28, %s4943_s30 }
 0x777   : > { %2778 = vrot.lane.b32.xlu1 %v5507_v48, %s4943_s30  ;;  %v2531_v48 = vsel %vm1497_vm3, %v5558_v59, 0 }
 0x77b   : > { %v2375_v45 = vpop.xlane.xlu0 %2374 }
 0x77c   : > { %4852 = vrcp.f32 %v2375_v45 }
 0x785   : > { %v2421_v36 = vpop.xlane.xlu0 %2420 }
 0x786   : > { %v4853_v43 = vpop.eup %4852  ;;  %4854 = vrcp.f32 %v2421_v36 }
 0x787   : > { %v2381_v19 = vmul.f32 %v4853_v43, %v4845_v0 }
 0x789   : > { %3103 = vst.msk [vmem:[%s5324_s2 + $0x10] sm:$0xff] %vm1423_vm4, %v2381_v19  ;;  %v2429_v28 = vpack.c.bf16 %v2381_v19, %v2381_v19  ;;  %v2626_v29 = vpop.permute.xlu0 %2625 }
 0x78a   : > { %v2631_v35 = vsel %vm1238_vm2, %v2626_v29, 0 }
 0x78b   : > { %4570 = vmatmul.mubr.msk.bf16.vlgmr.msra.gmra.mrb[48].mxu0 %vm1423_vm4, %v2429_v28 }
 0x78c   : > { %4580 = vmatpush3.bf16.msra.mxu0 %v2531_v48  ;;  %4581 = vmatprep.mubr.msk.bf16.mxu0 %vm4942_vm1, %v4941_v31 }
 0x78d   : > { %4591 = vmatprep.subr.bf16.mxu0 %v4941_v31  ;;  %v2730_v2 = vpop.permute.xlu0 %2729 }
 0x78e   : > { %v2735_v15 = vsel %vm1238_vm2, %v2730_v2, 0 }
 0x790   : > { %v4855_v33 = vpop.eup %4854 }
 0x791   : > { %v2427_v44 = vmul.f32 %v4855_v33, %v4847_v6  ;;  %v2727_v51 = vpop.permute.xlu0 %2726 }
 0x793   : > { %3111 = vst.msk [vmem:[%s5324_s2 + $0x50] sm:$0xff] %vm1423_vm4, %v2427_v44  ;;  %v2525_v25 = vpack.c.bf16 %v2427_v44, %v2427_v44 }
 0x795   : > { %4582 = vmatmul.mubr.msk.bf16.vlgmr.msra.gmra.mrb[52].mxu0 %vm1423_vm4, %v2525_v25 }
 0x796   : > { %4592 = vmatpush3.bf16.xpose.msra.mxu0 %v2631_v35  ;;  %4593 = vmatprep.mubr.msk.bf16.mxu0 %vm4942_vm1, %v4941_v31 }
 0x797   : > { %4603 = vmatprep.subr.bf16.mxu0 %v4941_v31 }
 0x7b2   : > { %v2378_v42 = vpop.xlane.xlu1 %2377 }
 0x7b3   : > { %4856 = vrcp.f32 %v2378_v42 }
 0x7b6   : > { %v2678_v9 = vpop.permute.xlu1 %2677 }
 0x7b7   : > { %v2683_v60 = vsel %vm1238_vm2, %v2678_v9, 0 }
 0x7ba   : > { %v2623_v22 = vpop.permute.xlu1 %2622 }
 0x7bb   : > { %4594 = vmatmul.mubr.msk.bf16.vlgmr.msra.gmra.mrb[56].mxu0 %vm1238_vm2, %v2623_v22 }
 0x7bc   : > { %4604 = vmatpush3.bf16.xpose.msra.mxu0 %v2735_v15  ;;  %4605 = vmatprep.mubr.msk.bf16.mxu0 %vm4942_vm1, %v4941_v31 }
 0x7bd   : > { %v4857_v47 = vpop.eup %4856  ;;  %4615 = vmatprep.subr.bf16.mxu0 %v4941_v31 }
 0x7be   : > { %v2382_v7 = vmul.f32 %v4857_v47, %v4849_v17 }
 0x7c0   : > { %3115 = vst.msk [vmem:[%s5324_s2 + $0x70] sm:$0xff] %vm1423_vm4, %v2382_v7  ;;  %v2430_v56 = vpack.c.bf16 %v2382_v7, %v2382_v7 }
 0x7c2   : > { %4576 = vmatmul.mubr.msk.bf16.vlgmr.msra.gmra.mrb[56].mxu1 %vm1423_vm4, %v2430_v56 }
 0x7c3   : > { %4586 = vmatpush3.bf16.msra.mxu1 %v2577_v34  ;;  %4606 = vmatmul.mubr.msk.bf16.vlgmr.msra.gmra.mrb[60].mxu0 %vm1238_vm2, %v2727_v51 }
 0x7c4   : > { %4587 = vmatprep.mubr.msk.bf16.mxu1 %vm4942_vm1, %v4941_v31  ;;  %4597 = vmatprep.subr.bf16.mxu1 %v4941_v31 }
 0x7c5   : > { %4617 = vmatprep.mubr.msk.bf16.mxu0 %vm4942_vm1, %v4941_v31 }
 0x7eb   : > { %v2424_v53 = vpop.xlane.xlu1 %2423 }
 0x7ec   : > { %4858 = vrcp.f32 %v2424_v53 }
 0x7ef   : > { %v2675_v58 = vpop.permute.xlu1 %2674 }
 0x7f3   : > { %v2782_v63 = vpop.permute.xlu1 %2781 }
 0x7f4   : > { %v2787_v0 = vsel %vm1238_vm2, %v2782_v63, 0 }
 0x7f6   : > { %v4859_v38 = vpop.eup %4858 }
 0x7f7   : > { %v2428_v46 = vmul.f32 %v4859_v38, %v4851_v26  ;;  %v2779_v5 = vpop.permute.xlu1 %2778 }
 0x7f9   : > { %3123 = vst.msk [vmem:[%s5324_s2 + $0xb0] sm:$0xff] %vm1423_vm4, %v2428_v46  ;;  %v2526_v14 = vpack.c.bf16 %v2428_v46, %v2428_v46 }
 0x7fb   : > { %4588 = vmatmul.mubr.msk.bf16.vlgmr.msra.gmra.mrb[60].mxu1 %vm1423_vm4, %v2526_v14 }
 0x7fc   : > { %4598 = vmatpush3.bf16.xpose.msra.mxu1 %v2683_v60  ;;  %4599 = vmatprep.mubr.msk.bf16.mxu1 %vm4942_vm1, %v4941_v31 }
 0x7fd   : > { %4609 = vmatprep.subr.bf16.mxu1 %v4941_v31 }
 0x803   : > { %4600 = vmatmul.mubr.msk.bf16.vlgmr.msra.gmra.mrb[64].mxu1 %vm1238_vm2, %v2675_v58 }
 0x804   : > { %4610 = vmatpush3.bf16.xpose.msra.mxu1 %v2787_v0  ;;  %4611 = vmatprep.mubr.msk.bf16.mxu1 %vm4942_vm1, %v4941_v31 }
 0x805   : > { %4621 = vmatprep.subr.bf16.mxu1 %v4941_v31 }
 0x80b   : > { %4612 = vmatmul.mubr.msk.bf16.vlgmr.msra.gmra.mrb[68].mxu1 %vm1238_vm2, %v2779_v5 }
 0x80c   : > { %4623 = vmatprep.mubr.msk.bf16.mxu1 %vm4942_vm1, %v4941_v31 }
 0x85e   : > { %v5609_v6 = vpop.f32.mrb[48].mxu0 }
 0x85f   : > { %v4571_v8 = vpop.f32.mrb[49].mxu0 }
 0x860   : > { %v2474_v10 = vpop.f32.mrb[50].mxu0 }
 0x861   : > { %v4572_v12 = vpop.f32.mrb[51].mxu0 }
 0x868   : > { %v5611_v13 = vpop.f32.mrb[52].mxu0 }
 0x869   : > { %v4583_v17 = vpop.f32.mrb[53].mxu0 }
 0x86a   : > { %v2570_v18 = vpop.f32.mrb[54].mxu0 }
 0x86b   : > { %v4584_v16 = vpop.f32.mrb[55].mxu0 }
 0x88e   : > { %v2667_v49 = vpop.f32.mrb[56].mxu0 }
 0x88f   : > { %v4595_v37 = vpop.f32.mrb[57].mxu0  ;;  %v2829_v26 = vsel %vm1423_vm4, %v2667_v49, -inf }
 0x890   : > { %2830 = vmax.xlane.f32.xlu0 %v2829_v26  ;;  %v2670_v54 = vpop.f32.mrb[58].mxu0 }
 0x891   : > { %v4596_v45 = vpop.f32.mrb[59].mxu0 }
 0x895   : > { %v5614_v41 = vpop.f32.mrb[56].mxu1 }
 0x896   : > { %v4577_v30 = vpop.f32.mrb[57].mxu1  ;;  %v5616_v36 = vpop.f32.mrb[60].mxu0 }
 0x897   : > { %v2520_v43 = vpop.f32.mrb[58].mxu1  ;;  %v4607_v19 = vpop.f32.mrb[61].mxu0  ;;  %v2873_v28 = vadd.f32 %v5616_v36, %v2667_v49 }
 0x898   : > { %v4578_v48 = vpop.f32.mrb[59].mxu1  ;;  %v2774_v33 = vpop.f32.mrb[62].mxu0 }
 0x899   : > { %v4608_v44 = vpop.f32.mrb[63].mxu0  ;;  %v2875_v29 = vsel %vm1423_vm4, %v2873_v28, -inf }
 0x89a   : > { %2876 = vmax.xlane.f32.xlu0 %v2875_v29 }
 0x8ce   : > { %v5620_v25 = vpop.f32.mrb[60].mxu1 }
 0x8cf   : > { %v4589_v35 = vpop.f32.mrb[61].mxu1 }
 0x8d0   : > { %v2616_v42 = vpop.f32.mrb[62].mxu1 }
 0x8d1   : > { %v4590_v9 = vpop.f32.mrb[63].mxu1 }
 0x8d6   : > { %v2719_v2 = vpop.f32.mrb[64].mxu1 }
 0x8d7   : > { %v4601_v11 = vpop.f32.mrb[65].mxu1  ;;  %v2832_v22 = vsel %vm1423_vm4, %v2719_v2, -inf }
 0x8d8   : > { %2833 = vmax.xlane.f32.xlu1 %v2832_v22  ;;  %v2722_v15 = vpop.f32.mrb[66].mxu1 }
 0x8d9   : > { %v4602_v47 = vpop.f32.mrb[67].mxu1 }
 0x8de   : > { %v5623_v7 = vpop.f32.mrb[68].mxu1 }
 0x8df   : > { %v4613_v56 = vpop.f32.mrb[69].mxu1  ;;  %v2874_v34 = vadd.f32 %v5623_v7, %v2719_v2 }
 0x8e0   : > { %v2826_v51 = vpop.f32.mrb[70].mxu1 }
 0x8e1   : > { %v4614_v53 = vpop.f32.mrb[71].mxu1  ;;  %v2878_v38 = vsel %vm1423_vm4, %v2874_v34, -inf }
 0x8e2   : > { %2879 = vmax.xlane.f32.xlu0 %v2878_v38 }
 0x91d   : > { %v2831_v46 = vpop.xlane.xlu0 %2830 }
 0x91e   : > { %v2835_v14 = vsub.f32 %v2667_v49, %v2831_v46 }
 0x920   : > { %v2837_v58 = vmul.f32 1.442695, %v2835_v14 }
 0x922   : > { %4860 = vpow2.f32 %v2837_v58 }
 0x927   : > { %v2877_v60 = vpop.xlane.xlu0 %2876 }
 0x928   : > { %v2881_v63 = vsub.f32 %v2873_v28, %v2877_v60 }
 0x92a   : > { %v2883_v0 = vmul.f32 1.442695, %v2881_v63 }
 0x92c   : > { %v4861_v5 = vpop.eup %4860  ;;  %4862 = vpow2.f32 %v2883_v0 }
 0x92d   : > { %v2841_v8 = vsel %vm1423_vm4, %v4861_v5, 0.0 }
 0x92e   : > { %2842 = vadd.xlane.f32.xlu0 %v2841_v8  ;;  %v4760_v8 = vld [vmem:[%s6126_s24 + $0x40] sm:$0xff]  }
 0x936   : > { %v4863_v10 = vpop.eup %4862 }
 0x937   : > { %v2887_v12 = vsel %vm1423_vm4, %v4863_v10, 0.0 }
 0x938   : > { %2888 = vadd.xlane.f32.xlu0 %v2887_v12  ;;  %v4762_v12 = vld [vmem:[%s6127_s7 + $0x48] sm:$0xff]  }
 0x94e   : > { %2900 = vrot.lane.b32.xlu0 %v5465_v39, %s4943_s30 }
 0x965   : > { %v2834_v17 = vpop.xlane.xlu1 %2833 }
 0x966   : > { %v2836_v18 = vsub.f32 %v2719_v2, %v2834_v17  ;;  %v4764_v17 = vld [vmem:[%s6127_s7 + $0x50] sm:$0xff]  }
 0x968   : > { %v2839_v16 = vmul.f32 1.442695, %v2836_v18  ;;  %v4765_v18 = vld [vmem:[%s6127_s7 + $0x10] sm:$0xff]  }
 0x96a   : > { %4864 = vpow2.f32 %v2839_v16  ;;  %v4766_v16 = vld [vmem:[%s6127_s7 + $0x58] sm:$0xff]  }
 0x96f   : > { %v2880_v26 = vpop.xlane.xlu0 %2879 }
 0x970   : > { %v2882_v54 = vsub.f32 %v2874_v34, %v2880_v26  ;;  %v4769_v26 = vld [vmem:[%s6127_s7 + $0x20] sm:$0xff]  }
 0x972   : > { %v2885_v45 = vmul.f32 1.442695, %v2882_v54  ;;  %v4770_v54 = vld [vmem:[%s6127_s7 + $0x68] sm:$0xff]  }
 0x974   : > { %v4865_v49 = vpop.eup %4864  ;;  %4866 = vpow2.f32 %v2885_v45  ;;  %v4771_v45 = vld [vmem:[%s6127_s7 + $0x28] sm:$0xff]  }
 0x975   : > { %v2844_v37 = vsel %vm1423_vm4, %v4865_v49, 0.0 }
 0x976   : > { %2845 = vadd.xlane.f32.xlu1 %v2844_v37  ;;  %v4768_v37 = vld [vmem:[%s6127_s7 + $0x60] sm:$0xff]  }
 0x97e   : > { %v4867_v39 = vpop.eup %4866 }
 0x97f   : > { %v2890_v30 = vsel %vm1423_vm4, %v4867_v39, 0.0 }
 0x987   : > { %2949 = vrot.lane.b32.xlu1 %v5505_v4, %s4943_s30 }
 0x98b   : > { %3002 = vrot.lane.b32.xlu1 %v5558_v59, %s4943_s30 }
 0x9af   : > { %2891 = vadd.xlane.f32.xlu1 %v2890_v30  ;;  %v4773_v30 = vld [vmem:[%s6127_s7 + $0x30] sm:$0xff]  }
 0x9bb   : > { %v2843_v43 = vpop.xlane.xlu0 %2842 }
 0x9bc   : > { %4868 = vrcp.f32 %v2843_v43  ;;  %v4774_v43 = vld [vmem:[%s6127_s7 + $0x78] sm:$0xff]  }
 0x9c0   : > { %3051 = vrot.lane.b32.xlu1 %v5581_v50, %s4943_s30 }
 0x9c5   : > { %v2889_v19 = vpop.xlane.xlu0 %2888 }
 0x9c6   : > { %v4869_v4 = vpop.eup %4868  ;;  %4870 = vrcp.f32 %v2889_v19  ;;  %v4775_v19 = vld [vmem:[%s6127_s7 + $0x38] sm:$0xff]  }
 0x9c7   : > { %v2849_v28 = vmul.f32 %v4869_v4, %v4861_v5  ;;  %v2061_v5 = vpack.c.bf16 %v5516_v55, %v5516_v55  ;;  %v4763_v55 = vld [vmem:[%s6127_s7 + $0x8] sm:$0xff]  }
 0x9c9   : > { %3104 = vst.msk [vmem:[%s5324_s2 + $0x18] sm:$0xff] %vm1423_vm4, %v2849_v28  ;;  %v2901_v59 = vpop.permute.xlu0 %2900  ;;  %v2897_v33 = vpack.c.bf16 %v2849_v28, %v2849_v28  ;;  %v4776_v28 = vld [vmem:[%s6080_s8 + $0x40] sm:$0xff]  }
 0x9ca   : > { %v2906_v48 = vsel %vm1497_vm3, %v2901_v59, 0  ;;  %v4777_v59 = vld [vmem:[%s6080_s8] sm:$0xff]  }
 0x9cb   : > { %4616 = vmatpush3.bf16.msra.mxu0 %v2906_v48  ;;  %v4778_v48 = vld [vmem:[%s6080_s8 + $0x48] sm:$0xff]  }
 0x9cc   : > { %4627 = vmatprep.subr.bf16.mxu0 %v4941_v31 }
 0x9ce   : > { %4618 = vmatmul.mubr.msk.bf16.vlgmr.msra.gmra.mrb[64].mxu0 %vm1423_vm4, %v2897_v33 }
 0x9cf   : > { %4629 = vmatprep.mubr.msk.bf16.mxu0 %vm4942_vm1, %v4941_v31 }
 0x9d0   : > { %v4871_v44 = vpop.eup %4870 }
 0x9d1   : > { %v2895_v50 = vmul.f32 %v4871_v44, %v4863_v10  ;;  %v4761_v10 = vld [vmem:[%s6127_s7] sm:$0xff]  }
 0x9d3   : > { %3112 = vst.msk [vmem:[%s5324_s2 + $0x58] sm:$0xff] %vm1423_vm4, %v2895_v50  ;;  %v2999_v22 = vpack.c.bf16 %v2895_v50, %v2895_v50 }
 0xa03   : > { %v2846_v29 = vpop.xlane.xlu1 %2845 }
 0xa04   : > { %4872 = vrcp.f32 %v2846_v29 }
 0xa07   : > { %v2950_v35 = vpop.permute.xlu1 %2949 }
 0xa08   : > { %v2955_v42 = vsel %vm1497_vm3, %v2950_v35, 0 }
 0xa09   : > { %4622 = vmatpush3.bf16.msra.mxu1 %v2955_v42  ;;  %v4779_v42 = vld [vmem:[%s6080_s8 + $0x8] sm:$0xff]  }
 0xa0a   : > { %4633 = vmatprep.subr.bf16.mxu1 %v4941_v31 }
 0xa0b   : > { %v3003_v9 = vpop.permute.xlu1 %3002 }
 0xa0c   : > { %v3008_v2 = vsel %vm1497_vm3, %v3003_v9, 0 }
 0xa0d   : > { %4628 = vmatpush3.bf16.msra.mxu0 %v3008_v2 }
 0xa0e   : > { %v4873_v11 = vpop.eup %4872  ;;  %4379 = vmatprep.subr.bf16.mxu0 %v4760_v8  ;;  %v4790_v8 = vld [vmem:[%s6080_s8 + $0x78] sm:$0xff]  }
 0xa0f   : > { %v2850_v15 = vmul.f32 %v4873_v11, %v4865_v49  ;;  %v4767_v49 = vld [vmem:[%s6127_s7 + $0x18] sm:$0xff]   ;;  %v4780_v11 = vld [vmem:[%s6080_s8 + $0x50] sm:$0xff]  }
 0xa10   : > { %4630 = vmatmul.mubr.msk.bf16.vlgmr.msra.gmra.mrb[68].mxu0 %vm1423_vm4, %v2999_v22  ;;  %v2163_v22 = vpack.c.bf16 %v5518_v62, %v5518_v62  ;;  %v4783_v62 = vld [vmem:[%s6080_s8 + $0x18] sm:$0xff]  }
 0xa11   : > { %3116 = vst.msk [vmem:[%s5324_s2 + $0x78] sm:$0xff] %vm1423_vm4, %v2850_v15  ;;  %v2898_v47 = vpack.c.bf16 %v2850_v15, %v2850_v15  ;;  %4380 = vmatpush3.bf16.msra.mxu0 %v4761_v10  ;;  %v2386_v10 = vsel %vm1423_vm4, %v5530_v21, -inf }
 0xa12   : > { %4381 = vmatprep.subr.bf16.mxu0 %v4762_v12  ;;  %v4791_v12 = vld [vmem:[%s6080_s8 + $0x38] sm:$0xff]  }
 0xa13   : > { %4624 = vmatmul.mubr.msk.bf16.vlgmr.msra.gmra.mrb[72].mxu1 %vm1423_vm4, %v2898_v47 }
 0xa14   : > { %4635 = vmatprep.mubr.msk.bf16.mxu1 %vm4942_vm1, %v4941_v31 }
 0xa15   : > { %4382 = vmatpush3.bf16.msra.mxu0 %v4763_v55 }
 0xa16   : > { %4383 = vmatprep.subr.bf16.mxu0 %v4764_v17 }
 0xa19   : > { %4384 = vmatpush3.bf16.msra.mxu0 %v4765_v18 }
 0xa1a   : > { %4385 = vmatprep.subr.bf16.mxu0 %v4766_v16 }
 0xa1d   : > { %4386 = vmatpush3.bf16.msra.mxu0 %v4767_v49 }
 0xa1e   : > { %4387 = vmatprep.subr.bf16.mxu0 %v4768_v37  ;;  %v2164_v37 = vpack.c.bf16 %v5527_v61, %v5527_v61  ;;  %v2524_v61 = vpack.c.bf16 %v5614_v41, %v5614_v41 }
 0xa21   : > { %4388 = vmatpush3.bf16.msra.mxu0 %v4769_v26  ;;  %v1915_v26 = vsel %vm1423_vm4, %v5387_v24, -inf }
 0xa22   : > { %4389 = vmatprep.subr.bf16.mxu0 %v4770_v54  ;;  %v1918_v54 = vsel %vm1423_vm4, %v5394_v3, -inf }
 0xa25   : > { %4390 = vmatpush3.bf16.msra.mxu0 %v4771_v45  ;;  %v2854_v45 = vsel %vm1423_vm4, %v5623_v7, -inf }
 0xa3c   : > { %v2892_v56 = vpop.xlane.xlu1 %2891 }
 0xa3d   : > { %4874 = vrcp.f32 %v2892_v56  ;;  %v4781_v56 = vld [vmem:[%s6080_s8 + $0x10] sm:$0xff]  }
 0xa40   : > { %v3052_v34 = vpop.permute.xlu1 %3051 }
 0xa41   : > { %v3057_v51 = vsel %vm1497_vm3, %v3052_v34, 0  ;;  %v2062_v34 = vpack.c.bf16 %v5520_v1, %v5520_v1  ;;  %v4785_v1 = vld [vmem:[%s6080_s8 + $0x20] sm:$0xff]  }
 0xa42   : > { %4634 = vmatpush3.bf16.msra.mxu1 %v3057_v51  ;;  %v4782_v51 = vld [vmem:[%s6080_s8 + $0x58] sm:$0xff]  }
 0xa43   : > { %4401 = vmatprep.subr.bf16.mxu1 %v4776_v28 }
 0xa47   : > { %v4875_v53 = vpop.eup %4874 }
 0xa48   : > { %v2896_v38 = vmul.f32 %v4875_v53, %v4867_v39  ;;  %v4772_v39 = vld [vmem:[%s6127_s7 + $0x70] sm:$0xff]   ;;  %v4784_v53 = vld [vmem:[%s6080_s8 + $0x60] sm:$0xff]  }
 0xa49   : > { %4391 = vmatprep.subr.bf16.mxu0 %v4772_v39 }
 0xa4a   : > { %3124 = vst.msk [vmem:[%s5324_s2 + $0xb8] sm:$0xff] %vm1423_vm4, %v2896_v38  ;;  %v3000_v46 = vpack.c.bf16 %v2896_v38, %v2896_v38  ;;  %4392 = vmatpush3.bf16.msra.mxu0 %v4773_v30  ;;  %v4786_v38 = vld [vmem:[%s6080_s8 + $0x68] sm:$0xff]   ;;  %v2523_v30 = vpack.c.bf16 %v5609_v6, %v5609_v6 }
 0xa4b   : > { %4393 = vmatprep.subr.bf16.mxu0 %v4774_v43 }
 0xa4c   : > { %4636 = vmatmul.mubr.msk.bf16.vlgmr.msra.gmra.mrb[76].mxu1 %vm1423_vm4, %v3000_v46  ;;  %v4787_v46 = vld [vmem:[%s6080_s8 + $0x28] sm:$0xff]  }
 0xa4d   : > { %4402 = vmatpush3.bf16.msra.mxu1 %v4777_v59 }
 0xa4e   : > { %4394 = vmatpush3.bf16.msra.mxu0 %v4775_v19  ;;  %4403 = vmatprep.subr.bf16.mxu1 %v4778_v48  ;;  %v1587_v48 = vpack.c.bf16 %v5380_v20, %v5380_v20  ;;  %v2620_v20 = vpack.c.bf16 %v5620_v25, %v5620_v25 }
 0xa4f   : > { %4639 = vmatprep.subr.bf16.mxu0 %v4941_v31 }
 0xa51   : > { %4404 = vmatpush3.bf16.msra.mxu1 %v4779_v42 }
 0xa52   : > { %4405 = vmatprep.subr.bf16.mxu1 %v4780_v11 }
 0xa55   : > { %4406 = vmatpush3.bf16.msra.mxu1 %v4781_v56 }
 0xa56   : > { %4407 = vmatprep.subr.bf16.mxu1 %v4782_v51  ;;  %v4797_v51 = vld [vmem:[%s6084_s12 + $0x8] sm:$0xff]  }
 0xa59   : > { %4408 = vmatpush3.bf16.msra.mxu1 %v4783_v62  ;;  %v4798_v62 = vld [vmem:[%s6084_s12 + $0x10] sm:$0xff]  }
 0xa5a   : > { %4409 = vmatprep.subr.bf16.mxu1 %v4784_v53  ;;  %v4799_v53 = vld [vmem:[%s6084_s12 + $0x18] sm:$0xff]  }
 0xa5d   : > { %4410 = vmatpush3.bf16.msra.mxu1 %v4785_v1  ;;  %v4800_v1 = vld [vmem:[%s6084_s12 + $0x20] sm:$0xff]  }
 0xa5e   : > { %4411 = vmatprep.subr.bf16.mxu1 %v4786_v38  ;;  %v4801_v38 = vld [vmem:[%s6084_s12 + $0x28] sm:$0xff]  }
 0xa61   : > { %4412 = vmatpush3.bf16.msra.mxu1 %v4787_v46 }
 0xaa1   : > { %v2942_v14 = vpop.f32.mrb[64].mxu0 }
 0xaa2   : > { %v2997_v58 = vpack.c.bf16 %v2942_v14, %v2942_v14  ;;  %v4619_v60 = vpop.f32.mrb[65].mxu0  ;;  %v4788_v14 = vld [vmem:[%s6080_s8 + $0x70] sm:$0xff]  }
 0xaa3   : > { %v2945_v63 = vpop.f32.mrb[66].mxu0  ;;  %4413 = vmatprep.subr.bf16.mxu1 %v4788_v14  ;;  %v2383_v60 = vsel %vm1423_vm4, %v5523_v23, -inf }
 0xaa4   : > { %3133 = vrot.lane.b32.xlu0 %v2997_v58, %s4943_s30  ;;  %v4620_v0 = vpop.f32.mrb[67].mxu0  ;;  %v1446_v58 = vsel %vm1423_vm4, %v5292_v52, -inf  ;;  %v2851_v63 = vsel %vm1423_vm4, %v5616_v36, -inf }
 0xaa5   : > { %v1449_v0 = vsel %vm1423_vm4, %v5295_v57, -inf }
 0xaa8   : > { %3127 = vrot.lane.b32.xlu0 %v2061_v5, %s4943_s30  ;;  %v4789_v5 = vld [vmem:[%s6080_s8 + $0x30] sm:$0xff]  }
 0xaa9   : > { %4414 = vmatpush3.bf16.msra.mxu1 %v4789_v5 }
 0xaaa   : > { %4415 = vmatprep.subr.bf16.mxu1 %v4790_v8 }
 0xaad   : > { %4416 = vmatpush3.bf16.msra.mxu1 %v4791_v12  ;;  %v4794_v12 = vld [vmem:[%s6088_s16] sm:$0xff]  }
 0xaae   : > { %4647 = vmatprep.subr.bf16.mxu1 %v4941_v31 }
 0xae3   : > { %v3044_v4 = vpop.f32.mrb[68].mxu0 }
 0xae4   : > { %v3099_v33 = vpack.c.bf16 %v3044_v4, %v3044_v4  ;;  %v4631_v44 = vpop.f32.mrb[69].mxu0 }
 0xae5   : > { %v3047_v50 = vpop.f32.mrb[70].mxu0 }
 0xae6   : > { %v2991_v29 = vpop.f32.mrb[72].mxu1  ;;  %3165 = vrot.lane.b32.xlu0 %v3099_v33, %s4943_s30  ;;  %v4632_v35 = vpop.f32.mrb[71].mxu0  ;;  %v1588_v33 = vpack.c.bf16 %v5382_v27, %v5382_v27 }
 0xae7   : > { %v2998_v9 = vpack.c.bf16 %v2991_v29, %v2991_v29  ;;  %v4625_v2 = vpop.f32.mrb[73].mxu1  ;;  %v2619_v35 = vpack.c.bf16 %v5611_v13, %v5611_v13 }
 0xae8   : > { %v2994_v15 = vpop.f32.mrb[74].mxu1 }
 0xae9   : > { %v4626_v47 = vpop.f32.mrb[75].mxu1  ;;  %3135 = vrot.lane.b32.xlu1 %v2998_v9, %s4943_s30  ;;  %v1684_v15 = vpack.c.bf16 %v5391_v32, %v5391_v32  ;;  %v4796_v32 = vld [vmem:[%s6084_s12] sm:$0xff]  }
 0xaea   : > { %3159 = vrot.lane.b32.xlu0 %v2163_v22, %s4943_s30  ;;  %v1683_v22 = vpack.c.bf16 %v5384_v40, %v5384_v40  ;;  %v4793_v40 = vld [vmem:[%s6082_s10 + $0x8] sm:$0xff]  }
 0xaed   : > { %3129 = vrot.lane.b32.xlu1 %v2062_v34, %s4943_s30  ;;  %v4792_v34 = vld [vmem:[%s6082_s10] sm:$0xff]  }
 0xb09   : > { %1447 = vmax.xlane.f32.xlu0 %v1446_v58 }
 0xb0d   : > { %2384 = vmax.xlane.f32.xlu0 %v2383_v60 }
 0xb11   : > { %2852 = vmax.xlane.f32.xlu0 %v2851_v63  ;;  %v4239_v63 = vld [vmem:[%s6128_s0] ss:$0 sm:$0xff]  ;;  %s4314_s0 = sshll.u32 (%p5089_p4), %s6131_s3, 4 }
 0xb12   : > { %s4032_s25 = scalar_lea.vmem (%p5089_p4), %s6132_s26, %s4314_s0 }
 0xb15   : > { %1450 = vmax.xlane.f32.xlu0 %v1449_v0 }
 0xb16   : > { %v3134_v39 = vpop.permute.xlu0 %3133 }
 0xb17   : > { %v3145_v19 = vsel %vm1238_vm2, %v2523_v30, %v3134_v39 }
 0xb19   : > { %2387 = vmax.xlane.f32.xlu0 %v2386_v10 }
 0xb1a   : > { %v3128_v28 = vpop.permute.xlu0 %3127 }
 0xb1b   : > { %v3139_v6 = vsel %vm1238_vm2, %v1587_v48, %v3128_v28  ;;  %v4805_v28 = vld [vmem:[%s6090_s18 + $0x8] sm:$0xff]   ;;  %v4807_v48 = vld [vmem:[%s6090_s18 + $0x18] sm:$0xff]  }
 0xb1f   : > { %v3093_v55 = vpop.f32.mrb[76].mxu1 }
 0xb20   : > { %v3100_v17 = vpack.c.bf16 %v3093_v55, %v3093_v55  ;;  %v4637_v18 = vpop.f32.mrb[77].mxu1 }
 0xb21   : > { %v3096_v16 = vpop.f32.mrb[78].mxu1 }
 0xb22   : > { %3167 = vrot.lane.b32.xlu1 %v3100_v17, %s4943_s30  ;;  %v4638_v49 = vpop.f32.mrb[79].mxu1  ;;  %v4795_v17 = vld [vmem:[%s6088_s16 + $0x8] sm:$0xff]  }
 0xb26   : > { %3161 = vrot.lane.b32.xlu1 %v2164_v37, %s4943_s30 }
 0xb4a   : > { %1916 = vmax.xlane.f32.xlu1 %v1915_v26  ;;  %v4258_v26 = vld [vmem:[%s6081_s9] ss:$0 sm:$0xff] }
 0xb4e   : > { %1919 = vmax.xlane.f32.xlu1 %v1918_v54 }
 0xb52   : > { %2855 = vmax.xlane.f32.xlu1 %v2854_v45 }
 0xb58   : > { %v3166_v29 = vpop.permute.xlu0 %3165 }
 0xb59   : > { %v3177_v27 = vsel %vm1238_vm2, %v2619_v35, %v3166_v29 }
 0xb5b   : > { %v3136_v43 = vpop.permute.xlu1 %3135 }
 0xb5c   : > { %v3148_v4 = vsel %vm1238_vm2, %v2524_v61, %v3136_v43  ;;  %v3160_v2 = vpop.permute.xlu0 %3159  ;;  %v4802_v43 = vld [vmem:[%s6084_s12 + $0x30] sm:$0xff]  }
 0xb5d   : > { %v4241_v59 = vcombine.low %v3145_v19, %v3148_v4  ;;  %v3171_v13 = vsel %vm1238_vm2, %v1683_v22, %v3160_v2  ;;  %v4803_v19 = vld [vmem:[%s6084_s12 + $0x38] sm:$0xff]   ;;  %v4804_v4 = vld [vmem:[%s6090_s18] sm:$0xff]  }
 0xb5f   : > { %v3130_v44 = vpop.permute.xlu1 %3129  ;;  %3360 = vmatprep.mubr.bf16.mxu0 %v4241_v59  ;;  %v4806_v59 = vld [vmem:[%s6090_s18 + $0x10] sm:$0xff]  }
 0xb60   : > { %v3142_v50 = vsel %vm1238_vm2, %v1588_v33, %v3130_v44  ;;  %v4808_v33 = vld [vmem:[%s6090_s18 + $0x20] sm:$0xff]   ;;  %v4809_v44 = vld [vmem:[%s6090_s18 + $0x28] sm:$0xff]  }
 0xb61   : > { %v4240_v41 = vcombine.low %v3139_v6, %v3142_v50  ;;  %v4810_v6 = vld [vmem:[%s6090_s18 + $0x30] sm:$0xff]   ;;  %v4811_v50 = vld [vmem:[%s6090_s18 + $0x38] sm:$0xff]  }
 0xb63   : > { %3361 = vmatmul.mubr.bf16.vlgmr.msra.gmra.mrb[72].mxu0 %v4240_v41  ;;  %v4277_v41 = vld [vmem:[%s6083_s11] ss:$0 sm:$0xff] }
 0xb64   : > { %4643 = vmatprep.mubr.msk.bf16.mxu0 %vm4942_vm1, %v4941_v31  ;;  %4640 = vmatpush3.bf16.msra.mxu0 %v4792_v34 }
 0xb65   : > { %4641 = vmatprep.subr.bf16.mxu0 %v4941_v31 }
 0xb68   : > { %4642 = vmatpush3.bf16.msra.mxu0 %v4793_v40 }
 0xb69   : > { %4667 = vmatprep.subr.bf16.mxu0 %v4941_v31 }
 0xb94   : > { %v3168_v42 = vpop.permute.xlu1 %3167 }
 0xb95   : > { %v3180_v9 = vsel %vm1238_vm2, %v2620_v20, %v3168_v42 }
 0xb96   : > { %v4260_v11 = vcombine.low %v3177_v27, %v3180_v9 }
 0xb98   : > { %v3162_v47 = vpop.permute.xlu1 %3161  ;;  %3540 = vmatprep.mubr.bf16.mxu1 %v4260_v11 }
 0xb99   : > { %v3174_v56 = vsel %vm1238_vm2, %v1684_v15, %v3162_v47 }
 0xb9a   : > { %v4259_v25 = vcombine.low %v3171_v13, %v3174_v56 }
 0xb9c   : > { %3541 = vmatmul.mubr.bf16.vlgmr.msra.gmra.mrb[80].mxu1 %v4259_v25 }
 0xb9d   : > { %4663 = vmatprep.mubr.msk.bf16.mxu1 %vm4942_vm1, %v4941_v31  ;;  %4648 = vmatpush3.bf16.msra.mxu1 %v4796_v32 }
 0xb9e   : > { %4649 = vmatprep.subr.bf16.mxu1 %v4941_v31 }
 0xba1   : > { %4650 = vmatpush3.bf16.msra.mxu1 %v4797_v51 }
 0xba2   : > { %4651 = vmatprep.subr.bf16.mxu1 %v4941_v31 }
 0xba5   : > { %4652 = vmatpush3.bf16.msra.mxu1 %v4798_v62  ;;  %v4281_v62 = vld [vmem:[%s6085_s13] ss:$0 sm:$0xff] }
 0xba6   : > { %4653 = vmatprep.subr.bf16.mxu1 %v4941_v31 }
 0xba9   : > { %4654 = vmatpush3.bf16.msra.mxu1 %v4799_v53 }
 0xbaa   : > { %4655 = vmatprep.subr.bf16.mxu1 %v4941_v31 }
 0xbad   : > { %4656 = vmatpush3.bf16.msra.mxu1 %v4800_v1 }
 0xbae   : > { %4657 = vmatprep.subr.bf16.mxu1 %v4941_v31 }
 0xbb1   : > { %4658 = vmatpush3.bf16.msra.mxu1 %v4801_v38 }
 0xbb2   : > { %4659 = vmatprep.subr.bf16.mxu1 %v4941_v31 }
 0xbb5   : > { %4660 = vmatpush3.bf16.msra.mxu1 %v4802_v43 }
 0xbb6   : > { %4661 = vmatprep.subr.bf16.mxu1 %v4941_v31 }
 0xbb9   : > { %4662 = vmatpush3.bf16.msra.mxu1 %v4803_v19 }
 0xc36   : > { %v4395_v46 = vpop.f32.mrb[72].mxu0 }
 0xc37   : > { %v4396_v14 = vpop.f32.mrb[73].mxu0 }
 0xc38   : > { %v4397_v58 = vadd.f32 %v4396_v14, %v4395_v46  ;;  %v4398_v60 = vpop.f32.mrb[74].mxu0 }
 0xc39   : > { %v4399_v0 = vpop.f32.mrb[75].mxu0 }
 0xc3a   : > { %v4400_v5 = vadd.f32 %v4399_v0, %v4398_v60  ;;  %v5854_v8 = vadd.f32 %v4397_v58, %v4239_v63 }
 0xc3c   : > { %v5856_v10 = vadd.f32 %v4400_v5, %v4239_v63 }
 0xc3e   : > { %v3573_v55 = vpack.c.bf16 %v5856_v10, %v5854_v8 }
 0xc40   : > { %4644 = vmatmul.mubr.msk.bf16.vlgmr.msra.gmra.mrb[76].mxu0 %vm857_vm0, %v3573_v55 }
 0xc41   : > { %4668 = vmatpush3.bf16.msra.mxu0 %v4794_v12  ;;  %4671 = vmatprep.mubr.msk.bf16.mxu0 %vm4942_vm1, %v4941_v31  ;;  %v1448_v12 = vpop.xlane.xlu0 %1447 }
 0xc42   : > { %4669 = vmatprep.subr.bf16.mxu0 %v4941_v31 }
 0xc45   : > { %4670 = vmatpush3.bf16.msra.mxu0 %v4795_v17  ;;  %v2385_v55 = vpop.xlane.xlu0 %2384  ;;  %v1917_v17 = vpop.xlane.xlu1 %1916 }
 0xc46   : > { %4675 = vmatprep.subr.bf16.mxu0 %v4941_v31 }
 0xc6f   : > { %v4417_v18 = vpop.f32.mrb[80].mxu1 }
 0xc70   : > { %v4418_v16 = vpop.f32.mrb[81].mxu1 }
 0xc71   : > { %v4419_v49 = vadd.f32 %v4418_v16, %v4417_v18  ;;  %v4420_v37 = vpop.f32.mrb[82].mxu1  ;;  %v1452_v18 = vsub.f32 %v5292_v52, %v1448_v12  ;;  %v1921_v16 = vsub.f32 %v5387_v24, %v1917_v17 }
 0xc72   : > { %v4421_v54 = vpop.f32.mrb[83].mxu1 }
 0xc73   : > { %v4422_v45 = vadd.f32 %v4421_v54, %v4420_v37  ;;  %v5874_v39 = vadd.f32 %v4419_v49, %v4258_v26  ;;  %v2853_v49 = vpop.xlane.xlu0 %2852  ;;  %v1454_v37 = vmul.f32 1.442695, %v1452_v18  ;;  %v1923_v54 = vmul.f32 1.442695, %v1921_v16 }
 0xc75   : > { %v5876_v30 = vadd.f32 %v4422_v45, %v4258_v26  ;;  %v2389_v26 = vsub.f32 %v5523_v23, %v2385_v55  ;;  %4876 = vpow2.f32 %v1454_v37 }
 0xc76   : > { %4878 = vpow2.f32 %v1923_v54 }
 0xc77   : > { %v3805_v61 = vpack.c.bf16 %v5876_v30, %v5874_v39 }
 0xc79   : > { %4672 = vmatmul.mubr.msk.bf16.vlgmr.msra.gmra.mrb[80].mxu0 %vm857_vm0, %v3805_v61  ;;  %v4296_v61 = vld [vmem:[%s6091_s19] ss:$0 sm:$0xff] }
 0xc7a   : > { %4691 = vmatprep.mubr.msk.bf16.mxu0 %vm4942_vm1, %v4941_v31  ;;  %4676 = vmatpush3.bf16.msra.mxu0 %v4804_v4 }
 0xc7b   : > { %4677 = vmatprep.subr.bf16.mxu0 %v4941_v31 }
 0xc7e   : > { %4678 = vmatpush3.bf16.msra.mxu0 %v4805_v28 }
 0xc7f   : > { %4679 = vmatprep.subr.bf16.mxu0 %v4941_v31 }
 0xc82   : > { %4680 = vmatpush3.bf16.msra.mxu0 %v4806_v59 }
 0xc83   : > { %4681 = vmatprep.subr.bf16.mxu0 %v4941_v31 }
 0xc86   : > { %4682 = vmatpush3.bf16.msra.mxu0 %v4807_v48  ;;  %v5944_v48 = vpop.eup %4876 }
 0xc87   : > { %4683 = vmatprep.subr.bf16.mxu0 %v4941_v31 }
 0xc8a   : > { %4684 = vmatpush3.bf16.msra.mxu0 %v4808_v33 }
 0xc8b   : > { %4685 = vmatprep.subr.bf16.mxu0 %v4941_v31 }
 0xc8e   : > { %4686 = vmatpush3.bf16.msra.mxu0 %v4809_v44  ;;  %v5947_v44 = vpop.eup %4878 }
 0xc8f   : > { %4687 = vmatprep.subr.bf16.mxu0 %v4941_v31 }
 0xc92   : > { %4688 = vmatpush3.bf16.msra.mxu0 %v4810_v6  ;;  %v1458_v6 = vsel %vm1423_vm4, %v5944_v48, 0.0 }
 0xc93   : > { %4689 = vmatprep.subr.bf16.mxu0 %v4941_v31  ;;  %v4292_v31 = vld [vmem:[%s6089_s17] ss:$0 sm:$0xff] }
 0xc96   : > { %4690 = vmatpush3.bf16.msra.mxu0 %v4811_v50 }
 0xd13   : > { %v3629_v29 = vpop.f32.mrb[76].mxu0 }
 0xd14   : > { %v3630_v35 = vadd.f32 %v4277_v41, %v3629_v29  ;;  %v4645_v20 = vpop.f32.mrb[77].mxu0 }
 0xd15   : > { %v3632_v42 = vpop.f32.mrb[78].mxu0  ;;  %v1920_v20 = vpop.xlane.xlu1 %1919 }
 0xd16   : > { %v3633_v27 = vadd.f32 %v4277_v41, %v3632_v42  ;;  %v4646_v9 = vpop.f32.mrb[79].mxu0  ;;  %v3636_v2 = vmax.f32 %v3630_v35, 0.0  ;;  %v1451_v35 = vpop.xlane.xlu0 %1450 }
 0xd18   : > { %v3637_v11 = vmax.f32 %v3633_v27, 0.0 }
 0xd19   : > { %v2856_v27 = vpop.xlane.xlu1 %2855 }
 0xd1a   : > { %v3638_v22 = vpack.c.bf16 %v3637_v11, %v3636_v2  ;;  %v2388_v42 = vpop.xlane.xlu0 %2387 }
 0xd1c   : > { %4664 = vmatmul.mubr.bf16.vlgmr.msra.gmra.mrb[84].mxu1 %v3638_v22 }
 0xd4c   : > { %v3861_v15 = vpop.f32.mrb[80].mxu0 }
 0xd4d   : > { %v3862_v47 = vadd.f32 %v4292_v31, %v3861_v15  ;;  %v4673_v13 = vpop.f32.mrb[81].mxu0 }
 0xd4e   : > { %v3864_v56 = vpop.f32.mrb[82].mxu0 }
 0xd4f   : > { %v3865_v25 = vadd.f32 %v4292_v31, %v3864_v56  ;;  %v4674_v34 = vpop.f32.mrb[83].mxu0  ;;  %v3868_v40 = vmax.f32 %v3862_v47, 0.0 }
 0xd50   : > { %v1453_v34 = vsub.f32 %v5295_v57, %v1451_v35 }
 0xd51   : > { %v3869_v32 = vmax.f32 %v3865_v25, 0.0 }
 0xd53   : > { %v3870_v51 = vpack.c.bf16 %v3869_v32, %v3868_v40  ;;  %v1922_v40 = vsub.f32 %v5394_v3, %v1920_v20  ;;  %v1456_v32 = vmul.f32 1.442695, %v1453_v34 }
 0xd55   : > { %4692 = vmatmul.mubr.bf16.vlgmr.msra.gmra.mrb[84].mxu0 %v3870_v51  ;;  %v2390_v51 = vsub.f32 %v5530_v21, %v2388_v42 }
 0xdef   : > { %v3727_v53 = vpop.f32.mrb[84].mxu1 }
 0xdf0   : > { %v3728_v1 = vadd.f32 %v4281_v62, %v3727_v53  ;;  %v4665_v38 = vpop.f32.mrb[85].mxu1  ;;  %v2858_v53 = vsub.f32 %v5623_v7, %v2856_v27 }
 0xdf1   : > { %v3730_v46 = vpop.f32.mrb[86].mxu1 }
 0xdf2   : > { %v3731_v14 = vadd.f32 %v4281_v62, %v3730_v46  ;;  %v4666_v58 = vpop.f32.mrb[87].mxu1  ;;  %v3734_v60 = vadd.f32 %v3728_v1, %v5854_v8  ;;  %v2857_v8 = vsub.f32 %v5616_v36, %v2853_v49  ;;  %v1925_v62 = vmul.f32 1.442695, %v1922_v40  ;;  %v4305_v40 = vld [vmem:[%s6092_s20] ss:$0 sm:$0xff] }
 0xdf3   : > { %v2393_v1 = vmul.f32 1.442695, %v2390_v51  ;;  %v2861_v38 = vmul.f32 1.442695, %v2858_v53  ;;  %v4306_v53 = vld [vmem:[%s6129_s23] ss:$0 sm:$0xff] }
 0xdf4   : > { %v3736_v63 = vsel %vm857_vm0, %v3734_v60, 0.0  ;;  %v3735_v0 = vadd.f32 %v3731_v14, %v5856_v10  ;;  %v2391_v10 = vmul.f32 1.442695, %v2389_v26  ;;  %v2859_v45 = vmul.f32 1.442695, %v2857_v8 }
 0xdf5   : > { %3737 = vadd.xlane.f32.xlu0 %v3736_v63 }
 0xdf6   : > { %v3739_v5 = vsel %vm857_vm0, %v3735_v0, 0.0  ;;  %4880 = vpow2.f32 %v2391_v10 }
 0xdf7   : > { %3740 = vadd.xlane.f32.xlu1 %v3739_v5  ;;  %4882 = vpow2.f32 %v2859_v45 }
 0xdf8   : > { %4884 = vpow2.f32 %v1456_v32 }
 0xdf9   : > { %4886 = vpow2.f32 %v1925_v62 }
 0xdfa   : > { %4888 = vpow2.f32 %v2393_v1 }
 0xdfb   : > { %4890 = vpow2.f32 %v2861_v38 }
 0xe00   : > { %v5951_v50 = vpop.eup %4880 }
 0xe01   : > { %v5955_v41 = vpop.eup %4882 }
 0xe02   : > { %v2863_v29 = vsel %vm1423_vm4, %v5955_v41, 0.0  ;;  %v5984_v12 = vpop.eup %4884 }
 0xe03   : > { %v5987_v18 = vpop.eup %4886  ;;  %v1461_v49 = vsel %vm1423_vm4, %v5984_v12, 0.0 }
 0xe04   : > { %v5991_v37 = vpop.eup %4888  ;;  %v1930_v26 = vsel %vm1423_vm4, %v5987_v18, 0.0 }
 0xe05   : > { %v5995_v8 = vpop.eup %4890  ;;  %v2398_v10 = vsel %vm1423_vm4, %v5991_v37, 0.0 }
 0xe28   : > { %v3959_v43 = vpop.f32.mrb[84].mxu0 }
 0xe29   : > { %v3960_v52 = vadd.f32 %v4296_v61, %v3959_v43  ;;  %v4693_v19 = vpop.f32.mrb[85].mxu0  ;;  %v2866_v43 = vsel %vm1423_vm4, %v5995_v8, 0.0 }
 0xe2a   : > { %v3962_v24 = vpop.f32.mrb[86].mxu0 }
 0xe2b   : > { %v3963_v4 = vadd.f32 %v4296_v61, %v3962_v24  ;;  %v4694_v28 = vpop.f32.mrb[87].mxu0  ;;  %v3966_v23 = vadd.f32 %v3960_v52, %v5874_v39  ;;  %v1927_v39 = vsel %vm1423_vm4, %v5947_v44, 0.0 }
 0xe2d   : > { %v3968_v36 = vsel %vm857_vm0, %v3966_v23, 0.0  ;;  %v3967_v59 = vadd.f32 %v3963_v4, %v5876_v30  ;;  %v2395_v30 = vsel %vm1423_vm4, %v5951_v50, 0.0 }
 0xe2e   : > { %3969 = vadd.xlane.f32.xlu0 %v3968_v36 }
 0xe2f   : > { %v3971_v33 = vsel %vm857_vm0, %v3967_v59, 0.0 }
 0xe30   : > { %3972 = vadd.xlane.f32.xlu1 %v3971_v33 }
 0xe32   : > { %1459 = vadd.xlane.f32.xlu0 %v1458_v6 }
 0xe34   : > { %1928 = vadd.xlane.f32.xlu1 %v1927_v39 }
 0xe36   : > { %2396 = vadd.xlane.f32.xlu0 %v2395_v30  ;;  %v4291_v30 = vld [vmem:[%s6087_s15] ss:$0 sm:$0xff] }
 0xe38   : > { %2864 = vadd.xlane.f32.xlu1 %v2863_v29 }
 0xe82   : > { %v3738_v9 = vpop.xlane.xlu0 %3737 }
 0xe83   : > { %v3743_v2 = vmul.f32 0.03125, %v3738_v9 }
 0xe84   : > { %v3741_v11 = vpop.xlane.xlu1 %3740 }
 0xe85   : > { %v5961_v22 = vsub.f32 %v3734_v60, %v3743_v2  ;;  %v3744_v31 = vmul.f32 0.03125, %v3741_v11 }
 0xe87   : > { %v5963_v15 = vsub.f32 %v3735_v0, %v3744_v31  ;;  %v3747_v47 = vmul.f32 %v5961_v22, %v5961_v22 }
 0xe89   : > { %v3749_v13 = vsel %vm857_vm0, %v3747_v47, 0.0  ;;  %v3748_v56 = vmul.f32 %v5963_v15, %v5963_v15 }
 0xe8a   : > { %3750 = vadd.xlane.f32.xlu0 %v3749_v13 }
 0xe8b   : > { %v3752_v25 = vsel %vm857_vm0, %v3748_v56, 0.0 }
 0xe8c   : > { %3753 = vadd.xlane.f32.xlu1 %v3752_v25 }
 0xebb   : > { %v3970_v46 = vpop.xlane.xlu0 %3969 }
 0xebc   : > { %v3974_v14 = vmul.f32 0.03125, %v3970_v46 }
 0xebd   : > { %v3973_v58 = vpop.xlane.xlu1 %3972 }
 0xebe   : > { %v5975_v60 = vsub.f32 %v3966_v23, %v3974_v14  ;;  %v3975_v63 = vmul.f32 0.03125, %v3973_v58 }
 0xebf   : > { %v1460_v57 = vpop.xlane.xlu0 %1459 }
 0xec0   : > { %v5977_v3 = vsub.f32 %v3967_v59, %v3975_v63  ;;  %4892 = vrcp.f32 %v1460_v57  ;;  %v3978_v21 = vmul.f32 %v5975_v60, %v5975_v60 }
 0xec1   : > { %v1929_v7 = vpop.xlane.xlu1 %1928 }
 0xec2   : > { %4894 = vrcp.f32 %v1929_v7  ;;  %v3980_v0 = vsel %vm857_vm0, %v3978_v21, 0.0  ;;  %v3979_v5 = vmul.f32 %v5977_v3, %v5977_v3 }
 0xec3   : > { %3981 = vadd.xlane.f32.xlu0 %v3980_v0  ;;  %v2397_v55 = vpop.xlane.xlu0 %2396 }
 0xec4   : > { %4896 = vrcp.f32 %v2397_v55  ;;  %v3983_v17 = vsel %vm857_vm0, %v3979_v5, 0.0 }
 0xec5   : > { %3984 = vadd.xlane.f32.xlu1 %v3983_v17  ;;  %v2865_v16 = vpop.xlane.xlu1 %2864 }
 0xec6   : > { %4898 = vrcp.f32 %v2865_v16 }
 0xec7   : > { %1462 = vadd.xlane.f32.xlu0 %v1461_v49 }
 0xec9   : > { %1931 = vadd.xlane.f32.xlu1 %v1930_v26 }
 0xeca   : > { %v4893_v54 = vpop.eup %4892 }
 0xecb   : > { %v1466_v45 = vmul.f32 %v4893_v54, %v5944_v48  ;;  %2399 = vadd.xlane.f32.xlu0 %v2398_v10 }
 0xecc   : > { %v4895_v61 = vpop.eup %4894 }
 0xecd   : > { %3105 = vst.msk [vmem:[%s5324_s2 + $0x20] sm:$0xff] %vm1423_vm4, %v1466_v45  ;;  %v1935_v52 = vmul.f32 %v4895_v61, %v5947_v44  ;;  %2867 = vadd.xlane.f32.xlu1 %v2866_v43 }
 0xece   : > { %v4897_v19 = vpop.eup %4896 }
 0xecf   : > { %3106 = vst.msk [vmem:[%s5324_s2 + $0x28] sm:$0xff] %vm1423_vm4, %v1935_v52  ;;  %v2403_v24 = vmul.f32 %v4897_v19, %v5951_v50  ;;  %v4290_v50 = vld [vmem:[%s6086_s14] ss:$0 sm:$0xff] }
 0xed0   : > { %v4899_v4 = vpop.eup %4898 }
 0xed1   : > { %3107 = vst.msk [vmem:[%s5324_s2 + $0x30] sm:$0xff] %vm1423_vm4, %v2403_v24  ;;  %v2871_v28 = vmul.f32 %v4899_v4, %v5955_v41 }
 0xed3   : > { %3108 = vst.msk [vmem:[%s5324_s2 + $0x38] sm:$0xff] %vm1423_vm4, %v2871_v28 }
 0xf17   : > { %v3751_v23 = vpop.xlane.xlu0 %3750 }
 0xf18   : > { %v3755_v36 = vmul.f32 0.03125, %v3751_v23 }
 0xf19   : > { %v3754_v59 = vpop.xlane.xlu1 %3753 }
 0xf1a   : > { %v3757_v48 = vadd.f32 1e-05, %v3755_v36  ;;  %v3756_v33 = vmul.f32 0.03125, %v3754_v59 }
 0xf1c   : > { %4900 = vrsqrt.f32 %v3757_v48  ;;  %v3758_v44 = vadd.f32 1e-05, %v3756_v33 }
 0xf1e   : > { %4902 = vrsqrt.f32 %v3758_v44 }
 0xf26   : > { %v4901_v6 = vpop.eup %4900 }
 0xf27   : > { %v3761_v39 = vmul.f32 %v4901_v6, %v5961_v22 }
 0xf28   : > { %v4903_v41 = vpop.eup %4902 }
 0xf29   : > { %v3769_v29 = vmul.f32 %v4290_v50, %v3761_v39  ;;  %v3762_v35 = vmul.f32 %v4903_v41, %v5963_v15 }
 0xf2b   : > { %v3777_v20 = vadd.f32 %v4291_v30, %v3769_v29  ;;  %v3770_v42 = vmul.f32 %v4290_v50, %v3762_v35 }
 0xf2d   : > { %3779 = vst.msk [vmem:[%s6022_s6] sm:$0xff] %vm857_vm0, %v3777_v20  ;;  %v3778_v27 = vadd.f32 %v4291_v30, %v3770_v42 }
 0xf2f   : > { %3780 = vst.msk [vmem:[%s6022_s6 + $0x8] sm:$0xff] %vm857_vm0, %v3778_v27 }
 0xf50   : > { %v3982_v9 = vpop.xlane.xlu0 %3981 }
 0xf51   : > { %v3986_v2 = vmul.f32 0.03125, %v3982_v9 }
 0xf52   : > { %v3985_v11 = vpop.xlane.xlu1 %3984 }
 0xf53   : > { %v3988_v22 = vadd.f32 1e-05, %v3986_v2  ;;  %v3987_v31 = vmul.f32 0.03125, %v3985_v11 }
 0xf54   : > { %v1463_v47 = vpop.xlane.xlu0 %1462 }
 0xf55   : > { %4904 = vrsqrt.f32 %v3988_v22  ;;  %v3989_v13 = vadd.f32 1e-05, %v3987_v31 }
 0xf56   : > { %4906 = vrcp.f32 %v1463_v47  ;;  %v1932_v15 = vpop.xlane.xlu1 %1931 }
 0xf57   : > { %4908 = vrsqrt.f32 %v3989_v13 }
 0xf58   : > { %4910 = vrcp.f32 %v1932_v15  ;;  %v2400_v56 = vpop.xlane.xlu0 %2399 }
 0xf59   : > { %4912 = vrcp.f32 %v2400_v56 }
 0xf5a   : > { %v2868_v25 = vpop.xlane.xlu1 %2867 }
 0xf5b   : > { %4914 = vrcp.f32 %v2868_v25 }
 0xf5f   : > { %v4905_v34 = vpop.eup %4904 }
 0xf60   : > { %v4907_v32 = vpop.eup %4906  ;;  %v3992_v51 = vmul.f32 %v4905_v34, %v5975_v60 }
 0xf61   : > { %v4909_v62 = vpop.eup %4908  ;;  %v1467_v1 = vmul.f32 %v4907_v32, %v5984_v12  ;;  %v4068_v12 = vld [vmem:[%s6022_s6 + $0x8] sm:$0xff] (%p5089_p4) }
 0xf62   : > { %v4911_v38 = vpop.eup %4910  ;;  %v4000_v46 = vmul.f32 %v4305_v40, %v3992_v51  ;;  %v3993_v14 = vmul.f32 %v4909_v62, %v5977_v3  ;;  %v4066_v3 = vld [vmem:[%s6022_s6] sm:$0xff] (%p5089_p4)  ;;  %4069 = vst [vmem:[%s4032_s25 + $0x8] sm:$0xff] (%p5089_p4), %v4068_v12 }
 0xf63   : > { %v4913_v58 = vpop.eup %4912  ;;  %3117 = vst.msk [vmem:[%s5324_s2 + $0x80] sm:$0xff] %vm1423_vm4, %v1467_v1  ;;  %v1936_v63 = vmul.f32 %v4911_v38, %v5987_v18  ;;  %4029 = sbr.rel (!%p5089_p4) target bundleno = 3953 (0xf71), region = 116  ;;  %4067 = vst [vmem:[%s4032_s25] sm:$0xff] (%p5089_p4), %v4066_v3 }
 0xf64   : > { %v4008_v60 = vadd.f32 %v4306_v53, %v4000_v46  ;;  %v4001_v57 = vmul.f32 %v4305_v40, %v3993_v14  ;;  %v2404_v21 = vmul.f32 %v4913_v58, %v5991_v37 }
 0xf65   : > { %v4915_v7 = vpop.eup %4914  ;;  %3118 = vst.msk [vmem:[%s5324_s2 + $0x88] sm:$0xff] %vm1423_vm4, %v1936_v63 }
 0xf66   : > { %4307 = vst.msk [vmem:[%s6022_s6 + $0x10] sm:$0xff] %vm857_vm0, %v4008_v60  ;;  %v4009_v0 = vadd.f32 %v4306_v53, %v4001_v57  ;;  %v2872_v5 = vmul.f32 %v4915_v7, %v5995_v8 }
 0xf67   : > { %3119 = vst.msk [vmem:[%s5324_s2 + $0x90] sm:$0xff] %vm1423_vm4, %v2404_v21 }
 0xf68   : > { %4308 = vst.msk [vmem:[%s6022_s6 + $0x18] sm:$0xff] %vm857_vm0, %v4009_v0 }
 0xf69   : > { %3120 = vst.msk [vmem:[%s5324_s2 + $0x98] sm:$0xff] %vm1423_vm4, %v2872_v5 }
 0xf6d   : > { %v4070_v55 = vld [vmem:[%s6022_s6 + $0x10] sm:$0xff] }
 0xf6e   : > { %4071 = vst [vmem:[%s4032_s25 + $0x20] sm:$0xff] %v4070_v55 }
 0xf6f   : > { %v4072_v17 = vld [vmem:[%s6022_s6 + $0x18] sm:$0xff] }
 0xf70   : > { %4073 = vst [vmem:[%s4032_s25 + $0x28] sm:$0xff] %v4072_v17 }
 0xf71 PF: > { %s6133_s24 = sld [smem:[#allocation5_spill]]  ;;  %s6134_s4 = sld [smem:[#allocation3_spill]] }
 0xf72   : > { %s6135_s30 = sld [smem:[#allocation6_spill]] }
 0xf77   : > { %p31_p8 = scmp.ge.s32.totalorder %s6133_s24, 4  }
 0xf79   :  { %33 = sbr.rel (!%p31_p8) target bundleno = 13 (0xd), region = 192 }

</bundles_post_ra>
